<compile_context>
chip_gen: v7x
topology: tpu7x:2x2x1
jax: 0.10.0
libtpu: 0.0.40
codegen_flags: <defaults>
</compile_context>

<pallas_src>
import functools

import jax
import jax.numpy as jnp
from jax import lax
from jax.experimental import pallas as pl
from jax.experimental.pallas import tpu as pltpu

LANE = 128  # per-gate hidden padding target (lane tile width)


# ---------------------------------------------------------------------------
# Pallas kernel: one grid program = one tower (masked LSTM recurrence + FC).
# ---------------------------------------------------------------------------
def two_tower_kernel(len_ref, xw_ref, whh_ref, wfc_ref, bfc_ref, out_ref):
    T, B, _ = xw_ref.shape
    HP = whh_ref.shape[0]          # per-gate padded hidden dim (multiple of 128)

    whh = whh_ref[...]             # (HP, 4*HP), gate order (i, f, o, g)
    lengths = len_ref[...]         # (B, 1) int32

    # Precompute all T per-timestep masks once (hoisted out of the recurrence).
    t_iota = lax.broadcasted_iota(jnp.int32, (T, B, 1), 0)
    masks = t_iota < lengths[None, :, :]            # (T, B, 1) bool

    h = jnp.zeros((B, HP), jnp.float32)
    c = jnp.zeros((B, HP), jnp.float32)

    # T is small & static -> fully unrolled; only h @ Whh is on the serial path.
    for t in range(T):
        gates = xw_ref[t] + jnp.dot(h, whh, preferred_element_type=jnp.float32)
        sig = jax.nn.sigmoid(gates[:, : 3 * HP])    # (i, f, o) in one push
        i_g = sig[:, 0 * HP:1 * HP]
        f_g = sig[:, 1 * HP:2 * HP]
        o_g = sig[:, 2 * HP:3 * HP]
        g_g = jnp.tanh(gates[:, 3 * HP:])
        c_new = f_g * c + i_g * g_g
        h_new = o_g * jnp.tanh(c_new)
        # packed-sequence semantics: only update while t < length[b]
        m = masks[t]
        h = jnp.where(m, h_new, h)
        c = jnp.where(m, c_new, c)

    out_ref[...] = jnp.dot(h, wfc_ref[...],
                           preferred_element_type=jnp.float32) + bfc_ref[...]


# ---------------------------------------------------------------------------
# Parameter fusion: fold frozen emb@Wih + bias into one table, lane-pad gates.
# ---------------------------------------------------------------------------
def build_kernel_params(params):
    """Reorder gates to (i, f, o, g), pad each gate's hidden dim to a multiple
    of 128 lanes, fold emb @ Wih + (b_ih + b_hh) into a (V, 4H) table, and
    stack the two towers along axis 0."""
    towers = [params["query_tower"], params["doc_tower"]]
    emb = params["emb"]
    h_max = max(t["whh"].shape[1] for t in towers)
    hp = -(-h_max // LANE) * LANE

    GATE_ORDER = (0, 1, 3, 2)      # PyTorch (i, f, g, o) -> (i, f, o, g)

    def fuse(p):
        h = p["whh"].shape[1]
        dh = hp - h
        wih = jnp.concatenate(
            [jnp.pad(p["wih"][k], ((0, 0), (0, dh))) for k in GATE_ORDER], axis=1)
        whh = jnp.concatenate(
            [jnp.pad(p["whh"][k], ((0, dh), (0, dh))) for k in GATE_ORDER], axis=1)
        b = jnp.concatenate(
            [jnp.pad(p["b"][k], ((0, 0), (0, dh))) for k in GATE_ORDER], axis=1)
        # Frozen embedding gather fused with input projection & bias:
        #   table[v] = emb[v] @ Wih + (b_ih + b_hh);  padding row 0 -> bias only.
        table = jnp.dot(emb, wih) + b                          # (V, 4*hp)
        wfc = jnp.pad(p["wfc"], ((0, dh), (0, 0)))             # (hp, O)
        return table, whh, wfc, p["bfc"]

    fused = [fuse(t) for t in towers]
    return {
        "table": jnp.stack([f[0] for f in fused]),   # (2, V, 4*hp)
        "whh":   jnp.stack([f[1] for f in fused]),   # (2, hp, 4*hp)
        "wfc":   jnp.stack([f[2] for f in fused]),   # (2, hp, O)
        "bfc":   jnp.stack([f[3] for f in fused]),   # (2, 1, O)
    }


def _tower_dim_semantics(core_parallel):
    if core_parallel is None:
        try:
            # v7x has 2 TensorCores/chip; CORE_PARALLEL actually shards the
            # tower axis across them.  Elsewhere keep the safe default.
            core_parallel = "7" in jax.devices()[0].device_kind.lower()
        except Exception:
            core_parallel = False
    if core_parallel:
        return (pltpu.CORE_PARALLEL,)
    return ("parallel",)


# ---------------------------------------------------------------------------
# Wrapper: gather xw in the wrapper, single pallas_call with grid=(2,).
# ---------------------------------------------------------------------------
def two_tower_forward(kp, query, doc_positive, doc_negative,
                      query_length, doc_length, core_parallel=None):
    B, Tq = query.shape
    Td = doc_positive.shape[1]
    T = max(Tq, Td)
    B_pad = max(8, -(-2 * B // 8) * 8)          # fits 2B doc rows, full sublane

    def pad_tok(tok):
        b, t = tok.shape
        return jnp.pad(tok.astype(jnp.int32), ((0, B_pad - b), (0, T - t)))

    def pad_len(ln, b_used):
        return jnp.pad(ln.astype(jnp.int32), (0, B_pad - b_used))

    tok_q = pad_tok(query)
    tok_d = pad_tok(jnp.concatenate([doc_positive, doc_negative], axis=0))
    len_q = pad_len(query_length, B)
    len_d = pad_len(jnp.concatenate([doc_length, doc_length], axis=0), 2 * B)
    lens = jnp.stack([len_q, len_d], axis=0).reshape(2, B_pad, 1)

    # Frozen gather + input projection, hoisted out of the kernel entirely:
    #   xw[g, t, b] = emb[tok[g, b, t]] @ Wih_g + b_g      (time-major)
    def gather_xw(table, tok):
        return jnp.transpose(jnp.take(table, tok, axis=0), (1, 0, 2))

    xw = jnp.stack([gather_xw(kp["table"][0], tok_q),
                    gather_xw(kp["table"][1], tok_d)], axis=0)  # (2,T,B_pad,4hp)

    whh, wfc, bfc = kp["whh"], kp["wfc"], kp["bfc"]
    n_prog = whh.shape[0]
    O = wfc.shape[2]

    def stacked(shape):   # per-program block of a (2, ...) stacked array
        nd = len(shape)
        return pl.BlockSpec((pl.Squeezed(),) + tuple(shape[1:]),
                            lambda g, _nd=nd: (g,) + (0,) * (_nd - 1))

    out = pl.pallas_call(
        two_tower_kernel,
        out_shape=jax.ShapeDtypeStruct((n_prog, B_pad, O), jnp.float32),
        grid=(n_prog,),
        in_specs=[
            stacked(lens.shape),
            stacked(xw.shape),
            stacked(whh.shape),
            stacked(wfc.shape),
            stacked(bfc.shape),
        ],
        out_specs=stacked((n_prog, B_pad, O)),
        compiler_params=pltpu.CompilerParams(
            dimension_semantics=_tower_dim_semantics(core_parallel)),
    )(lens, xw, whh, wfc, bfc)

    query_embed = out[0, :B]
    positive_embed = out[1, :B]
    negative_embed = out[1, B:2 * B]
    return query_embed, positive_embed, negative_embed


# ---------------------------------------------------------------------------
# Deterministic parameter init (synthetic weights; no checkpoint load).
# ---------------------------------------------------------------------------
def init_tower_params(key, embed_dim, hidden_dim, output_dim):
    k1, k2, k3, k4, k5 = jax.random.split(key, 5)
    s = 0.1
    return {
        # per PyTorch gate order (i, f, g, o), pre-transposed for x @ W
        "wih": jax.random.normal(k1, (4, embed_dim, hidden_dim), jnp.float32) * s,
        "whh": jax.random.normal(k2, (4, hidden_dim, hidden_dim), jnp.float32) * s,
        # combined bias = bias_ih + bias_hh
        "b": jax.random.normal(k3, (4, 1, hidden_dim), jnp.float32) * s,
        "wfc": jax.random.normal(k4, (hidden_dim, output_dim), jnp.float32) * s,
        "bfc": jax.random.normal(k5, (1, output_dim), jnp.float32) * s,
    }


# ---------------------------------------------------------------------------
# Pure-JAX reference (same math, lax.scan) for a correctness check.
# ---------------------------------------------------------------------------
def ref_tower(tokens, lengths, emb, p):
    x = jnp.take(emb, tokens, axis=0)            # (B, T, E)
    B, T, _ = x.shape
    H = p["whh"].shape[1]
    lengths2d = lengths.astype(jnp.int32).reshape(B, 1)

    def step(carry, t):
        h, c = carry
        x_t = x[:, t, :]
        g = lambda k: x_t @ p["wih"][k] + h @ p["whh"][k] + p["b"][k]
        i_g = jax.nn.sigmoid(g(0))
        f_g = jax.nn.sigmoid(g(1))
        g_g = jnp.tanh(g(2))
        o_g = jax.nn.sigmoid(g(3))
        c_new = f_g * c + i_g * g_g
        h_new = o_g * jnp.tanh(c_new)
        mask = t < lengths2d
        return (jnp.where(mask, h_new, h), jnp.where(mask, c_new, c)), None

    (h, _), _ = lax.scan(step, (jnp.zeros((B, H)), jnp.zeros((B, H))),
                         jnp.arange(T))
    return h @ p["wfc"] + p["bfc"]


if __name__ == "__main__":
    # Small, LSTM-friendly shapes implied by the module.
    B, T = 2, 8
    VOCAB, EMBED_DIM = 50, 32
    LSTM_HIDDEN_Q, LSTM_HIDDEN_D = 32, 48
    OUTPUT_DIM = 16

    root = jax.random.PRNGKey(0)
    k_emb, k_q, k_d, k_tok = jax.random.split(root, 4)

    emb = jax.random.normal(k_emb, (VOCAB, EMBED_DIM), jnp.float32) * 0.1
    emb = emb.at[0].set(0.0)  # padding_idx=0 row -> zero vector

    params = {
        "emb": emb,
        "query_tower": init_tower_params(k_q, EMBED_DIM, LSTM_HIDDEN_Q, OUTPUT_DIM),
        "doc_tower": init_tower_params(k_d, EMBED_DIM, LSTM_HIDDEN_D, OUTPUT_DIM),
    }
    kernel_params = build_kernel_params(params)

    kq, kp_, kn = jax.random.split(k_tok, 3)
    query = jax.random.randint(kq, (B, T), 1, VOCAB, dtype=jnp.int32)
    doc_positive = jax.random.randint(kp_, (B, T), 1, VOCAB, dtype=jnp.int32)
    doc_negative = jax.random.randint(kn, (B, T), 1, VOCAB, dtype=jnp.int32)

    query_length = jnp.array([8, 5], dtype=jnp.int32)
    doc_length = jnp.array([6, 8], dtype=jnp.int32)

    # zero out padded positions (matches typical padded batches with padding_idx=0)
    t_idx = jnp.arange(T)[None, :]
    query = jnp.where(t_idx < query_length[:, None], query, 0)
    doc_positive = jnp.where(t_idx < doc_length[:, None], doc_positive, 0)
    doc_negative = jnp.where(t_idx < doc_length[:, None], doc_negative, 0)

    args = (kernel_params, query, doc_positive, doc_negative,
            query_length, doc_length)
    try:
        fwd = jax.jit(two_tower_forward)
        q_e, p_e, n_e = fwd(*args)
        jax.block_until_ready((q_e, p_e, n_e))
    except Exception:
        # Fallback if CORE_PARALLEL is rejected on this chip generation.
        fwd = jax.jit(functools.partial(two_tower_forward, core_parallel=False))
        q_e, p_e, n_e = fwd(*args)
        jax.block_until_ready((q_e, p_e, n_e))

    # correctness check vs pure-JAX reference
    q_ref = ref_tower(query, query_length, params["emb"], params["query_tower"])
    p_ref = ref_tower(doc_positive, doc_length, params["emb"], params["doc_tower"])
    n_ref = ref_tower(doc_negative, doc_length, params["emb"], params["doc_tower"])
    assert jnp.allclose(q_e, q_ref, atol=1e-4, rtol=1e-4)
    assert jnp.allclose(p_e, p_ref, atol=1e-4, rtol=1e-4)
    assert jnp.allclose(n_e, n_ref, atol=1e-4, rtol=1e-4)

    print("KERNEL_OK")
</pallas_src>

<mosaic_0001>
module attributes {stable_mosaic.version = 11 : i64} {
  func.func @two_tower_kernel(%arg0: i32, %arg1: memref<1x8x1xi32, #tpu.memory_space<vmem>>, %arg2: memref<1x8x8x512xf32, #tpu.memory_space<vmem>>, %arg3: memref<1x128x512xf32, #tpu.memory_space<vmem>>, %arg4: memref<1x128x16xf32, #tpu.memory_space<vmem>>, %arg5: memref<1x1x16xf32, #tpu.memory_space<vmem>>, %arg6: memref<1x8x16xf32, #tpu.memory_space<vmem>>) attributes {dimension_semantics = [#tpu.dimension_semantics<parallel>], iteration_bounds = array<i64: 2>, scalar_prefetch = 0 : i64, scratch_operands = 0 : i64, tpu.core_type = #tpu.core_type<tc>, window_params = [{transform_indices = @transform_0, window_bounds = array<i64: 1, 8, 1>}, {transform_indices = @transform_1, window_bounds = array<i64: 1, 8, 8, 512>}, {transform_indices = @transform_2, window_bounds = array<i64: 1, 128, 512>}, {transform_indices = @transform_3, window_bounds = array<i64: 1, 128, 16>}, {transform_indices = @transform_4, window_bounds = array<i64: 1, 1, 16>}, {transform_indices = @transform_5, window_bounds = array<i64: 1, 8, 16>}]} {
    %c0 = arith.constant 0 : index
    %c0_0 = arith.constant 0 : index
    %c0_1 = arith.constant 0 : index
    %0 = vector.load %arg3[%c0, %c0_0, %c0_1] : memref<1x128x512xf32, #tpu.memory_space<vmem>>, vector<1x128x512xf32>
    %1 = vector.shape_cast %0 : vector<1x128x512xf32> to vector<128x512xf32>
    %c0_2 = arith.constant 0 : index
    %c0_3 = arith.constant 0 : index
    %c0_4 = arith.constant 0 : index
    %2 = vector.load %arg1[%c0_2, %c0_3, %c0_4] : memref<1x8x1xi32, #tpu.memory_space<vmem>>, vector<1x8x1xi32>
    %3 = vector.shape_cast %2 : vector<1x8x1xi32> to vector<8x1xi32>
    %4 = tpu.iota {dimensions = array<i32: 0>} : vector<8x8x1xi32>
    %5 = vector.shape_cast %3 : vector<8x1xi32> to vector<1x8x1xi32>
    %6 = vector.broadcast %5 : vector<1x8x1xi32> to vector<8x8x1xi32>
    %7 = arith.cmpi slt, %4, %6 : vector<8x8x1xi32>
    %cst = arith.constant 0.000000e+00 : f32
    %8 = vector.broadcast %cst : f32 to vector<8x128xf32>
    %cst_5 = arith.constant 0.000000e+00 : f32
    %9 = vector.broadcast %cst_5 : f32 to vector<8x128xf32>
    %c0_6 = arith.constant 0 : index
    %c0_7 = arith.constant 0 : index
    %c0_8 = arith.constant 0 : index
    %c0_9 = arith.constant 0 : index
    %10 = vector.load %arg2[%c0_6, %c0_7, %c0_8, %c0_9] : memref<1x8x8x512xf32, #tpu.memory_space<vmem>>, vector<1x1x8x512xf32>
    %11 = vector.shape_cast %10 : vector<1x1x8x512xf32> to vector<8x512xf32>
    %cst_10 = arith.constant dense<0.000000e+00> : vector<8x512xf32>
    %12 = tpu.matmul %8, %1, %cst_10 {dimension_numbers = #tpu.dot_dimension_numbers<[1], [0], [0], [1], [0, 0, 1, 1], [], []>} : vector<8x128xf32>, vector<128x512xf32>, vector<8x512xf32> -> vector<8x512xf32>
    %13 = arith.addf %11, %12 : vector<8x512xf32>
    %14 = vector.extract_strided_slice %13 {offsets = [0, 0], sizes = [8, 384], strides = [1, 1]} : vector<8x512xf32> to vector<8x384xf32>
    %15 = arith.negf %14 : vector<8x384xf32>
    %16 = math.exp %15 : vector<8x384xf32>
    %cst_11 = arith.constant 1.000000e+00 : f32
    %17 = vector.broadcast %cst_11 : f32 to vector<8x384xf32>
    %18 = arith.addf %17, %16 : vector<8x384xf32>
    %19 = arith.divf %17, %18 : vector<8x384xf32>
    %20 = vector.extract_strided_slice %19 {offsets = [0, 0], sizes = [8, 128], strides = [1, 1]} : vector<8x384xf32> to vector<8x128xf32>
    %21 = vector.extract_strided_slice %19 {offsets = [0, 128], sizes = [8, 128], strides = [1, 1]} : vector<8x384xf32> to vector<8x128xf32>
    %22 = vector.extract_strided_slice %19 {offsets = [0, 256], sizes = [8, 128], strides = [1, 1]} : vector<8x384xf32> to vector<8x128xf32>
    %23 = vector.extract_strided_slice %13 {offsets = [0, 384], sizes = [8, 128], strides = [1, 1]} : vector<8x512xf32> to vector<8x128xf32>
    %24 = math.tanh %23 : vector<8x128xf32>
    %25 = arith.mulf %21, %9 : vector<8x128xf32>
    %26 = arith.mulf %20, %24 : vector<8x128xf32>
    %27 = arith.addf %25, %26 : vector<8x128xf32>
    %28 = math.tanh %27 : vector<8x128xf32>
    %29 = arith.mulf %22, %28 : vector<8x128xf32>
    %30 = vector.extract_strided_slice %7 {offsets = [0, 0, 0], sizes = [1, 8, 1], strides = [1, 1, 1]} : vector<8x8x1xi1> to vector<1x8x1xi1>
    %31 = vector.shape_cast %30 : vector<1x8x1xi1> to vector<8x1xi1>
    %32 = vector.shape_cast %31 : vector<8x1xi1> to vector<8x1xi1>
    %33 = vector.broadcast %32 : vector<8x1xi1> to vector<8x128xi1>
    %34 = arith.select %33, %29, %8 : vector<8x128xi1>, vector<8x128xf32>
    %35 = vector.shape_cast %31 : vector<8x1xi1> to vector<8x1xi1>
    %36 = vector.broadcast %35 : vector<8x1xi1> to vector<8x128xi1>
    %37 = arith.select %36, %27, %9 : vector<8x128xi1>, vector<8x128xf32>
    %c0_12 = arith.constant 0 : index
    %c1 = arith.constant 1 : index
    %c0_13 = arith.constant 0 : index
    %c0_14 = arith.constant 0 : index
    %38 = vector.load %arg2[%c0_12, %c1, %c0_13, %c0_14] : memref<1x8x8x512xf32, #tpu.memory_space<vmem>>, vector<1x1x8x512xf32>
    %39 = vector.shape_cast %38 : vector<1x1x8x512xf32> to vector<8x512xf32>
    %cst_15 = arith.constant dense<0.000000e+00> : vector<8x512xf32>
    %40 = tpu.matmul %34, %1, %cst_15 {dimension_numbers = #tpu.dot_dimension_numbers<[1], [0], [0], [1], [0, 0, 1, 1], [], []>} : vector<8x128xf32>, vector<128x512xf32>, vector<8x512xf32> -> vector<8x512xf32>
    %41 = arith.addf %39, %40 : vector<8x512xf32>
    %42 = vector.extract_strided_slice %41 {offsets = [0, 0], sizes = [8, 384], strides = [1, 1]} : vector<8x512xf32> to vector<8x384xf32>
    %43 = arith.negf %42 : vector<8x384xf32>
    %44 = math.exp %43 : vector<8x384xf32>
    %cst_16 = arith.constant 1.000000e+00 : f32
    %45 = vector.broadcast %cst_16 : f32 to vector<8x384xf32>
    %46 = arith.addf %45, %44 : vector<8x384xf32>
    %47 = arith.divf %45, %46 : vector<8x384xf32>
    %48 = vector.extract_strided_slice %47 {offsets = [0, 0], sizes = [8, 128], strides = [1, 1]} : vector<8x384xf32> to vector<8x128xf32>
    %49 = vector.extract_strided_slice %47 {offsets = [0, 128], sizes = [8, 128], strides = [1, 1]} : vector<8x384xf32> to vector<8x128xf32>
    %50 = vector.extract_strided_slice %47 {offsets = [0, 256], sizes = [8, 128], strides = [1, 1]} : vector<8x384xf32> to vector<8x128xf32>
    %51 = vector.extract_strided_slice %41 {offsets = [0, 384], sizes = [8, 128], strides = [1, 1]} : vector<8x512xf32> to vector<8x128xf32>
    %52 = math.tanh %51 : vector<8x128xf32>
    %53 = arith.mulf %49, %37 : vector<8x128xf32>
    %54 = arith.mulf %48, %52 : vector<8x128xf32>
    %55 = arith.addf %53, %54 : vector<8x128xf32>
    %56 = math.tanh %55 : vector<8x128xf32>
    %57 = arith.mulf %50, %56 : vector<8x128xf32>
    %58 = vector.extract_strided_slice %7 {offsets = [1, 0, 0], sizes = [1, 8, 1], strides = [1, 1, 1]} : vector<8x8x1xi1> to vector<1x8x1xi1>
    %59 = vector.shape_cast %58 : vector<1x8x1xi1> to vector<8x1xi1>
    %60 = vector.shape_cast %59 : vector<8x1xi1> to vector<8x1xi1>
    %61 = vector.broadcast %60 : vector<8x1xi1> to vector<8x128xi1>
    %62 = arith.select %61, %57, %34 : vector<8x128xi1>, vector<8x128xf32>
    %63 = vector.shape_cast %59 : vector<8x1xi1> to vector<8x1xi1>
    %64 = vector.broadcast %63 : vector<8x1xi1> to vector<8x128xi1>
    %65 = arith.select %64, %55, %37 : vector<8x128xi1>, vector<8x128xf32>
    %c0_17 = arith.constant 0 : index
    %c2 = arith.constant 2 : index
    %c0_18 = arith.constant 0 : index
    %c0_19 = arith.constant 0 : index
    %66 = vector.load %arg2[%c0_17, %c2, %c0_18, %c0_19] : memref<1x8x8x512xf32, #tpu.memory_space<vmem>>, vector<1x1x8x512xf32>
    %67 = vector.shape_cast %66 : vector<1x1x8x512xf32> to vector<8x512xf32>
    %cst_20 = arith.constant dense<0.000000e+00> : vector<8x512xf32>
    %68 = tpu.matmul %62, %1, %cst_20 {dimension_numbers = #tpu.dot_dimension_numbers<[1], [0], [0], [1], [0, 0, 1, 1], [], []>} : vector<8x128xf32>, vector<128x512xf32>, vector<8x512xf32> -> vector<8x512xf32>
    %69 = arith.addf %67, %68 : vector<8x512xf32>
    %70 = vector.extract_strided_slice %69 {offsets = [0, 0], sizes = [8, 384], strides = [1, 1]} : vector<8x512xf32> to vector<8x384xf32>
    %71 = arith.negf %70 : vector<8x384xf32>
    %72 = math.exp %71 : vector<8x384xf32>
    %cst_21 = arith.constant 1.000000e+00 : f32
    %73 = vector.broadcast %cst_21 : f32 to vector<8x384xf32>
    %74 = arith.addf %73, %72 : vector<8x384xf32>
    %75 = arith.divf %73, %74 : vector<8x384xf32>
    %76 = vector.extract_strided_slice %75 {offsets = [0, 0], sizes = [8, 128], strides = [1, 1]} : vector<8x384xf32> to vector<8x128xf32>
    %77 = vector.extract_strided_slice %75 {offsets = [0, 128], sizes = [8, 128], strides = [1, 1]} : vector<8x384xf32> to vector<8x128xf32>
    %78 = vector.extract_strided_slice %75 {offsets = [0, 256], sizes = [8, 128], strides = [1, 1]} : vector<8x384xf32> to vector<8x128xf32>
    %79 = vector.extract_strided_slice %69 {offsets = [0, 384], sizes = [8, 128], strides = [1, 1]} : vector<8x512xf32> to vector<8x128xf32>
    %80 = math.tanh %79 : vector<8x128xf32>
    %81 = arith.mulf %77, %65 : vector<8x128xf32>
    %82 = arith.mulf %76, %80 : vector<8x128xf32>
    %83 = arith.addf %81, %82 : vector<8x128xf32>
    %84 = math.tanh %83 : vector<8x128xf32>
    %85 = arith.mulf %78, %84 : vector<8x128xf32>
    %86 = vector.extract_strided_slice %7 {offsets = [2, 0, 0], sizes = [1, 8, 1], strides = [1, 1, 1]} : vector<8x8x1xi1> to vector<1x8x1xi1>
    %87 = vector.shape_cast %86 : vector<1x8x1xi1> to vector<8x1xi1>
    %88 = vector.shape_cast %87 : vector<8x1xi1> to vector<8x1xi1>
    %89 = vector.broadcast %88 : vector<8x1xi1> to vector<8x128xi1>
    %90 = arith.select %89, %85, %62 : vector<8x128xi1>, vector<8x128xf32>
    %91 = vector.shape_cast %87 : vector<8x1xi1> to vector<8x1xi1>
    %92 = vector.broadcast %91 : vector<8x1xi1> to vector<8x128xi1>
    %93 = arith.select %92, %83, %65 : vector<8x128xi1>, vector<8x128xf32>
    %c0_22 = arith.constant 0 : index
    %c3 = arith.constant 3 : index
    %c0_23 = arith.constant 0 : index
    %c0_24 = arith.constant 0 : index
    %94 = vector.load %arg2[%c0_22, %c3, %c0_23, %c0_24] : memref<1x8x8x512xf32, #tpu.memory_space<vmem>>, vector<1x1x8x512xf32>
    %95 = vector.shape_cast %94 : vector<1x1x8x512xf32> to vector<8x512xf32>
    %cst_25 = arith.constant dense<0.000000e+00> : vector<8x512xf32>
    %96 = tpu.matmul %90, %1, %cst_25 {dimension_numbers = #tpu.dot_dimension_numbers<[1], [0], [0], [1], [0, 0, 1, 1], [], []>} : vector<8x128xf32>, vector<128x512xf32>, vector<8x512xf32> -> vector<8x512xf32>
    %97 = arith.addf %95, %96 : vector<8x512xf32>
    %98 = vector.extract_strided_slice %97 {offsets = [0, 0], sizes = [8, 384], strides = [1, 1]} : vector<8x512xf32> to vector<8x384xf32>
    %99 = arith.negf %98 : vector<8x384xf32>
    %100 = math.exp %99 : vector<8x384xf32>
    %cst_26 = arith.constant 1.000000e+00 : f32
    %101 = vector.broadcast %cst_26 : f32 to vector<8x384xf32>
    %102 = arith.addf %101, %100 : vector<8x384xf32>
    %103 = arith.divf %101, %102 : vector<8x384xf32>
    %104 = vector.extract_strided_slice %103 {offsets = [0, 0], sizes = [8, 128], strides = [1, 1]} : vector<8x384xf32> to vector<8x128xf32>
    %105 = vector.extract_strided_slice %103 {offsets = [0, 128], sizes = [8, 128], strides = [1, 1]} : vector<8x384xf32> to vector<8x128xf32>
    %106 = vector.extract_strided_slice %103 {offsets = [0, 256], sizes = [8, 128], strides = [1, 1]} : vector<8x384xf32> to vector<8x128xf32>
    %107 = vector.extract_strided_slice %97 {offsets = [0, 384], sizes = [8, 128], strides = [1, 1]} : vector<8x512xf32> to vector<8x128xf32>
    %108 = math.tanh %107 : vector<8x128xf32>
    %109 = arith.mulf %105, %93 : vector<8x128xf32>
    %110 = arith.mulf %104, %108 : vector<8x128xf32>
    %111 = arith.addf %109, %110 : vector<8x128xf32>
    %112 = math.tanh %111 : vector<8x128xf32>
    %113 = arith.mulf %106, %112 : vector<8x128xf32>
    %114 = vector.extract_strided_slice %7 {offsets = [3, 0, 0], sizes = [1, 8, 1], strides = [1, 1, 1]} : vector<8x8x1xi1> to vector<1x8x1xi1>
    %115 = vector.shape_cast %114 : vector<1x8x1xi1> to vector<8x1xi1>
    %116 = vector.shape_cast %115 : vector<8x1xi1> to vector<8x1xi1>
    %117 = vector.broadcast %116 : vector<8x1xi1> to vector<8x128xi1>
    %118 = arith.select %117, %113, %90 : vector<8x128xi1>, vector<8x128xf32>
    %119 = vector.shape_cast %115 : vector<8x1xi1> to vector<8x1xi1>
    %120 = vector.broadcast %119 : vector<8x1xi1> to vector<8x128xi1>
    %121 = arith.select %120, %111, %93 : vector<8x128xi1>, vector<8x128xf32>
    %c0_27 = arith.constant 0 : index
    %c4 = arith.constant 4 : index
    %c0_28 = arith.constant 0 : index
    %c0_29 = arith.constant 0 : index
    %122 = vector.load %arg2[%c0_27, %c4, %c0_28, %c0_29] : memref<1x8x8x512xf32, #tpu.memory_space<vmem>>, vector<1x1x8x512xf32>
    %123 = vector.shape_cast %122 : vector<1x1x8x512xf32> to vector<8x512xf32>
    %cst_30 = arith.constant dense<0.000000e+00> : vector<8x512xf32>
    %124 = tpu.matmul %118, %1, %cst_30 {dimension_numbers = #tpu.dot_dimension_numbers<[1], [0], [0], [1], [0, 0, 1, 1], [], []>} : vector<8x128xf32>, vector<128x512xf32>, vector<8x512xf32> -> vector<8x512xf32>
    %125 = arith.addf %123, %124 : vector<8x512xf32>
    %126 = vector.extract_strided_slice %125 {offsets = [0, 0], sizes = [8, 384], strides = [1, 1]} : vector<8x512xf32> to vector<8x384xf32>
    %127 = arith.negf %126 : vector<8x384xf32>
    %128 = math.exp %127 : vector<8x384xf32>
    %cst_31 = arith.constant 1.000000e+00 : f32
    %129 = vector.broadcast %cst_31 : f32 to vector<8x384xf32>
    %130 = arith.addf %129, %128 : vector<8x384xf32>
    %131 = arith.divf %129, %130 : vector<8x384xf32>
    %132 = vector.extract_strided_slice %131 {offsets = [0, 0], sizes = [8, 128], strides = [1, 1]} : vector<8x384xf32> to vector<8x128xf32>
    %133 = vector.extract_strided_slice %131 {offsets = [0, 128], sizes = [8, 128], strides = [1, 1]} : vector<8x384xf32> to vector<8x128xf32>
    %134 = vector.extract_strided_slice %131 {offsets = [0, 256], sizes = [8, 128], strides = [1, 1]} : vector<8x384xf32> to vector<8x128xf32>
    %135 = vector.extract_strided_slice %125 {offsets = [0, 384], sizes = [8, 128], strides = [1, 1]} : vector<8x512xf32> to vector<8x128xf32>
    %136 = math.tanh %135 : vector<8x128xf32>
    %137 = arith.mulf %133, %121 : vector<8x128xf32>
    %138 = arith.mulf %132, %136 : vector<8x128xf32>
    %139 = arith.addf %137, %138 : vector<8x128xf32>
    %140 = math.tanh %139 : vector<8x128xf32>
    %141 = arith.mulf %134, %140 : vector<8x128xf32>
    %142 = vector.extract_strided_slice %7 {offsets = [4, 0, 0], sizes = [1, 8, 1], strides = [1, 1, 1]} : vector<8x8x1xi1> to vector<1x8x1xi1>
    %143 = vector.shape_cast %142 : vector<1x8x1xi1> to vector<8x1xi1>
    %144 = vector.shape_cast %143 : vector<8x1xi1> to vector<8x1xi1>
    %145 = vector.broadcast %144 : vector<8x1xi1> to vector<8x128xi1>
    %146 = arith.select %145, %141, %118 : vector<8x128xi1>, vector<8x128xf32>
    %147 = vector.shape_cast %143 : vector<8x1xi1> to vector<8x1xi1>
    %148 = vector.broadcast %147 : vector<8x1xi1> to vector<8x128xi1>
    %149 = arith.select %148, %139, %121 : vector<8x128xi1>, vector<8x128xf32>
    %c0_32 = arith.constant 0 : index
    %c5 = arith.constant 5 : index
    %c0_33 = arith.constant 0 : index
    %c0_34 = arith.constant 0 : index
    %150 = vector.load %arg2[%c0_32, %c5, %c0_33, %c0_34] : memref<1x8x8x512xf32, #tpu.memory_space<vmem>>, vector<1x1x8x512xf32>
    %151 = vector.shape_cast %150 : vector<1x1x8x512xf32> to vector<8x512xf32>
    %cst_35 = arith.constant dense<0.000000e+00> : vector<8x512xf32>
    %152 = tpu.matmul %146, %1, %cst_35 {dimension_numbers = #tpu.dot_dimension_numbers<[1], [0], [0], [1], [0, 0, 1, 1], [], []>} : vector<8x128xf32>, vector<128x512xf32>, vector<8x512xf32> -> vector<8x512xf32>
    %153 = arith.addf %151, %152 : vector<8x512xf32>
    %154 = vector.extract_strided_slice %153 {offsets = [0, 0], sizes = [8, 384], strides = [1, 1]} : vector<8x512xf32> to vector<8x384xf32>
    %155 = arith.negf %154 : vector<8x384xf32>
    %156 = math.exp %155 : vector<8x384xf32>
    %cst_36 = arith.constant 1.000000e+00 : f32
    %157 = vector.broadcast %cst_36 : f32 to vector<8x384xf32>
    %158 = arith.addf %157, %156 : vector<8x384xf32>
    %159 = arith.divf %157, %158 : vector<8x384xf32>
    %160 = vector.extract_strided_slice %159 {offsets = [0, 0], sizes = [8, 128], strides = [1, 1]} : vector<8x384xf32> to vector<8x128xf32>
    %161 = vector.extract_strided_slice %159 {offsets = [0, 128], sizes = [8, 128], strides = [1, 1]} : vector<8x384xf32> to vector<8x128xf32>
    %162 = vector.extract_strided_slice %159 {offsets = [0, 256], sizes = [8, 128], strides = [1, 1]} : vector<8x384xf32> to vector<8x128xf32>
    %163 = vector.extract_strided_slice %153 {offsets = [0, 384], sizes = [8, 128], strides = [1, 1]} : vector<8x512xf32> to vector<8x128xf32>
    %164 = math.tanh %163 : vector<8x128xf32>
    %165 = arith.mulf %161, %149 : vector<8x128xf32>
    %166 = arith.mulf %160, %164 : vector<8x128xf32>
    %167 = arith.addf %165, %166 : vector<8x128xf32>
    %168 = math.tanh %167 : vector<8x128xf32>
    %169 = arith.mulf %162, %168 : vector<8x128xf32>
    %170 = vector.extract_strided_slice %7 {offsets = [5, 0, 0], sizes = [1, 8, 1], strides = [1, 1, 1]} : vector<8x8x1xi1> to vector<1x8x1xi1>
    %171 = vector.shape_cast %170 : vector<1x8x1xi1> to vector<8x1xi1>
    %172 = vector.shape_cast %171 : vector<8x1xi1> to vector<8x1xi1>
    %173 = vector.broadcast %172 : vector<8x1xi1> to vector<8x128xi1>
    %174 = arith.select %173, %169, %146 : vector<8x128xi1>, vector<8x128xf32>
    %175 = vector.shape_cast %171 : vector<8x1xi1> to vector<8x1xi1>
    %176 = vector.broadcast %175 : vector<8x1xi1> to vector<8x128xi1>
    %177 = arith.select %176, %167, %149 : vector<8x128xi1>, vector<8x128xf32>
    %c0_37 = arith.constant 0 : index
    %c6 = arith.constant 6 : index
    %c0_38 = arith.constant 0 : index
    %c0_39 = arith.constant 0 : index
    %178 = vector.load %arg2[%c0_37, %c6, %c0_38, %c0_39] : memref<1x8x8x512xf32, #tpu.memory_space<vmem>>, vector<1x1x8x512xf32>
    %179 = vector.shape_cast %178 : vector<1x1x8x512xf32> to vector<8x512xf32>
    %cst_40 = arith.constant dense<0.000000e+00> : vector<8x512xf32>
    %180 = tpu.matmul %174, %1, %cst_40 {dimension_numbers = #tpu.dot_dimension_numbers<[1], [0], [0], [1], [0, 0, 1, 1], [], []>} : vector<8x128xf32>, vector<128x512xf32>, vector<8x512xf32> -> vector<8x512xf32>
    %181 = arith.addf %179, %180 : vector<8x512xf32>
    %182 = vector.extract_strided_slice %181 {offsets = [0, 0], sizes = [8, 384], strides = [1, 1]} : vector<8x512xf32> to vector<8x384xf32>
    %183 = arith.negf %182 : vector<8x384xf32>
    %184 = math.exp %183 : vector<8x384xf32>
    %cst_41 = arith.constant 1.000000e+00 : f32
    %185 = vector.broadcast %cst_41 : f32 to vector<8x384xf32>
    %186 = arith.addf %185, %184 : vector<8x384xf32>
    %187 = arith.divf %185, %186 : vector<8x384xf32>
    %188 = vector.extract_strided_slice %187 {offsets = [0, 0], sizes = [8, 128], strides = [1, 1]} : vector<8x384xf32> to vector<8x128xf32>
    %189 = vector.extract_strided_slice %187 {offsets = [0, 128], sizes = [8, 128], strides = [1, 1]} : vector<8x384xf32> to vector<8x128xf32>
    %190 = vector.extract_strided_slice %187 {offsets = [0, 256], sizes = [8, 128], strides = [1, 1]} : vector<8x384xf32> to vector<8x128xf32>
    %191 = vector.extract_strided_slice %181 {offsets = [0, 384], sizes = [8, 128], strides = [1, 1]} : vector<8x512xf32> to vector<8x128xf32>
    %192 = math.tanh %191 : vector<8x128xf32>
    %193 = arith.mulf %189, %177 : vector<8x128xf32>
    %194 = arith.mulf %188, %192 : vector<8x128xf32>
    %195 = arith.addf %193, %194 : vector<8x128xf32>
    %196 = math.tanh %195 : vector<8x128xf32>
    %197 = arith.mulf %190, %196 : vector<8x128xf32>
    %198 = vector.extract_strided_slice %7 {offsets = [6, 0, 0], sizes = [1, 8, 1], strides = [1, 1, 1]} : vector<8x8x1xi1> to vector<1x8x1xi1>
    %199 = vector.shape_cast %198 : vector<1x8x1xi1> to vector<8x1xi1>
    %200 = vector.shape_cast %199 : vector<8x1xi1> to vector<8x1xi1>
    %201 = vector.broadcast %200 : vector<8x1xi1> to vector<8x128xi1>
    %202 = arith.select %201, %197, %174 : vector<8x128xi1>, vector<8x128xf32>
    %203 = vector.shape_cast %199 : vector<8x1xi1> to vector<8x1xi1>
    %204 = vector.broadcast %203 : vector<8x1xi1> to vector<8x128xi1>
    %205 = arith.select %204, %195, %177 : vector<8x128xi1>, vector<8x128xf32>
    %c0_42 = arith.constant 0 : index
    %c7 = arith.constant 7 : index
    %c0_43 = arith.constant 0 : index
    %c0_44 = arith.constant 0 : index
    %206 = vector.load %arg2[%c0_42, %c7, %c0_43, %c0_44] : memref<1x8x8x512xf32, #tpu.memory_space<vmem>>, vector<1x1x8x512xf32>
    %207 = vector.shape_cast %206 : vector<1x1x8x512xf32> to vector<8x512xf32>
    %cst_45 = arith.constant dense<0.000000e+00> : vector<8x512xf32>
    %208 = tpu.matmul %202, %1, %cst_45 {dimension_numbers = #tpu.dot_dimension_numbers<[1], [0], [0], [1], [0, 0, 1, 1], [], []>} : vector<8x128xf32>, vector<128x512xf32>, vector<8x512xf32> -> vector<8x512xf32>
    %209 = arith.addf %207, %208 : vector<8x512xf32>
    %210 = vector.extract_strided_slice %209 {offsets = [0, 0], sizes = [8, 384], strides = [1, 1]} : vector<8x512xf32> to vector<8x384xf32>
    %211 = arith.negf %210 : vector<8x384xf32>
    %212 = math.exp %211 : vector<8x384xf32>
    %cst_46 = arith.constant 1.000000e+00 : f32
    %213 = vector.broadcast %cst_46 : f32 to vector<8x384xf32>
    %214 = arith.addf %213, %212 : vector<8x384xf32>
    %215 = arith.divf %213, %214 : vector<8x384xf32>
    %216 = vector.extract_strided_slice %215 {offsets = [0, 0], sizes = [8, 128], strides = [1, 1]} : vector<8x384xf32> to vector<8x128xf32>
    %217 = vector.extract_strided_slice %215 {offsets = [0, 128], sizes = [8, 128], strides = [1, 1]} : vector<8x384xf32> to vector<8x128xf32>
    %218 = vector.extract_strided_slice %215 {offsets = [0, 256], sizes = [8, 128], strides = [1, 1]} : vector<8x384xf32> to vector<8x128xf32>
    %219 = vector.extract_strided_slice %209 {offsets = [0, 384], sizes = [8, 128], strides = [1, 1]} : vector<8x512xf32> to vector<8x128xf32>
    %220 = math.tanh %219 : vector<8x128xf32>
    %221 = arith.mulf %217, %205 : vector<8x128xf32>
    %222 = arith.mulf %216, %220 : vector<8x128xf32>
    %223 = arith.addf %221, %222 : vector<8x128xf32>
    %224 = math.tanh %223 : vector<8x128xf32>
    %225 = arith.mulf %218, %224 : vector<8x128xf32>
    %226 = vector.extract_strided_slice %7 {offsets = [7, 0, 0], sizes = [1, 8, 1], strides = [1, 1, 1]} : vector<8x8x1xi1> to vector<1x8x1xi1>
    %227 = vector.shape_cast %226 : vector<1x8x1xi1> to vector<8x1xi1>
    %228 = vector.shape_cast %227 : vector<8x1xi1> to vector<8x1xi1>
    %229 = vector.broadcast %228 : vector<8x1xi1> to vector<8x128xi1>
    %230 = arith.select %229, %225, %202 : vector<8x128xi1>, vector<8x128xf32>
    %c0_47 = arith.constant 0 : index
    %c0_48 = arith.constant 0 : index
    %c0_49 = arith.constant 0 : index
    %231 = vector.load %arg4[%c0_47, %c0_48, %c0_49] : memref<1x128x16xf32, #tpu.memory_space<vmem>>, vector<1x128x16xf32>
    %232 = vector.shape_cast %231 : vector<1x128x16xf32> to vector<128x16xf32>
    %cst_50 = arith.constant dense<0.000000e+00> : vector<8x16xf32>
    %233 = tpu.matmul %230, %232, %cst_50 {dimension_numbers = #tpu.dot_dimension_numbers<[1], [0], [0], [1], [0, 0, 1, 1], [], []>} : vector<8x128xf32>, vector<128x16xf32>, vector<8x16xf32> -> vector<8x16xf32>
    %c0_51 = arith.constant 0 : index
    %c0_52 = arith.constant 0 : index
    %c0_53 = arith.constant 0 : index
    %234 = vector.load %arg5[%c0_51, %c0_52, %c0_53] : memref<1x1x16xf32, #tpu.memory_space<vmem>>, vector<1x1x16xf32>
    %235 = vector.shape_cast %234 : vector<1x1x16xf32> to vector<1x16xf32>
    %236 = vector.broadcast %235 : vector<1x16xf32> to vector<8x16xf32>
    %237 = arith.addf %233, %236 : vector<8x16xf32>
    %c0_54 = arith.constant 0 : index
    %c0_55 = arith.constant 0 : index
    %c0_56 = arith.constant 0 : index
    %238 = vector.load %arg6[%c0_54, %c0_55, %c0_56] : memref<1x8x16xf32, #tpu.memory_space<vmem>>, vector<1x8x16xf32>
    %239 = vector.shape_cast %238 : vector<1x8x16xf32> to vector<8x16xf32>
    %240 = vector.shape_cast %237 : vector<8x16xf32> to vector<1x8x16xf32>
    tpu.vector_store %arg6[%c0_54, %c0_55, %c0_56], %240 {strides = array<i32>} : memref<1x8x16xf32, #tpu.memory_space<vmem>>, vector<1x8x16xf32>,
    return
  }
  func.func @transform_0(%arg0: i32) -> (i32, i32, i32) {
    %c0_i32 = arith.constant 0 : i32
    %c0_i32_0 = arith.constant 0 : i32
    %c0_i32_1 = arith.constant 0 : i32
    return %arg0, %c0_i32, %c0_i32_0 : i32, i32, i32
  }
  func.func @transform_1(%arg0: i32) -> (i32, i32, i32, i32) {
    %c0_i32 = arith.constant 0 : i32
    %c0_i32_0 = arith.constant 0 : i32
    %c0_i32_1 = arith.constant 0 : i32
    %c0_i32_2 = arith.constant 0 : i32
    return %arg0, %c0_i32, %c0_i32_0, %c0_i32_1 : i32, i32, i32, i32
  }
  func.func @transform_2(%arg0: i32) -> (i32, i32, i32) {
    %c0_i32 = arith.constant 0 : i32
    %c0_i32_0 = arith.constant 0 : i32
    %c0_i32_1 = arith.constant 0 : i32
    return %arg0, %c0_i32, %c0_i32_0 : i32, i32, i32
  }
  func.func @transform_3(%arg0: i32) -> (i32, i32, i32) {
    %c0_i32 = arith.constant 0 : i32
    %c0_i32_0 = arith.constant 0 : i32
    %c0_i32_1 = arith.constant 0 : i32
    return %arg0, %c0_i32, %c0_i32_0 : i32, i32, i32
  }
  func.func @transform_4(%arg0: i32) -> (i32, i32, i32) {
    %c0_i32 = arith.constant 0 : i32
    %c0_i32_0 = arith.constant 0 : i32
    %c0_i32_1 = arith.constant 0 : i32
    return %arg0, %c0_i32, %c0_i32_0 : i32, i32, i32
  }
  func.func @transform_5(%arg0: i32) -> (i32, i32, i32) {
    %c0_i32 = arith.constant 0 : i32
    %c0_i32_0 = arith.constant 0 : i32
    %c0_i32_1 = arith.constant 0 : i32
    return %arg0, %c0_i32, %c0_i32_0 : i32, i32, i32
  }
}

module attributes {stable_mosaic.version = 11 : i64} {
  func.func @two_tower_kernel(%arg0: i32, %arg1: memref<1x8x1xi32, #tpu.memory_space<vmem>>, %arg2: memref<1x8x8x512xf32, #tpu.memory_space<vmem>>, %arg3: memref<1x128x512xf32, #tpu.memory_space<vmem>>, %arg4: memref<1x128x16xf32, #tpu.memory_space<vmem>>, %arg5: memref<1x1x16xf32, #tpu.memory_space<vmem>>, %arg6: memref<1x8x16xf32, #tpu.memory_space<vmem>>) attributes {dimension_semantics = [#tpu.dimension_semantics<parallel>], iteration_bounds = array<i64: 2>, scalar_prefetch = 0 : i64, scratch_operands = 0 : i64, tpu.core_type = #tpu.core_type<tc>, window_params = [{transform_indices = @transform_0, window_bounds = array<i64: 1, 8, 1>}, {transform_indices = @transform_1, window_bounds = array<i64: 1, 8, 8, 512>}, {transform_indices = @transform_2, window_bounds = array<i64: 1, 128, 512>}, {transform_indices = @transform_3, window_bounds = array<i64: 1, 128, 16>}, {transform_indices = @transform_4, window_bounds = array<i64: 1, 1, 16>}, {transform_indices = @transform_5, window_bounds = array<i64: 1, 8, 16>}]} {
    %c0 = arith.constant 0 : index
    %c0_0 = arith.constant 0 : index
    %c0_1 = arith.constant 0 : index
    %0 = vector.load %arg3[%c0, %c0_0, %c0_1] : memref<1x128x512xf32, #tpu.memory_space<vmem>>, vector<1x128x512xf32>
    %1 = vector.shape_cast %0 : vector<1x128x512xf32> to vector<128x512xf32>
    %c0_2 = arith.constant 0 : index
    %c0_3 = arith.constant 0 : index
    %c0_4 = arith.constant 0 : index
    %2 = vector.load %arg1[%c0_2, %c0_3, %c0_4] : memref<1x8x1xi32, #tpu.memory_space<vmem>>, vector<1x8x1xi32>
    %3 = vector.shape_cast %2 : vector<1x8x1xi32> to vector<8x1xi32>
    %4 = tpu.iota {dimensions = array<i32: 0>} : vector<8x8x1xi32>
    %5 = vector.shape_cast %3 : vector<8x1xi32> to vector<1x8x1xi32>
    %6 = vector.broadcast %5 : vector<1x8x1xi32> to vector<8x8x1xi32>
    %7 = arith.cmpi slt, %4, %6 : vector<8x8x1xi32>
    %cst = arith.constant 0.000000e+00 : f32
    %8 = vector.broadcast %cst : f32 to vector<8x128xf32>
    %cst_5 = arith.constant 0.000000e+00 : f32
    %9 = vector.broadcast %cst_5 : f32 to vector<8x128xf32>
    %c0_6 = arith.constant 0 : index
    %c0_7 = arith.constant 0 : index
    %c0_8 = arith.constant 0 : index
    %c0_9 = arith.constant 0 : index
    %10 = vector.load %arg2[%c0_6, %c0_7, %c0_8, %c0_9] : memref<1x8x8x512xf32, #tpu.memory_space<vmem>>, vector<1x1x8x512xf32>
    %11 = vector.shape_cast %10 : vector<1x1x8x512xf32> to vector<8x512xf32>
    %cst_10 = arith.constant dense<0.000000e+00> : vector<8x512xf32>
    %12 = tpu.matmul %8, %1, %cst_10 {dimension_numbers = #tpu.dot_dimension_numbers<[1], [0], [0], [1], [0, 0, 1, 1], [], []>} : vector<8x128xf32>, vector<128x512xf32>, vector<8x512xf32> -> vector<8x512xf32>
    %13 = arith.addf %11, %12 : vector<8x512xf32>
    %14 = vector.extract_strided_slice %13 {offsets = [0, 0], sizes = [8, 384], strides = [1, 1]} : vector<8x512xf32> to vector<8x384xf32>
    %15 = arith.negf %14 : vector<8x384xf32>
    %16 = math.exp %15 : vector<8x384xf32>
    %cst_11 = arith.constant 1.000000e+00 : f32
    %17 = vector.broadcast %cst_11 : f32 to vector<8x384xf32>
    %18 = arith.addf %17, %16 : vector<8x384xf32>
    %19 = arith.divf %17, %18 : vector<8x384xf32>
    %20 = vector.extract_strided_slice %19 {offsets = [0, 0], sizes = [8, 128], strides = [1, 1]} : vector<8x384xf32> to vector<8x128xf32>
    %21 = vector.extract_strided_slice %19 {offsets = [0, 128], sizes = [8, 128], strides = [1, 1]} : vector<8x384xf32> to vector<8x128xf32>
    %22 = vector.extract_strided_slice %19 {offsets = [0, 256], sizes = [8, 128], strides = [1, 1]} : vector<8x384xf32> to vector<8x128xf32>
    %23 = vector.extract_strided_slice %13 {offsets = [0, 384], sizes = [8, 128], strides = [1, 1]} : vector<8x512xf32> to vector<8x128xf32>
    %24 = math.tanh %23 : vector<8x128xf32>
    %25 = arith.mulf %21, %9 : vector<8x128xf32>
    %26 = arith.mulf %20, %24 : vector<8x128xf32>
    %27 = arith.addf %25, %26 : vector<8x128xf32>
    %28 = math.tanh %27 : vector<8x128xf32>
    %29 = arith.mulf %22, %28 : vector<8x128xf32>
    %30 = vector.extract_strided_slice %7 {offsets = [0, 0, 0], sizes = [1, 8, 1], strides = [1, 1, 1]} : vector<8x8x1xi1> to vector<1x8x1xi1>
    %31 = vector.shape_cast %30 : vector<1x8x1xi1> to vector<8x1xi1>
    %32 = vector.shape_cast %31 : vector<8x1xi1> to vector<8x1xi1>
    %33 = vector.broadcast %32 : vector<8x1xi1> to vector<8x128xi1>
    %34 = arith.select %33, %29, %8 : vector<8x128xi1>, vector<8x128xf32>
    %35 = vector.shape_cast %31 : vector<8x1xi1> to vector<8x1xi1>
    %36 = vector.broadcast %35 : vector<8x1xi1> to vector<8x128xi1>
    %37 = arith.select %36, %27, %9 : vector<8x128xi1>, vector<8x128xf32>
    %c0_12 = arith.constant 0 : index
    %c1 = arith.constant 1 : index
    %c0_13 = arith.constant 0 : index
    %c0_14 = arith.constant 0 : index
    %38 = vector.load %arg2[%c0_12, %c1, %c0_13, %c0_14] : memref<1x8x8x512xf32, #tpu.memory_space<vmem>>, vector<1x1x8x512xf32>
    %39 = vector.shape_cast %38 : vector<1x1x8x512xf32> to vector<8x512xf32>
    %cst_15 = arith.constant dense<0.000000e+00> : vector<8x512xf32>
    %40 = tpu.matmul %34, %1, %cst_15 {dimension_numbers = #tpu.dot_dimension_numbers<[1], [0], [0], [1], [0, 0, 1, 1], [], []>} : vector<8x128xf32>, vector<128x512xf32>, vector<8x512xf32> -> vector<8x512xf32>
    %41 = arith.addf %39, %40 : vector<8x512xf32>
    %42 = vector.extract_strided_slice %41 {offsets = [0, 0], sizes = [8, 384], strides = [1, 1]} : vector<8x512xf32> to vector<8x384xf32>
    %43 = arith.negf %42 : vector<8x384xf32>
    %44 = math.exp %43 : vector<8x384xf32>
    %cst_16 = arith.constant 1.000000e+00 : f32
    %45 = vector.broadcast %cst_16 : f32 to vector<8x384xf32>
    %46 = arith.addf %45, %44 : vector<8x384xf32>
    %47 = arith.divf %45, %46 : vector<8x384xf32>
    %48 = vector.extract_strided_slice %47 {offsets = [0, 0], sizes = [8, 128], strides = [1, 1]} : vector<8x384xf32> to vector<8x128xf32>
    %49 = vector.extract_strided_slice %47 {offsets = [0, 128], sizes = [8, 128], strides = [1, 1]} : vector<8x384xf32> to vector<8x128xf32>
    %50 = vector.extract_strided_slice %47 {offsets = [0, 256], sizes = [8, 128], strides = [1, 1]} : vector<8x384xf32> to vector<8x128xf32>
    %51 = vector.extract_strided_slice %41 {offsets = [0, 384], sizes = [8, 128], strides = [1, 1]} : vector<8x512xf32> to vector<8x128xf32>
    %52 = math.tanh %51 : vector<8x128xf32>
    %53 = arith.mulf %49, %37 : vector<8x128xf32>
    %54 = arith.mulf %48, %52 : vector<8x128xf32>
    %55 = arith.addf %53, %54 : vector<8x128xf32>
    %56 = math.tanh %55 : vector<8x128xf32>
    %57 = arith.mulf %50, %56 : vector<8x128xf32>
    %58 = vector.extract_strided_slice %7 {offsets = [1, 0, 0], sizes = [1, 8, 1], strides = [1, 1, 1]} : vector<8x8x1xi1> to vector<1x8x1xi1>
    %59 = vector.shape_cast %58 : vector<1x8x1xi1> to vector<8x1xi1>
    %60 = vector.shape_cast %59 : vector<8x1xi1> to vector<8x1xi1>
    %61 = vector.broadcast %60 : vector<8x1xi1> to vector<8x128xi1>
    %62 = arith.select %61, %57, %34 : vector<8x128xi1>, vector<8x128xf32>
    %63 = vector.shape_cast %59 : vector<8x1xi1> to vector<8x1xi1>
    %64 = vector.broadcast %63 : vector<8x1xi1> to vector<8x128xi1>
    %65 = arith.select %64, %55, %37 : vector<8x128xi1>, vector<8x128xf32>
    %c0_17 = arith.constant 0 : index
    %c2 = arith.constant 2 : index
    %c0_18 = arith.constant 0 : index
    %c0_19 = arith.constant 0 : index
    %66 = vector.load %arg2[%c0_17, %c2, %c0_18, %c0_19] : memref<1x8x8x512xf32, #tpu.memory_space<vmem>>, vector<1x1x8x512xf32>
    %67 = vector.shape_cast %66 : vector<1x1x8x512xf32> to vector<8x512xf32>
    %cst_20 = arith.constant dense<0.000000e+00> : vector<8x512xf32>
    %68 = tpu.matmul %62, %1, %cst_20 {dimension_numbers = #tpu.dot_dimension_numbers<[1], [0], [0], [1], [0, 0, 1, 1], [], []>} : vector<8x128xf32>, vector<128x512xf32>, vector<8x512xf32> -> vector<8x512xf32>
    %69 = arith.addf %67, %68 : vector<8x512xf32>
    %70 = vector.extract_strided_slice %69 {offsets = [0, 0], sizes = [8, 384], strides = [1, 1]} : vector<8x512xf32> to vector<8x384xf32>
    %71 = arith.negf %70 : vector<8x384xf32>
    %72 = math.exp %71 : vector<8x384xf32>
    %cst_21 = arith.constant 1.000000e+00 : f32
    %73 = vector.broadcast %cst_21 : f32 to vector<8x384xf32>
    %74 = arith.addf %73, %72 : vector<8x384xf32>
    %75 = arith.divf %73, %74 : vector<8x384xf32>
    %76 = vector.extract_strided_slice %75 {offsets = [0, 0], sizes = [8, 128], strides = [1, 1]} : vector<8x384xf32> to vector<8x128xf32>
    %77 = vector.extract_strided_slice %75 {offsets = [0, 128], sizes = [8, 128], strides = [1, 1]} : vector<8x384xf32> to vector<8x128xf32>
    %78 = vector.extract_strided_slice %75 {offsets = [0, 256], sizes = [8, 128], strides = [1, 1]} : vector<8x384xf32> to vector<8x128xf32>
    %79 = vector.extract_strided_slice %69 {offsets = [0, 384], sizes = [8, 128], strides = [1, 1]} : vector<8x512xf32> to vector<8x128xf32>
    %80 = math.tanh %79 : vector<8x128xf32>
    %81 = arith.mulf %77, %65 : vector<8x128xf32>
    %82 = arith.mulf %76, %80 : vector<8x128xf32>
    %83 = arith.addf %81, %82 : vector<8x128xf32>
    %84 = math.tanh %83 : vector<8x128xf32>
    %85 = arith.mulf %78, %84 : vector<8x128xf32>
    %86 = vector.extract_strided_slice %7 {offsets = [2, 0, 0], sizes = [1, 8, 1], strides = [1, 1, 1]} : vector<8x8x1xi1> to vector<1x8x1xi1>
    %87 = vector.shape_cast %86 : vector<1x8x1xi1> to vector<8x1xi1>
    %88 = vector.shape_cast %87 : vector<8x1xi1> to vector<8x1xi1>
    %89 = vector.broadcast %88 : vector<8x1xi1> to vector<8x128xi1>
    %90 = arith.select %89, %85, %62 : vector<8x128xi1>, vector<8x128xf32>
    %91 = vector.shape_cast %87 : vector<8x1xi1> to vector<8x1xi1>
    %92 = vector.broadcast %91 : vector<8x1xi1> to vector<8x128xi1>
    %93 = arith.select %92, %83, %65 : vector<8x128xi1>, vector<8x128xf32>
    %c0_22 = arith.constant 0 : index
    %c3 = arith.constant 3 : index
    %c0_23 = arith.constant 0 : index
    %c0_24 = arith.constant 0 : index
    %94 = vector.load %arg2[%c0_22, %c3, %c0_23, %c0_24] : memref<1x8x8x512xf32, #tpu.memory_space<vmem>>, vector<1x1x8x512xf32>
    %95 = vector.shape_cast %94 : vector<1x1x8x512xf32> to vector<8x512xf32>
    %cst_25 = arith.constant dense<0.000000e+00> : vector<8x512xf32>
    %96 = tpu.matmul %90, %1, %cst_25 {dimension_numbers = #tpu.dot_dimension_numbers<[1], [0], [0], [1], [0, 0, 1, 1], [], []>} : vector<8x128xf32>, vector<128x512xf32>, vector<8x512xf32> -> vector<8x512xf32>
    %97 = arith.addf %95, %96 : vector<8x512xf32>
    %98 = vector.extract_strided_slice %97 {offsets = [0, 0], sizes = [8, 384], strides = [1, 1]} : vector<8x512xf32> to vector<8x384xf32>
    %99 = arith.negf %98 : vector<8x384xf32>
    %100 = math.exp %99 : vector<8x384xf32>
    %cst_26 = arith.constant 1.000000e+00 : f32
    %101 = vector.broadcast %cst_26 : f32 to vector<8x384xf32>
    %102 = arith.addf %101, %100 : vector<8x384xf32>
    %103 = arith.divf %101, %102 : vector<8x384xf32>
    %104 = vector.extract_strided_slice %103 {offsets = [0, 0], sizes = [8, 128], strides = [1, 1]} : vector<8x384xf32> to vector<8x128xf32>
    %105 = vector.extract_strided_slice %103 {offsets = [0, 128], sizes = [8, 128], strides = [1, 1]} : vector<8x384xf32> to vector<8x128xf32>
    %106 = vector.extract_strided_slice %103 {offsets = [0, 256], sizes = [8, 128], strides = [1, 1]} : vector<8x384xf32> to vector<8x128xf32>
    %107 = vector.extract_strided_slice %97 {offsets = [0, 384], sizes = [8, 128], strides = [1, 1]} : vector<8x512xf32> to vector<8x128xf32>
    %108 = math.tanh %107 : vector<8x128xf32>
    %109 = arith.mulf %105, %93 : vector<8x128xf32>
    %110 = arith.mulf %104, %108 : vector<8x128xf32>
    %111 = arith.addf %109, %110 : vector<8x128xf32>
    %112 = math.tanh %111 : vector<8x128xf32>
    %113 = arith.mulf %106, %112 : vector<8x128xf32>
    %114 = vector.extract_strided_slice %7 {offsets = [3, 0, 0], sizes = [1, 8, 1], strides = [1, 1, 1]} : vector<8x8x1xi1> to vector<1x8x1xi1>
    %115 = vector.shape_cast %114 : vector<1x8x1xi1> to vector<8x1xi1>
    %116 = vector.shape_cast %115 : vector<8x1xi1> to vector<8x1xi1>
    %117 = vector.broadcast %116 : vector<8x1xi1> to vector<8x128xi1>
    %118 = arith.select %117, %113, %90 : vector<8x128xi1>, vector<8x128xf32>
    %119 = vector.shape_cast %115 : vector<8x1xi1> to vector<8x1xi1>
    %120 = vector.broadcast %119 : vector<8x1xi1> to vector<8x128xi1>
    %121 = arith.select %120, %111, %93 : vector<8x128xi1>, vector<8x128xf32>
    %c0_27 = arith.constant 0 : index
    %c4 = arith.constant 4 : index
    %c0_28 = arith.constant 0 : index
    %c0_29 = arith.constant 0 : index
    %122 = vector.load %arg2[%c0_27, %c4, %c0_28, %c0_29] : memref<1x8x8x512xf32, #tpu.memory_space<vmem>>, vector<1x1x8x512xf32>
    %123 = vector.shape_cast %122 : vector<1x1x8x512xf32> to vector<8x512xf32>
    %cst_30 = arith.constant dense<0.000000e+00> : vector<8x512xf32>
    %124 = tpu.matmul %118, %1, %cst_30 {dimension_numbers = #tpu.dot_dimension_numbers<[1], [0], [0], [1], [0, 0, 1, 1], [], []>} : vector<8x128xf32>, vector<128x512xf32>, vector<8x512xf32> -> vector<8x512xf32>
    %125 = arith.addf %123, %124 : vector<8x512xf32>
    %126 = vector.extract_strided_slice %125 {offsets = [0, 0], sizes = [8, 384], strides = [1, 1]} : vector<8x512xf32> to vector<8x384xf32>
    %127 = arith.negf %126 : vector<8x384xf32>
    %128 = math.exp %127 : vector<8x384xf32>
    %cst_31 = arith.constant 1.000000e+00 : f32
    %129 = vector.broadcast %cst_31 : f32 to vector<8x384xf32>
    %130 = arith.addf %129, %128 : vector<8x384xf32>
    %131 = arith.divf %129, %130 : vector<8x384xf32>
    %132 = vector.extract_strided_slice %131 {offsets = [0, 0], sizes = [8, 128], strides = [1, 1]} : vector<8x384xf32> to vector<8x128xf32>
    %133 = vector.extract_strided_slice %131 {offsets = [0, 128], sizes = [8, 128], strides = [1, 1]} : vector<8x384xf32> to vector<8x128xf32>
    %134 = vector.extract_strided_slice %131 {offsets = [0, 256], sizes = [8, 128], strides = [1, 1]} : vector<8x384xf32> to vector<8x128xf32>
    %135 = vector.extract_strided_slice %125 {offsets = [0, 384], sizes = [8, 128], strides = [1, 1]} : vector<8x512xf32> to vector<8x128xf32>
    %136 = math.tanh %135 : vector<8x128xf32>
    %137 = arith.mulf %133, %121 : vector<8x128xf32>
    %138 = arith.mulf %132, %136 : vector<8x128xf32>
    %139 = arith.addf %137, %138 : vector<8x128xf32>
    %140 = math.tanh %139 : vector<8x128xf32>
    %141 = arith.mulf %134, %140 : vector<8x128xf32>
    %142 = vector.extract_strided_slice %7 {offsets = [4, 0, 0], sizes = [1, 8, 1], strides = [1, 1, 1]} : vector<8x8x1xi1> to vector<1x8x1xi1>
    %143 = vector.shape_cast %142 : vector<1x8x1xi1> to vector<8x1xi1>
    %144 = vector.shape_cast %143 : vector<8x1xi1> to vector<8x1xi1>
    %145 = vector.broadcast %144 : vector<8x1xi1> to vector<8x128xi1>
    %146 = arith.select %145, %141, %118 : vector<8x128xi1>, vector<8x128xf32>
    %147 = vector.shape_cast %143 : vector<8x1xi1> to vector<8x1xi1>
    %148 = vector.broadcast %147 : vector<8x1xi1> to vector<8x128xi1>
    %149 = arith.select %148, %139, %121 : vector<8x128xi1>, vector<8x128xf32>
    %c0_32 = arith.constant 0 : index
    %c5 = arith.constant 5 : index
    %c0_33 = arith.constant 0 : index
    %c0_34 = arith.constant 0 : index
    %150 = vector.load %arg2[%c0_32, %c5, %c0_33, %c0_34] : memref<1x8x8x512xf32, #tpu.memory_space<vmem>>, vector<1x1x8x512xf32>
    %151 = vector.shape_cast %150 : vector<1x1x8x512xf32> to vector<8x512xf32>
    %cst_35 = arith.constant dense<0.000000e+00> : vector<8x512xf32>
    %152 = tpu.matmul %146, %1, %cst_35 {dimension_numbers = #tpu.dot_dimension_numbers<[1], [0], [0], [1], [0, 0, 1, 1], [], []>} : vector<8x128xf32>, vector<128x512xf32>, vector<8x512xf32> -> vector<8x512xf32>
    %153 = arith.addf %151, %152 : vector<8x512xf32>
    %154 = vector.extract_strided_slice %153 {offsets = [0, 0], sizes = [8, 384], strides = [1, 1]} : vector<8x512xf32> to vector<8x384xf32>
    %155 = arith.negf %154 : vector<8x384xf32>
    %156 = math.exp %155 : vector<8x384xf32>
    %cst_36 = arith.constant 1.000000e+00 : f32
    %157 = vector.broadcast %cst_36 : f32 to vector<8x384xf32>
    %158 = arith.addf %157, %156 : vector<8x384xf32>
    %159 = arith.divf %157, %158 : vector<8x384xf32>
    %160 = vector.extract_strided_slice %159 {offsets = [0, 0], sizes = [8, 128], strides = [1, 1]} : vector<8x384xf32> to vector<8x128xf32>
    %161 = vector.extract_strided_slice %159 {offsets = [0, 128], sizes = [8, 128], strides = [1, 1]} : vector<8x384xf32> to vector<8x128xf32>
    %162 = vector.extract_strided_slice %159 {offsets = [0, 256], sizes = [8, 128], strides = [1, 1]} : vector<8x384xf32> to vector<8x128xf32>
    %163 = vector.extract_strided_slice %153 {offsets = [0, 384], sizes = [8, 128], strides = [1, 1]} : vector<8x512xf32> to vector<8x128xf32>
    %164 = math.tanh %163 : vector<8x128xf32>
    %165 = arith.mulf %161, %149 : vector<8x128xf32>
    %166 = arith.mulf %160, %164 : vector<8x128xf32>
    %167 = arith.addf %165, %166 : vector<8x128xf32>
    %168 = math.tanh %167 : vector<8x128xf32>
    %169 = arith.mulf %162, %168 : vector<8x128xf32>
    %170 = vector.extract_strided_slice %7 {offsets = [5, 0, 0], sizes = [1, 8, 1], strides = [1, 1, 1]} : vector<8x8x1xi1> to vector<1x8x1xi1>
    %171 = vector.shape_cast %170 : vector<1x8x1xi1> to vector<8x1xi1>
    %172 = vector.shape_cast %171 : vector<8x1xi1> to vector<8x1xi1>
    %173 = vector.broadcast %172 : vector<8x1xi1> to vector<8x128xi1>
    %174 = arith.select %173, %169, %146 : vector<8x128xi1>, vector<8x128xf32>
    %175 = vector.shape_cast %171 : vector<8x1xi1> to vector<8x1xi1>
    %176 = vector.broadcast %175 : vector<8x1xi1> to vector<8x128xi1>
    %177 = arith.select %176, %167, %149 : vector<8x128xi1>, vector<8x128xf32>
    %c0_37 = arith.constant 0 : index
    %c6 = arith.constant 6 : index
    %c0_38 = arith.constant 0 : index
    %c0_39 = arith.constant 0 : index
    %178 = vector.load %arg2[%c0_37, %c6, %c0_38, %c0_39] : memref<1x8x8x512xf32, #tpu.memory_space<vmem>>, vector<1x1x8x512xf32>
    %179 = vector.shape_cast %178 : vector<1x1x8x512xf32> to vector<8x512xf32>
    %cst_40 = arith.constant dense<0.000000e+00> : vector<8x512xf32>
    %180 = tpu.matmul %174, %1, %cst_40 {dimension_numbers = #tpu.dot_dimension_numbers<[1], [0], [0], [1], [0, 0, 1, 1], [], []>} : vector<8x128xf32>, vector<128x512xf32>, vector<8x512xf32> -> vector<8x512xf32>
    %181 = arith.addf %179, %180 : vector<8x512xf32>
    %182 = vector.extract_strided_slice %181 {offsets = [0, 0], sizes = [8, 384], strides = [1, 1]} : vector<8x512xf32> to vector<8x384xf32>
    %183 = arith.negf %182 : vector<8x384xf32>
    %184 = math.exp %183 : vector<8x384xf32>
    %cst_41 = arith.constant 1.000000e+00 : f32
    %185 = vector.broadcast %cst_41 : f32 to vector<8x384xf32>
    %186 = arith.addf %185, %184 : vector<8x384xf32>
    %187 = arith.divf %185, %186 : vector<8x384xf32>
    %188 = vector.extract_strided_slice %187 {offsets = [0, 0], sizes = [8, 128], strides = [1, 1]} : vector<8x384xf32> to vector<8x128xf32>
    %189 = vector.extract_strided_slice %187 {offsets = [0, 128], sizes = [8, 128], strides = [1, 1]} : vector<8x384xf32> to vector<8x128xf32>
    %190 = vector.extract_strided_slice %187 {offsets = [0, 256], sizes = [8, 128], strides = [1, 1]} : vector<8x384xf32> to vector<8x128xf32>
    %191 = vector.extract_strided_slice %181 {offsets = [0, 384], sizes = [8, 128], strides = [1, 1]} : vector<8x512xf32> to vector<8x128xf32>
    %192 = math.tanh %191 : vector<8x128xf32>
    %193 = arith.mulf %189, %177 : vector<8x128xf32>
    %194 = arith.mulf %188, %192 : vector<8x128xf32>
    %195 = arith.addf %193, %194 : vector<8x128xf32>
    %196 = math.tanh %195 : vector<8x128xf32>
    %197 = arith.mulf %190, %196 : vector<8x128xf32>
    %198 = vector.extract_strided_slice %7 {offsets = [6, 0, 0], sizes = [1, 8, 1], strides = [1, 1, 1]} : vector<8x8x1xi1> to vector<1x8x1xi1>
    %199 = vector.shape_cast %198 : vector<1x8x1xi1> to vector<8x1xi1>
    %200 = vector.shape_cast %199 : vector<8x1xi1> to vector<8x1xi1>
    %201 = vector.broadcast %200 : vector<8x1xi1> to vector<8x128xi1>
    %202 = arith.select %201, %197, %174 : vector<8x128xi1>, vector<8x128xf32>
    %203 = vector.shape_cast %199 : vector<8x1xi1> to vector<8x1xi1>
    %204 = vector.broadcast %203 : vector<8x1xi1> to vector<8x128xi1>
    %205 = arith.select %204, %195, %177 : vector<8x128xi1>, vector<8x128xf32>
    %c0_42 = arith.constant 0 : index
    %c7 = arith.constant 7 : index
    %c0_43 = arith.constant 0 : index
    %c0_44 = arith.constant 0 : index
    %206 = vector.load %arg2[%c0_42, %c7, %c0_43, %c0_44] : memref<1x8x8x512xf32, #tpu.memory_space<vmem>>, vector<1x1x8x512xf32>
    %207 = vector.shape_cast %206 : vector<1x1x8x512xf32> to vector<8x512xf32>
    %cst_45 = arith.constant dense<0.000000e+00> : vector<8x512xf32>
    %208 = tpu.matmul %202, %1, %cst_45 {dimension_numbers = #tpu.dot_dimension_numbers<[1], [0], [0], [1], [0, 0, 1, 1], [], []>} : vector<8x128xf32>, vector<128x512xf32>, vector<8x512xf32> -> vector<8x512xf32>
    %209 = arith.addf %207, %208 : vector<8x512xf32>
    %210 = vector.extract_strided_slice %209 {offsets = [0, 0], sizes = [8, 384], strides = [1, 1]} : vector<8x512xf32> to vector<8x384xf32>
    %211 = arith.negf %210 : vector<8x384xf32>
    %212 = math.exp %211 : vector<8x384xf32>
    %cst_46 = arith.constant 1.000000e+00 : f32
    %213 = vector.broadcast %cst_46 : f32 to vector<8x384xf32>
    %214 = arith.addf %213, %212 : vector<8x384xf32>
    %215 = arith.divf %213, %214 : vector<8x384xf32>
    %216 = vector.extract_strided_slice %215 {offsets = [0, 0], sizes = [8, 128], strides = [1, 1]} : vector<8x384xf32> to vector<8x128xf32>
    %217 = vector.extract_strided_slice %215 {offsets = [0, 128], sizes = [8, 128], strides = [1, 1]} : vector<8x384xf32> to vector<8x128xf32>
    %218 = vector.extract_strided_slice %215 {offsets = [0, 256], sizes = [8, 128], strides = [1, 1]} : vector<8x384xf32> to vector<8x128xf32>
    %219 = vector.extract_strided_slice %209 {offsets = [0, 384], sizes = [8, 128], strides = [1, 1]} : vector<8x512xf32> to vector<8x128xf32>
    %220 = math.tanh %219 : vector<8x128xf32>
    %221 = arith.mulf %217, %205 : vector<8x128xf32>
    %222 = arith.mulf %216, %220 : vector<8x128xf32>
    %223 = arith.addf %221, %222 : vector<8x128xf32>
    %224 = math.tanh %223 : vector<8x128xf32>
    %225 = arith.mulf %218, %224 : vector<8x128xf32>
    %226 = vector.extract_strided_slice %7 {offsets = [7, 0, 0], sizes = [1, 8, 1], strides = [1, 1, 1]} : vector<8x8x1xi1> to vector<1x8x1xi1>
    %227 = vector.shape_cast %226 : vector<1x8x1xi1> to vector<8x1xi1>
    %228 = vector.shape_cast %227 : vector<8x1xi1> to vector<8x1xi1>
    %229 = vector.broadcast %228 : vector<8x1xi1> to vector<8x128xi1>
    %230 = arith.select %229, %225, %202 : vector<8x128xi1>, vector<8x128xf32>
    %c0_47 = arith.constant 0 : index
    %c0_48 = arith.constant 0 : index
    %c0_49 = arith.constant 0 : index
    %231 = vector.load %arg4[%c0_47, %c0_48, %c0_49] : memref<1x128x16xf32, #tpu.memory_space<vmem>>, vector<1x128x16xf32>
    %232 = vector.shape_cast %231 : vector<1x128x16xf32> to vector<128x16xf32>
    %cst_50 = arith.constant dense<0.000000e+00> : vector<8x16xf32>
    %233 = tpu.matmul %230, %232, %cst_50 {dimension_numbers = #tpu.dot_dimension_numbers<[1], [0], [0], [1], [0, 0, 1, 1], [], []>} : vector<8x128xf32>, vector<128x16xf32>, vector<8x16xf32> -> vector<8x16xf32>
    %c0_51 = arith.constant 0 : index
    %c0_52 = arith.constant 0 : index
    %c0_53 = arith.constant 0 : index
    %234 = vector.load %arg5[%c0_51, %c0_52, %c0_53] : memref<1x1x16xf32, #tpu.memory_space<vmem>>, vector<1x1x16xf32>
    %235 = vector.shape_cast %234 : vector<1x1x16xf32> to vector<1x16xf32>
    %236 = vector.broadcast %235 : vector<1x16xf32> to vector<8x16xf32>
    %237 = arith.addf %233, %236 : vector<8x16xf32>
    %c0_54 = arith.constant 0 : index
    %c0_55 = arith.constant 0 : index
    %c0_56 = arith.constant 0 : index
    %238 = vector.load %arg6[%c0_54, %c0_55, %c0_56] : memref<1x8x16xf32, #tpu.memory_space<vmem>>, vector<1x8x16xf32>
    %239 = vector.shape_cast %238 : vector<1x8x16xf32> to vector<8x16xf32>
    %240 = vector.shape_cast %237 : vector<8x16xf32> to vector<1x8x16xf32>
    tpu.vector_store %arg6[%c0_54, %c0_55, %c0_56], %240 {strides = array<i32>} : memref<1x8x16xf32, #tpu.memory_space<vmem>>, vector<1x8x16xf32>,
    return
  }
  func.func @transform_0(%arg0: i32) -> (i32, i32, i32) {
    %c0_i32 = arith.constant 0 : i32
    %c0_i32_0 = arith.constant 0 : i32
    %c0_i32_1 = arith.constant 0 : i32
    return %arg0, %c0_i32, %c0_i32_0 : i32, i32, i32
  }
  func.func @transform_1(%arg0: i32) -> (i32, i32, i32, i32) {
    %c0_i32 = arith.constant 0 : i32
    %c0_i32_0 = arith.constant 0 : i32
    %c0_i32_1 = arith.constant 0 : i32
    %c0_i32_2 = arith.constant 0 : i32
    return %arg0, %c0_i32, %c0_i32_0, %c0_i32_1 : i32, i32, i32, i32
  }
  func.func @transform_2(%arg0: i32) -> (i32, i32, i32) {
    %c0_i32 = arith.constant 0 : i32
    %c0_i32_0 = arith.constant 0 : i32
    %c0_i32_1 = arith.constant 0 : i32
    return %arg0, %c0_i32, %c0_i32_0 : i32, i32, i32
  }
  func.func @transform_3(%arg0: i32) -> (i32, i32, i32) {
    %c0_i32 = arith.constant 0 : i32
    %c0_i32_0 = arith.constant 0 : i32
    %c0_i32_1 = arith.constant 0 : i32
    return %arg0, %c0_i32, %c0_i32_0 : i32, i32, i32
  }
  func.func @transform_4(%arg0: i32) -> (i32, i32, i32) {
    %c0_i32 = arith.constant 0 : i32
    %c0_i32_0 = arith.constant 0 : i32
    %c0_i32_1 = arith.constant 0 : i32
    return %arg0, %c0_i32, %c0_i32_0 : i32, i32, i32
  }
  func.func @transform_5(%arg0: i32) -> (i32, i32, i32) {
    %c0_i32 = arith.constant 0 : i32
    %c0_i32_0 = arith.constant 0 : i32
    %c0_i32_1 = arith.constant 0 : i32
    return %arg0, %c0_i32, %c0_i32_0 : i32, i32, i32
  }
}

</mosaic_0001>

<bundles_post_ra>
// kernel: two_tower_forward.1
= control target key start
LH: loop header
LB: loop body
LE: loop exit
PB: predicated region body
PF: predicated region fallthrough
CT: control target
= control target key end

     0   :  { %s2859_s18 = smov 0   ;;  %s3436_s0 = inlined_call_operand.vmem [shape: s32[2,8,1], index: 0, kind: input, shape index: {}]   ;;  %s3437_s1 = inlined_call_operand.vmem [shape: f32[2,8,8,512], index: 1, kind: input, shape index: {}]   ;;  %s3438_s2 = inlined_call_operand.vmem [shape: f32[2,128,512], index: 2, kind: input, shape index: {}]   ;;  %s3439_s3 = inlined_call_operand.vmem [shape: f32[2,128,16], index: 3, kind: input, shape index: {}]   ;;  %s3440_s4 = inlined_call_operand.vmem [shape: f32[2,1,16], index: 4, kind: input, shape index: {}]   ;;  %s3441_s5 = inlined_call_operand.vmem [shape: f32[2,8,16], index: 5, kind: output, shape index: {}]  }
   0x1 LB: > { %s2014_s19 = sadd.s32 4294967295, %s2823_s18   ;;  %p2018_p0 = scmp.ge.s32.totalorder %s2823_s18, 1  ;;  %s2823_s18 = sphi %s2859_s18, %s15_s18  }
   0x2   : > { %p224_p1 = scmp.lt.s32.totalorder %s2823_s18, 3 }
   0x4   : > { %p225_p2 = pnand %p2018_p0, %p224_p1 }
   0x5   : > { %p268_p3 = scmp.lt.s32.totalorder (!%p225_p2), %s2014_s19, 1  ;;  %v2825_v0 = vmov (!%p225_p2), 0.0   ;;  %v2826_v1 = vmov (!%p225_p2), 0   ;;  %vm2828_vm15 = vmmov (!%p225_p2), 0  }
   0x6   : > { %228 = sbr.rel (%p225_p2) target bundleno = 2338 (0x922), region = 40  ;;  %435 = vmatprep.mubr.f32.mxu0 (!%p225_p2), %v2825_v0  ;;  %506 = vmatprep.mubr.f32.mxu1 (!%p225_p2), %v2825_v0 }
   0x7   : > { %2687 = vset.pattern.permute.xlu0 (!%p225_p2), %v2826_v1  ;;  %2688 = vset.pattern.permute.xlu1 (!%p225_p2), %v2826_v1 }
   0xd   : > { %s3443_s19 = smov (!%p268_p3, %s2014_s19), 1 }
   0xe   : > { %s2085_s20 = sshll.u32 %s3443_s19, 9  ;;  %s2019_s24 = sshll.u32 %s3443_s19, 3 }
   0xf   : > { %s2877_s23 = scalar_lea.vmem %s3438_s2, %s2085_s20  ;;  %s271_s27 = scalar_lea.vmem %s3436_s0, %s2019_s24 }
  0x10   : > { %v295_v2 = vld [vmem:[%s2877_s23 + $0x8] sm:$0xff]  ;;  %v294_v4 = vld [vmem:[%s2877_s23] sm:$0xff]  ;;  %v297_v20 = vld [vmem:[%s2877_s23 + $0x18] sm:$0xff]  ;;  %s2084_s28 = sshll.u32 %s3443_s19, 8  ;;  %s2086_s7 = sshll.u32 %s3443_s19, 7 }
  0x11   : > { %v299_v3 = vld [vmem:[%s2877_s23 + $0x28] sm:$0xff]  ;;  %v298_v6 = vld [vmem:[%s2877_s23 + $0x20] sm:$0xff]  ;;  %v301_v21 = vld [vmem:[%s2877_s23 + $0x38] sm:$0xff]  ;;  %s3097_s6 = scalar_lea.vmem %s3437_s1, %s2084_s28  ;;  %s3399_s10 = scalar_lea.vmem %s3439_s3, %s2086_s7 }
  0x12   : > { %v2882_v5 = vpack.c.bf16 %v299_v3, %v295_v2  ;;  %v303_v7 = vld [vmem:[%s2877_s23 + $0x48] sm:$0xff]  ;;  %v2887_v9 = vpack.c.bf16 %v298_v6, %v294_v4  ;;  %v302_v11 = vld [vmem:[%s2877_s23 + $0x40] sm:$0xff]  ;;  %v2908_v23 = vpack.c.bf16 %v301_v21, %v297_v20  ;;  %v296_v24 = vld [vmem:[%s2877_s23 + $0x10] sm:$0xff]  ;;  %s289_s13 = scalar_lea.vmem %s3440_s4, %s3443_s19  ;;  %s293_s16 = scalar_lea.vmem %s3441_s5, %s2019_s24 }
  0x13   : > { %v307_v8 = vld [vmem:[%s2877_s23 + $0x68] sm:$0xff]  ;;  %v306_v12 = vld [vmem:[%s2877_s23 + $0x60] sm:$0xff]  ;;  %v300_v25 = vld [vmem:[%s2877_s23 + $0x30] sm:$0xff] }
  0x14   : > { %v2889_v10 = vpack.c.bf16 %v307_v8, %v303_v7  ;;  %v311_v13 = vld [vmem:[%s2877_s23 + $0x88] sm:$0xff]  ;;  %2140 = vmatprep.subr.bf16.mxu0 %v2882_v5  ;;  %v2897_v15 = vpack.c.bf16 %v306_v12, %v302_v11  ;;  %v310_v16 = vld [vmem:[%s2877_s23 + $0x80] sm:$0xff]  ;;  %v2912_v26 = vpack.c.bf16 %v300_v25, %v296_v24  ;;  %2172 = vmatprep.subr.bf16.mxu1 %v2908_v23  ;;  %v305_v28 = vld [vmem:[%s2877_s23 + $0x58] sm:$0xff] }
  0x15   : > { %v315_v14 = vld [vmem:[%s2877_s23 + $0xa8] sm:$0xff]  ;;  %2142 = vmatpush1.bf16.msra.mxu0 %v2887_v9  ;;  %v314_v17 = vld [vmem:[%s2877_s23 + $0xa0] sm:$0xff]  ;;  %v309_v29 = vld [vmem:[%s2877_s23 + $0x78] sm:$0xff] }
  0x16   : > { %2144 = vmatprep.subr.bf16.mxu0 %v2889_v10  ;;  %v2902_v18 = vpack.c.bf16 %v315_v14, %v311_v13  ;;  %v319_v19 = vld [vmem:[%s2877_s23 + $0xc8] sm:$0xff]  ;;  %v2915_v27 = vpack.c.bf16 %v314_v17, %v310_v16  ;;  %v304_v30 = vld [vmem:[%s2877_s23 + $0x50] sm:$0xff]  ;;  %v318_v32 = vld [vmem:[%s2877_s23 + $0xc0] sm:$0xff]  ;;  %2174 = vmatpush1.bf16.msra.mxu1 %v2912_v26  ;;  %v2927_v34 = vpack.c.bf16 %v309_v29, %v305_v28 }
  0x17   : > { %v323_v22 = vld [vmem:[%s2877_s23 + $0xe8] sm:$0xff]  ;;  %v322_v33 = vld [vmem:[%s2877_s23 + $0xe0] sm:$0xff]  ;;  %v308_v35 = vld [vmem:[%s2877_s23 + $0x70] sm:$0xff] }
  0x18   : > { %v2922_v31 = vpack.c.bf16 %v323_v22, %v319_v19  ;;  %v327_v36 = vld [vmem:[%s2877_s23 + $0x108] sm:$0xff]  ;;  %v2932_v38 = vpack.c.bf16 %v308_v35, %v304_v30  ;;  %v313_v39 = vld [vmem:[%s2877_s23 + $0x98] sm:$0xff]  ;;  %2176 = vmatprep.subr.bf16.mxu1 %v2927_v34  ;;  %v312_v41 = vld [vmem:[%s2877_s23 + $0x90] sm:$0xff]  ;;  %v2940_v43 = vpack.c.bf16 %v322_v33, %v318_v32 }
  0x19   : > { %2146 = vmatpush1.bf16.msra.mxu0 %v2897_v15  ;;  %v331_v37 = vld [vmem:[%s2877_s23 + $0x128] sm:$0xff]  ;;  %v317_v40 = vld [vmem:[%s2877_s23 + $0xb8] sm:$0xff]  ;;  %v316_v42 = vld [vmem:[%s2877_s23 + $0xb0] sm:$0xff] }
  0x1a   : > { %2148 = vmatprep.subr.bf16.mxu0 %v2902_v18  ;;  %v326_v44 = vld [vmem:[%s2877_s23 + $0x100] sm:$0xff]  ;;  %v2944_v46 = vpack.c.bf16 %v317_v40, %v313_v39  ;;  %v2947_v47 = vpack.c.bf16 %v331_v37, %v327_v36  ;;  %2178 = vmatpush1.bf16.msra.mxu1 %v2932_v38  ;;  %v335_v48 = vld [vmem:[%s2877_s23 + $0x148] sm:$0xff]  ;;  %v2951_v49 = vpack.c.bf16 %v316_v42, %v312_v41  ;;  %v321_v50 = vld [vmem:[%s2877_s23 + $0xd8] sm:$0xff] }
  0x1b   : > { %v330_v45 = vld [vmem:[%s2877_s23 + $0x120] sm:$0xff]  ;;  %v325_v51 = vld [vmem:[%s2877_s23 + $0xf8] sm:$0xff]  ;;  %v339_v52 = vld [vmem:[%s2877_s23 + $0x168] sm:$0xff] }
  0x1c   : > { %2180 = vmatprep.subr.bf16.mxu1 %v2944_v46  ;;  %v2957_v53 = vpack.c.bf16 %v325_v51, %v321_v50  ;;  %v320_v54 = vld [vmem:[%s2877_s23 + $0xd0] sm:$0xff]  ;;  %v2963_v56 = vpack.c.bf16 %v330_v45, %v326_v44  ;;  %v329_v57 = vld [vmem:[%s2877_s23 + $0x118] sm:$0xff]  ;;  %v2968_v59 = vpack.c.bf16 %v339_v52, %v335_v48  ;;  %v334_v60 = vld [vmem:[%s2877_s23 + $0x140] sm:$0xff] }
  0x1d   : > { %2150 = vmatpush1.bf16.msra.mxu0 %v2915_v27  ;;  %v324_v55 = vld [vmem:[%s2877_s23 + $0xf0] sm:$0xff]  ;;  %v333_v58 = vld [vmem:[%s2877_s23 + $0x138] sm:$0xff]  ;;  %v338_v61 = vld [vmem:[%s2877_s23 + $0x160] sm:$0xff] }
  0x1e   : > { %2152 = vmatprep.subr.bf16.mxu0 %v2922_v31  ;;  %2182 = vmatpush1.bf16.msra.mxu1 %v2951_v49  ;;  %v343_v62 = vld [vmem:[%s2877_s23 + $0x188] sm:$0xff]  ;;  %v2974_v63 = vpack.c.bf16 %v324_v55, %v320_v54  ;;  %v2978_v3 = vpack.c.bf16 %v333_v58, %v329_v57  ;;  %v328_v4 = vld [vmem:[%s2877_s23 + $0x110] sm:$0xff]  ;;  %v337_v7 = vld [vmem:[%s2877_s23 + $0x158] sm:$0xff]  ;;  %v2990_v11 = vpack.c.bf16 %v338_v61, %v334_v60 }
  0x1f   : > { %v347_v2 = vld [vmem:[%s2877_s23 + $0x1a8] sm:$0xff]  ;;  %2184 = vmatprep.subr.bf16.mxu1 %v2957_v53  ;;  %v332_v6 = vld [vmem:[%s2877_s23 + $0x130] sm:$0xff]  ;;  %v341_v8 = vld [vmem:[%s2877_s23 + $0x178] sm:$0xff] }
  0x20   : > { %v342_v12 = vld [vmem:[%s2877_s23 + $0x180] sm:$0xff]  ;;  %v2994_v13 = vpack.c.bf16 %v347_v2, %v343_v62  ;;  %v351_v16 = vld [vmem:[%s2877_s23 + $0x1c8] sm:$0xff]  ;;  %v2999_v17 = vpack.c.bf16 %v332_v6, %v328_v4  ;;  %v3005_v21 = vpack.c.bf16 %v341_v8, %v337_v7  ;;  %v336_v22 = vld [vmem:[%s2877_s23 + $0x150] sm:$0xff] }
  0x21   : > { %2154 = vmatpush1.bf16.msra.mxu0 %v2940_v43  ;;  %v346_v14 = vld [vmem:[%s2877_s23 + $0x1a0] sm:$0xff]  ;;  %v355_v20 = vld [vmem:[%s2877_s23 + $0x1e8] sm:$0xff]  ;;  %v340_v24 = vld [vmem:[%s2877_s23 + $0x170] sm:$0xff] }
  0x22   : > { %2156 = vmatprep.subr.bf16.mxu0 %v2947_v47  ;;  %2186 = vmatpush1.bf16.msra.mxu1 %v2974_v63  ;;  %v3001_v19 = vld [vmem:[%s271_s27] sm:$0xff]  ;;  %v345_v25 = vld [vmem:[%s2877_s23 + $0x198] sm:$0xff]  ;;  %v3015_v30 = vpack.c.bf16 %v346_v14, %v342_v12  ;;  %v3018_v32 = vpack.c.bf16 %v355_v20, %v351_v16  ;;  %v3023_v36 = vpack.c.bf16 %v340_v24, %v336_v22  ;;  %v344_v40 = vld [vmem:[%s2877_s23 + $0x190] sm:$0xff] }
  0x23   : > { %2188 = vmatprep.subr.bf16.mxu1 %v2978_v3  ;;  %vm359_vm0 = vcmp.gt.s32.totalorder %v3001_v19, 0  ;;  %vm360_vm1 = vcmp.gt.s32.totalorder %v3001_v19, 1  ;;  %v349_v28 = vld [vmem:[%s2877_s23 + $0x1b8] sm:$0xff]  ;;  %v350_v33 = vld [vmem:[%s2877_s23 + $0x1c0] sm:$0xff]  ;;  %v348_v41 = vld [vmem:[%s2877_s23 + $0x1b0] sm:$0xff]  ;;  %vm363_vm2 = vcmp.gt.s32.totalorder %v3001_v19, 4 }
  0x24   : > { %v541_v29 = vsel %vm359_vm0, 1, %v2826_v1  ;;  %v354_v35 = vld [vmem:[%s2877_s23 + $0x1e0] sm:$0xff]  ;;  %v723_v37 = vsel %vm360_vm1, 1, %v2826_v1  ;;  %v3027_v39 = vpack.c.bf16 %v349_v28, %v345_v25  ;;  %v353_v42 = vld [vmem:[%s2877_s23 + $0x1d8] sm:$0xff]  ;;  %v3039_v48 = vpack.c.bf16 %v348_v41, %v344_v40  ;;  %v352_v52 = vld [vmem:[%s2877_s23 + $0x1d0] sm:$0xff] }
  0x25   : > { %2158 = vmatpush1.bf16.msra.mxu0 %v2963_v56  ;;  %543 = vperm.xlu0 %2687, %v541_v29   ;;  %v357_v44 = vld [vmem:[%s2877_s23 + $0x1f8] sm:$0xff]  ;;  %v3035_v45 = vpack.c.bf16 %v354_v35, %v350_v33  ;;  %v1269_v50 = vsel %vm363_vm2, 1, %v2826_v1  ;;  %v356_v54 = vld [vmem:[%s2877_s23 + $0x1f0] sm:$0xff]  ;;  %vm365_vm3 = vcmp.gt.s32.totalorder %v3001_v19, 6  ;;  %v367_v58 = vld [vmem:[%s3097_s6] sm:$0xff]  ;;  %vm361_vm5 = vcmp.gt.s32.totalorder %v3001_v19, 2 }
  0x26   : > { %2160 = vmatprep.subr.bf16.mxu0 %v2968_v59  ;;  %2190 = vmatpush1.bf16.msra.mxu1 %v2999_v17  ;;  %v3043_v51 = vpack.c.bf16 %v357_v44, %v353_v42  ;;  %v3050_v55 = vpack.c.bf16 %v356_v54, %v352_v52  ;;  %v1633_v57 = vsel %vm365_vm3, 1, %v2826_v1  ;;  %v368_v60 = vld [vmem:[%s3097_s6 + $0x8] sm:$0xff]  ;;  %v369_v8 = vld [vmem:[%s3097_s6 + $0x10] sm:$0xff]  ;;  %v370_v20 = vld [vmem:[%s3097_s6 + $0x18] sm:$0xff]  ;;  %vm362_vm6 = vcmp.gt.s32.totalorder %v3001_v19, 3 }
  0x27   : > { %2192 = vmatprep.subr.bf16.mxu1 %v3005_v21  ;;  %vm364_vm7 = vcmp.gt.s32.totalorder %v3001_v19, 5  ;;  %vm366_vm8 = vcmp.gt.s32.totalorder %v3001_v19, 7  ;;  %v2033_v19 = vld [vmem:[%s3097_s6 + $0x38] sm:$0xff]  ;;  %vm1914_vm1 = vcmask 130048  }
  0x29   : > { %2162 = vmatpush1.bf16.msra.mxu0 %v2990_v11  ;;  %725 = vperm.xlu0 %2687, %v723_v37  }
  0x2a   : > { %2164 = vmatprep.subr.bf16.mxu0 %v2994_v13  ;;  %2194 = vmatpush1.bf16.msra.mxu1 %v3023_v36 }
  0x2b   : > { %2196 = vmatprep.subr.bf16.mxu1 %v3027_v39 }
  0x2d   : > { %2166 = vmatpush1.bf16.msra.mxu0 %v3015_v30  ;;  %1271 = vperm.xlu0 %2687, %v1269_v50  }
  0x2e   : > { %2168 = vmatprep.subr.bf16.mxu0 %v3018_v32  ;;  %2198 = vmatpush1.bf16.msra.mxu1 %v3039_v48 }
  0x2f   : > { %2200 = vmatprep.subr.bf16.mxu1 %v3043_v51 }
  0x31   : > { %2170 = vmatpush1.bf16.msra.mxu0 %v3035_v45  ;;  %1635 = vperm.xlu0 %2687, %v1633_v57  }
  0x32   : > { %2204 = vmatprep.subr.bf16.mxu0 %v2882_v5  ;;  %2202 = vmatpush1.bf16.msra.mxu1 %v3050_v55 }
  0x33   : > { %2236 = vmatprep.subr.bf16.mxu1 %v2908_v23 }
  0x34   : > { %436 = vmatmul.mubr.f32.vlgmr.msra.gmra.mrb[0].mxu0 %v2825_v0 }
  0x35   : > { %2206 = vmatpush1.bf16.msra.mxu0 %v2887_v9  ;;  %617 = vmatprep.mubr.f32.mxu0 %v2825_v0 }
  0x36   : > { %2208 = vmatprep.subr.bf16.mxu0 %v2889_v10  ;;  %507 = vmatmul.mubr.f32.vlgmr.msra.gmra.mrb[0].mxu1 %v2825_v0 }
  0x37   : > { %2238 = vmatpush1.bf16.msra.mxu1 %v2912_v26  ;;  %688 = vmatprep.mubr.f32.mxu1 %v2825_v0 }
  0x38   : > { %2240 = vmatprep.subr.bf16.mxu1 %v2927_v34 }
  0x39   : > { %2210 = vmatpush1.bf16.msra.mxu0 %v2897_v15 }
  0x3a   : > { %2212 = vmatprep.subr.bf16.mxu0 %v2902_v18 }
  0x3b   : > { %2242 = vmatpush1.bf16.msra.mxu1 %v2932_v38 }
  0x3c   : > { %2244 = vmatprep.subr.bf16.mxu1 %v2944_v46 }
  0x3d   : > { %2214 = vmatpush1.bf16.msra.mxu0 %v2915_v27 }
  0x3e   : > { %2216 = vmatprep.subr.bf16.mxu0 %v2922_v31 }
  0x3f   : > { %2246 = vmatpush1.bf16.msra.mxu1 %v2951_v49 }
  0x40   : > { %2248 = vmatprep.subr.bf16.mxu1 %v2957_v53 }
  0x41   : > { %2218 = vmatpush1.bf16.msra.mxu0 %v2940_v43 }
  0x42   : > { %2220 = vmatprep.subr.bf16.mxu0 %v2947_v47 }
  0x43   : > { %2250 = vmatpush1.bf16.msra.mxu1 %v2974_v63 }
  0x44   : > { %2252 = vmatprep.subr.bf16.mxu1 %v2978_v3 }
  0x45   : > { %2222 = vmatpush1.bf16.msra.mxu0 %v2963_v56 }
  0x46   : > { %2224 = vmatprep.subr.bf16.mxu0 %v2968_v59 }
  0x47   : > { %2254 = vmatpush1.bf16.msra.mxu1 %v2999_v17 }
  0x48   : > { %2256 = vmatprep.subr.bf16.mxu1 %v3005_v21 }
  0x49   : > { %2226 = vmatpush1.bf16.msra.mxu0 %v2990_v11 }
  0x4a   : > { %2228 = vmatprep.subr.bf16.mxu0 %v2994_v13 }
  0x4b   : > { %2258 = vmatpush1.bf16.msra.mxu1 %v3023_v36 }
  0x4c   : > { %2260 = vmatprep.subr.bf16.mxu1 %v3027_v39 }
  0x4d   : > { %2230 = vmatpush1.bf16.msra.mxu0 %v3015_v30 }
  0x4e   : > { %2232 = vmatprep.subr.bf16.mxu0 %v3018_v32 }
  0x4f   : > { %2262 = vmatpush1.bf16.msra.mxu1 %v3039_v48 }
  0x50   : > { %2264 = vmatprep.subr.bf16.mxu1 %v3043_v51 }
  0x51   : > { %2234 = vmatpush1.bf16.msra.mxu0 %v3035_v45 }
  0x52   : > { %2268 = vmatprep.subr.bf16.mxu0 %v2882_v5 }
  0x53   : > { %2266 = vmatpush1.bf16.msra.mxu1 %v3050_v55 }
  0x54   : > { %2300 = vmatprep.subr.bf16.mxu1 %v2908_v23 }
  0xa4   : > { %v544_v42 = vpop.permute.xlu0 %543 }
  0xa5   : > { %vm545_vm4 = vcmp.eq.s32.totalorder %v544_v42, 1 }
 0x107   : > { %v437_v61 = vpop.f32.mrb[0].mxu0 }
 0x108   : > { %v513_v62 = vadd.f32 %v437_v61, %v367_v58  ;;  %v439_v2 = vpop.f32.mrb[1].mxu0 }
 0x109   : > { %v514_v4 = vadd.f32 %v439_v2, %v368_v60  ;;  %v508_v12 = vpop.f32.mrb[0].mxu1  ;;  %v905_v2 = vsel %vm361_vm5, 1, %v2826_v1 }
 0x10a   : > { %v2027_v6 = vmul.f32 -1.442695, %v513_v62  ;;  %v510_v14 = vpop.f32.mrb[1].mxu1  ;;  %v515_v16 = vadd.f32 %v508_v12, %v369_v8  ;;  %907 = vperm.xlu1 %2688, %v905_v2   ;;  %v2030_v8 = vld [vmem:[%s3097_s6 + $0x20] sm:$0xff]  ;;  %v2031_v12 = vld [vmem:[%s3097_s6 + $0x28] sm:$0xff] }
 0x10b   : > { %v2028_v7 = vmul.f32 -1.442695, %v514_v4  ;;  %v516_v24 = vadd.f32 %v510_v14, %v370_v20  ;;  %v1087_v4 = vsel %vm362_vm6, 1, %v2826_v1 }
 0x10c   : > { %2689 = vpow2.f32 %v2027_v6  ;;  %v2029_v22 = vmul.f32 -1.442695, %v515_v16  ;;  %v1451_v6 = vsel %vm364_vm7, 1, %v2826_v1 }
 0x10d   : > { %2691 = vpow2.f32 %v2028_v7  ;;  %v1815_v7 = vsel %vm366_vm8, 1, %v2826_v1 }
 0x10e   : > { %2693 = vpow2.f32 %v2029_v22  ;;  %1089 = vperm.xlu1 %2688, %v1087_v4   ;;  %v726_v4 = vpop.permute.xlu0 %725 }
 0x10f   : > { %2695 = vtanh.f32 %v516_v24  ;;  %vm727_vm9 = vcmp.eq.s32.totalorder %v726_v4, 1 }
 0x112   : > { %1453 = vperm.xlu1 %2688, %v1451_v6  }
 0x116   : > { %v2690_v25 = vpop.eup %2689  ;;  %1817 = vperm.xlu1 %2688, %v1815_v7  }
 0x117   : > { %v2692_v28 = vpop.eup %2691  ;;  %v526_v29 = vadd.f32 1.0, %v2690_v25 }
 0x118   : > { %v527_v33 = vadd.f32 1.0, %v2692_v28  ;;  %v2694_v35 = vpop.eup %2693 }
 0x119   : > { %2697 = vrcp.f32 %v526_v29  ;;  %v2696_v37 = vpop.eup %2695  ;;  %v528_v41 = vadd.f32 1.0, %v2694_v35 }
 0x11a   : > { %2699 = vrcp.f32 %v527_v33  ;;  %v2032_v33 = vld [vmem:[%s3097_s6 + $0x30] sm:$0xff] }
 0x11b   : > { %2701 = vrcp.f32 %v528_v41 }
 0x123   : > { %v2698_v40 = vpop.eup %2697 }
 0x124   : > { %v2700_v44 = vpop.eup %2699  ;;  %v537_v50 = vmul.f32 %v2698_v40, %v2696_v37 }
 0x125   : > { %v536_v52 = vmul.f32 0.0, %v2700_v44  ;;  %v2702_v58 = vpop.eup %2701 }
 0x127   : > { %v538_v54 = vadd.f32 %v537_v50, %v536_v52 }
 0x129   : > { %2703 = vtanh.f32 %v538_v54  ;;  %v3103_v57 = vsel %vm545_vm4, %v538_v54, 0.0 }
 0x133   : > { %v2704_v60 = vpop.eup %2703 }
 0x134   : > { %v540_v61 = vmul.f32 %v2704_v60, %v2702_v58 }
 0x136   : > { %v3105_v62 = vsel %vm545_vm4, %v540_v61, 0.0  ;;  %2034 = vmatmul.mubr.msk.f32.vlgmr.msra.gmra.mrb[2].mxu0 %vm545_vm4, %v540_v61  ;;  %2035 = vmatmul.mubr.msk.f32.vlgmr.msra.gmra.mrb[2].mxu1 %vm545_vm4, %v540_v61 }
 0x137   : > { %2270 = vmatpush1.bf16.msra.mxu0 %v2887_v9  ;;  %2302 = vmatpush1.bf16.msra.mxu1 %v2912_v26 }
 0x138   : > { %2272 = vmatprep.subr.bf16.mxu0 %v2889_v10  ;;  %2304 = vmatprep.subr.bf16.mxu1 %v2927_v34 }
 0x139   : > { %799 = vmatprep.mubr.f32.mxu0 %v2825_v0  ;;  %870 = vmatprep.mubr.f32.mxu1 %v2825_v0 }
 0x13b   : > { %2274 = vmatpush1.bf16.msra.mxu0 %v2897_v15  ;;  %2306 = vmatpush1.bf16.msra.mxu1 %v2932_v38 }
 0x13c   : > { %2276 = vmatprep.subr.bf16.mxu0 %v2902_v18  ;;  %2308 = vmatprep.subr.bf16.mxu1 %v2944_v46 }
 0x13f   : > { %2278 = vmatpush1.bf16.msra.mxu0 %v2915_v27  ;;  %2310 = vmatpush1.bf16.msra.mxu1 %v2951_v49 }
 0x140   : > { %2280 = vmatprep.subr.bf16.mxu0 %v2922_v31  ;;  %2312 = vmatprep.subr.bf16.mxu1 %v2957_v53 }
 0x143   : > { %2282 = vmatpush1.bf16.msra.mxu0 %v2940_v43  ;;  %2314 = vmatpush1.bf16.msra.mxu1 %v2974_v63 }
 0x144   : > { %2284 = vmatprep.subr.bf16.mxu0 %v2947_v47  ;;  %2316 = vmatprep.subr.bf16.mxu1 %v2978_v3 }
 0x147   : > { %2286 = vmatpush1.bf16.msra.mxu0 %v2963_v56  ;;  %2318 = vmatpush1.bf16.msra.mxu1 %v2999_v17 }
 0x148   : > { %2288 = vmatprep.subr.bf16.mxu0 %v2968_v59  ;;  %2320 = vmatprep.subr.bf16.mxu1 %v3005_v21 }
 0x14b   : > { %2290 = vmatpush1.bf16.msra.mxu0 %v2990_v11  ;;  %2322 = vmatpush1.bf16.msra.mxu1 %v3023_v36 }
 0x14c   : > { %2292 = vmatprep.subr.bf16.mxu0 %v2994_v13  ;;  %2324 = vmatprep.subr.bf16.mxu1 %v3027_v39 }
 0x14f   : > { %2294 = vmatpush1.bf16.msra.mxu0 %v3015_v30  ;;  %2326 = vmatpush1.bf16.msra.mxu1 %v3039_v48 }
 0x150   : > { %2296 = vmatprep.subr.bf16.mxu0 %v3018_v32  ;;  %2328 = vmatprep.subr.bf16.mxu1 %v3043_v51 }
 0x153   : > { %2298 = vmatpush1.bf16.msra.mxu0 %v3035_v45  ;;  %2330 = vmatpush1.bf16.msra.mxu1 %v3050_v55 }
 0x154   : > { %2332 = vmatprep.subr.bf16.mxu0 %v2882_v5  ;;  %2364 = vmatprep.subr.bf16.mxu1 %v2908_v23 }
 0x209   : > { %v619_v14 = vpop.f32.mrb[2].mxu0  ;;  %v690_v16 = vpop.f32.mrb[2].mxu1 }
 0x20a   : > { %v695_v20 = vadd.f32 %v2030_v8, %v619_v14  ;;  %v621_v22 = vpop.f32.mrb[3].mxu0  ;;  %v692_v24 = vpop.f32.mrb[3].mxu1  ;;  %v697_v35 = vadd.f32 %v2032_v33, %v690_v16 }
 0x20b   : > { %v696_v25 = vadd.f32 %v2031_v12, %v621_v22  ;;  %v698_v37 = vadd.f32 %v2033_v19, %v692_v24  ;;  %v2041_v19 = vld [vmem:[%s3097_s6 + $0x50] sm:$0xff] }
 0x20c   : > { %v2036_v28 = vmul.f32 -1.442695, %v695_v20  ;;  %v2038_v40 = vmul.f32 -1.442695, %v697_v35 }
 0x20d   : > { %v2037_v29 = vmul.f32 -1.442695, %v696_v25 }
 0x20e   : > { %2705 = vpow2.f32 %v2036_v28 }
 0x20f   : > { %2707 = vpow2.f32 %v2037_v29 }
 0x210   : > { %2709 = vtanh.f32 %v698_v37 }
 0x211   : > { %2711 = vpow2.f32 %v2038_v40  ;;  %v2042_v40 = vld [vmem:[%s3097_s6 + $0x58] sm:$0xff] }
 0x218   : > { %v2706_v1 = vpop.eup %2705 }
 0x219   : > { %v708_v41 = vadd.f32 1.0, %v2706_v1  ;;  %v2708_v42 = vpop.eup %2707 }
 0x21a   : > { %v709_v44 = vadd.f32 1.0, %v2708_v42  ;;  %v2710_v50 = vpop.eup %2709 }
 0x21b   : > { %2713 = vrcp.f32 %v708_v41  ;;  %v2712_v52 = vpop.eup %2711 }
 0x21c   : > { %2715 = vrcp.f32 %v709_v44  ;;  %v710_v61 = vadd.f32 1.0, %v2712_v52 }
 0x21e   : > { %2717 = vrcp.f32 %v710_v61  ;;  %v908_v61 = vpop.permute.xlu1 %907 }
 0x21f   : > { %vm909_vm10 = vcmp.eq.s32.totalorder %v908_v61, 1 }
 0x225   : > { %v2714_v54 = vpop.eup %2713 }
 0x226   : > { %v719_v58 = vmul.f32 %v2714_v54, %v2710_v50  ;;  %v2716_v60 = vpop.eup %2715 }
 0x227   : > { %v718_v2 = vmul.f32 %v2716_v60, %v3103_v57 }
 0x228   : > { %v2718_v8 = vpop.eup %2717 }
 0x229   : > { %v720_v6 = vadd.f32 %v719_v58, %v718_v2 }
 0x22b   : > { %2719 = vtanh.f32 %v720_v6  ;;  %v3155_v7 = vsel %vm727_vm9, %v720_v6, %v3103_v57  ;;  %v2039_v57 = vld [vmem:[%s3097_s6 + $0x40] sm:$0xff] }
 0x235   : > { %v2720_v12 = vpop.eup %2719 }
 0x236   : > { %v722_v14 = vmul.f32 %v2720_v12, %v2718_v8 }
 0x238   : > { %v3158_v16 = vsel %vm727_vm9, %v722_v14, %v3105_v62  ;;  %v2040_v62 = vld [vmem:[%s3097_s6 + $0x48] sm:$0xff] }
 0x239   : > { %800 = vmatmul.mubr.f32.vlgmr.msra.gmra.mrb[4].mxu0 %v3158_v16  ;;  %871 = vmatmul.mubr.f32.vlgmr.msra.gmra.mrb[4].mxu1 %v3158_v16 }
 0x23a   : > { %2334 = vmatpush1.bf16.msra.mxu0 %v2887_v9  ;;  %2366 = vmatpush1.bf16.msra.mxu1 %v2912_v26 }
 0x23b   : > { %2336 = vmatprep.subr.bf16.mxu0 %v2889_v10  ;;  %2368 = vmatprep.subr.bf16.mxu1 %v2927_v34 }
 0x23c   : > { %981 = vmatprep.mubr.f32.mxu0 %v2825_v0  ;;  %1052 = vmatprep.mubr.f32.mxu1 %v2825_v0 }
 0x23e   : > { %2338 = vmatpush1.bf16.msra.mxu0 %v2897_v15  ;;  %2370 = vmatpush1.bf16.msra.mxu1 %v2932_v38 }
 0x23f   : > { %2340 = vmatprep.subr.bf16.mxu0 %v2902_v18  ;;  %2372 = vmatprep.subr.bf16.mxu1 %v2944_v46 }
 0x242   : > { %2342 = vmatpush1.bf16.msra.mxu0 %v2915_v27  ;;  %2374 = vmatpush1.bf16.msra.mxu1 %v2951_v49 }
 0x243   : > { %2344 = vmatprep.subr.bf16.mxu0 %v2922_v31  ;;  %2376 = vmatprep.subr.bf16.mxu1 %v2957_v53 }
 0x246   : > { %2346 = vmatpush1.bf16.msra.mxu0 %v2940_v43  ;;  %2378 = vmatpush1.bf16.msra.mxu1 %v2974_v63 }
 0x247   : > { %2348 = vmatprep.subr.bf16.mxu0 %v2947_v47  ;;  %2380 = vmatprep.subr.bf16.mxu1 %v2978_v3 }
 0x24a   : > { %2350 = vmatpush1.bf16.msra.mxu0 %v2963_v56  ;;  %2382 = vmatpush1.bf16.msra.mxu1 %v2999_v17 }
 0x24b   : > { %2352 = vmatprep.subr.bf16.mxu0 %v2968_v59  ;;  %2384 = vmatprep.subr.bf16.mxu1 %v3005_v21 }
 0x24e   : > { %2354 = vmatpush1.bf16.msra.mxu0 %v2990_v11  ;;  %2386 = vmatpush1.bf16.msra.mxu1 %v3023_v36 }
 0x24f   : > { %2356 = vmatprep.subr.bf16.mxu0 %v2994_v13  ;;  %2388 = vmatprep.subr.bf16.mxu1 %v3027_v39 }
 0x252   : > { %2358 = vmatpush1.bf16.msra.mxu0 %v3015_v30  ;;  %2390 = vmatpush1.bf16.msra.mxu1 %v3039_v48 }
 0x253   : > { %2360 = vmatprep.subr.bf16.mxu0 %v3018_v32  ;;  %2392 = vmatprep.subr.bf16.mxu1 %v3043_v51 }
 0x256   : > { %2362 = vmatpush1.bf16.msra.mxu0 %v3035_v45  ;;  %2394 = vmatpush1.bf16.msra.mxu1 %v3050_v55 }
 0x257   : > { %2396 = vmatprep.subr.bf16.mxu0 %v2882_v5  ;;  %2428 = vmatprep.subr.bf16.mxu1 %v2908_v23 }
 0x30c   : > { %v801_v20 = vpop.f32.mrb[4].mxu0  ;;  %v872_v22 = vpop.f32.mrb[4].mxu1 }
 0x30d   : > { %v877_v24 = vadd.f32 %v2039_v57, %v801_v20  ;;  %v803_v25 = vpop.f32.mrb[5].mxu0  ;;  %v874_v28 = vpop.f32.mrb[5].mxu1  ;;  %v879_v37 = vadd.f32 %v2041_v19, %v872_v22 }
 0x30e   : > { %v878_v29 = vadd.f32 %v2040_v62, %v803_v25  ;;  %v880_v1 = vadd.f32 %v2042_v40, %v874_v28  ;;  %v2048_v40 = vld [vmem:[%s3097_s6 + $0x70] sm:$0xff] }
 0x30f   : > { %v2043_v33 = vmul.f32 -1.442695, %v877_v24  ;;  %v2045_v41 = vmul.f32 -1.442695, %v879_v37 }
 0x310   : > { %v2044_v35 = vmul.f32 -1.442695, %v878_v29 }
 0x311   : > { %2721 = vpow2.f32 %v2043_v33 }
 0x312   : > { %2723 = vpow2.f32 %v2044_v35 }
 0x313   : > { %2725 = vtanh.f32 %v880_v1 }
 0x314   : > { %2727 = vpow2.f32 %v2045_v41  ;;  %v2049_v41 = vld [vmem:[%s3097_s6 + $0x78] sm:$0xff] }
 0x31b   : > { %v2722_v42 = vpop.eup %2721 }
 0x31c   : > { %v890_v44 = vadd.f32 1.0, %v2722_v42  ;;  %v2724_v50 = vpop.eup %2723 }
 0x31d   : > { %v891_v52 = vadd.f32 1.0, %v2724_v50  ;;  %v2726_v54 = vpop.eup %2725 }
 0x31e   : > { %2729 = vrcp.f32 %v890_v44  ;;  %v2728_v58 = vpop.eup %2727 }
 0x31f   : > { %2731 = vrcp.f32 %v891_v52  ;;  %v892_v6 = vadd.f32 1.0, %v2728_v58 }
 0x321   : > { %2733 = vrcp.f32 %v892_v6 }
 0x328   : > { %v2730_v60 = vpop.eup %2729 }
 0x329   : > { %v901_v2 = vmul.f32 %v2730_v60, %v2726_v54  ;;  %v2732_v4 = vpop.eup %2731 }
 0x32a   : > { %v900_v8 = vmul.f32 %v2732_v4, %v3155_v7 }
 0x32b   : > { %v2734_v57 = vpop.eup %2733 }
 0x32c   : > { %v902_v12 = vadd.f32 %v901_v2, %v900_v8 }
 0x32e   : > { %2735 = vtanh.f32 %v902_v12  ;;  %v3202_v14 = vsel %vm909_vm10, %v902_v12, %v3155_v7  ;;  %v2046_v7 = vld [vmem:[%s3097_s6 + $0x60] sm:$0xff] }
 0x338   : > { %v2736_v62 = vpop.eup %2735 }
 0x339   : > { %v904_v20 = vmul.f32 %v2736_v62, %v2734_v57  ;;  %v1090_v57 = vpop.permute.xlu1 %1089 }
 0x33a   : > { %vm1091_vm11 = vcmp.eq.s32.totalorder %v1090_v57, 1 }
 0x33b   : > { %v3205_v22 = vsel %vm909_vm10, %v904_v20, %v3158_v16  ;;  %v2047_v16 = vld [vmem:[%s3097_s6 + $0x68] sm:$0xff] }
 0x33c   : > { %982 = vmatmul.mubr.f32.vlgmr.msra.gmra.mrb[6].mxu0 %v3205_v22  ;;  %1053 = vmatmul.mubr.f32.vlgmr.msra.gmra.mrb[6].mxu1 %v3205_v22 }
 0x33d   : > { %2398 = vmatpush1.bf16.msra.mxu0 %v2887_v9  ;;  %2430 = vmatpush1.bf16.msra.mxu1 %v2912_v26 }
 0x33e   : > { %2400 = vmatprep.subr.bf16.mxu0 %v2889_v10  ;;  %2432 = vmatprep.subr.bf16.mxu1 %v2927_v34 }
 0x33f   : > { %1163 = vmatprep.mubr.f32.mxu0 %v2825_v0  ;;  %1234 = vmatprep.mubr.f32.mxu1 %v2825_v0 }
 0x341   : > { %2402 = vmatpush1.bf16.msra.mxu0 %v2897_v15  ;;  %2434 = vmatpush1.bf16.msra.mxu1 %v2932_v38 }
 0x342   : > { %2404 = vmatprep.subr.bf16.mxu0 %v2902_v18  ;;  %2436 = vmatprep.subr.bf16.mxu1 %v2944_v46 }
 0x345   : > { %2406 = vmatpush1.bf16.msra.mxu0 %v2915_v27  ;;  %2438 = vmatpush1.bf16.msra.mxu1 %v2951_v49 }
 0x346   : > { %2408 = vmatprep.subr.bf16.mxu0 %v2922_v31  ;;  %2440 = vmatprep.subr.bf16.mxu1 %v2957_v53 }
 0x349   : > { %2410 = vmatpush1.bf16.msra.mxu0 %v2940_v43  ;;  %2442 = vmatpush1.bf16.msra.mxu1 %v2974_v63 }
 0x34a   : > { %2412 = vmatprep.subr.bf16.mxu0 %v2947_v47  ;;  %2444 = vmatprep.subr.bf16.mxu1 %v2978_v3 }
 0x34d   : > { %2414 = vmatpush1.bf16.msra.mxu0 %v2963_v56  ;;  %2446 = vmatpush1.bf16.msra.mxu1 %v2999_v17 }
 0x34e   : > { %2416 = vmatprep.subr.bf16.mxu0 %v2968_v59  ;;  %2448 = vmatprep.subr.bf16.mxu1 %v3005_v21 }
 0x351   : > { %2418 = vmatpush1.bf16.msra.mxu0 %v2990_v11  ;;  %2450 = vmatpush1.bf16.msra.mxu1 %v3023_v36 }
 0x352   : > { %2420 = vmatprep.subr.bf16.mxu0 %v2994_v13  ;;  %2452 = vmatprep.subr.bf16.mxu1 %v3027_v39 }
 0x355   : > { %2422 = vmatpush1.bf16.msra.mxu0 %v3015_v30  ;;  %2454 = vmatpush1.bf16.msra.mxu1 %v3039_v48 }
 0x356   : > { %2424 = vmatprep.subr.bf16.mxu0 %v3018_v32  ;;  %2456 = vmatprep.subr.bf16.mxu1 %v3043_v51 }
 0x359   : > { %2426 = vmatpush1.bf16.msra.mxu0 %v3035_v45  ;;  %2458 = vmatpush1.bf16.msra.mxu1 %v3050_v55 }
 0x35a   : > { %2460 = vmatprep.subr.bf16.mxu0 %v2882_v5  ;;  %2492 = vmatprep.subr.bf16.mxu1 %v2908_v23 }
 0x40f   : > { %v983_v24 = vpop.f32.mrb[6].mxu0  ;;  %v1054_v25 = vpop.f32.mrb[6].mxu1 }
 0x410   : > { %v1059_v28 = vadd.f32 %v2046_v7, %v983_v24  ;;  %v985_v29 = vpop.f32.mrb[7].mxu0  ;;  %v1056_v33 = vpop.f32.mrb[7].mxu1  ;;  %v1061_v1 = vadd.f32 %v2048_v40, %v1054_v25 }
 0x411   : > { %v1060_v35 = vadd.f32 %v2047_v16, %v985_v29  ;;  %v1062_v42 = vadd.f32 %v2049_v41, %v1056_v33  ;;  %v2055_v41 = vld [vmem:[%s3097_s6 + $0x90] sm:$0xff] }
 0x412   : > { %v2050_v19 = vmul.f32 -1.442695, %v1059_v28  ;;  %v2052_v44 = vmul.f32 -1.442695, %v1061_v1 }
 0x413   : > { %v2051_v37 = vmul.f32 -1.442695, %v1060_v35 }
 0x414   : > { %2737 = vpow2.f32 %v2050_v19 }
 0x415   : > { %2739 = vpow2.f32 %v2051_v37 }
 0x416   : > { %2741 = vtanh.f32 %v1062_v42 }
 0x417   : > { %2743 = vpow2.f32 %v2052_v44  ;;  %v2056_v44 = vld [vmem:[%s3097_s6 + $0x98] sm:$0xff] }
 0x41e   : > { %v2738_v50 = vpop.eup %2737 }
 0x41f   : > { %v1072_v52 = vadd.f32 1.0, %v2738_v50  ;;  %v2740_v54 = vpop.eup %2739 }
 0x420   : > { %v1073_v58 = vadd.f32 1.0, %v2740_v54  ;;  %v2742_v60 = vpop.eup %2741 }
 0x421   : > { %2745 = vrcp.f32 %v1072_v52  ;;  %v2744_v61 = vpop.eup %2743 }
 0x422   : > { %2747 = vrcp.f32 %v1073_v58  ;;  %v1074_v8 = vadd.f32 1.0, %v2744_v61 }
 0x424   : > { %2749 = vrcp.f32 %v1074_v8 }
 0x42b   : > { %v2746_v2 = vpop.eup %2745 }
 0x42c   : > { %v1083_v4 = vmul.f32 %v2746_v2, %v2742_v60  ;;  %v2748_v6 = vpop.eup %2747 }
 0x42d   : > { %v1082_v12 = vmul.f32 %v2748_v6, %v3202_v14 }
 0x42e   : > { %v2750_v7 = vpop.eup %2749 }
 0x42f   : > { %v1084_v62 = vadd.f32 %v1083_v4, %v1082_v12 }
 0x431   : > { %2751 = vtanh.f32 %v1084_v62  ;;  %v3249_v20 = vsel %vm1091_vm11, %v1084_v62, %v3202_v14  ;;  %v2053_v14 = vld [vmem:[%s3097_s6 + $0x80] sm:$0xff] }
 0x43b   : > { %v2752_v16 = vpop.eup %2751 }
 0x43c   : > { %v1086_v24 = vmul.f32 %v2752_v16, %v2750_v7  ;;  %v1272_v7 = vpop.permute.xlu0 %1271 }
 0x43d   : > { %vm1273_vm12 = vcmp.eq.s32.totalorder %v1272_v7, 1  ;;  %v1454_v7 = vpop.permute.xlu1 %1453 }
 0x43e   : > { %v3252_v25 = vsel %vm1091_vm11, %v1086_v24, %v3205_v22  ;;  %v2054_v22 = vld [vmem:[%s3097_s6 + $0x88] sm:$0xff]  ;;  %vm1455_vm13 = vcmp.eq.s32.totalorder %v1454_v7, 1  ;;  %v1836_v7 = vld [vmem:[%s3399_s10 + $0x78] sm:$0xff] }
 0x43f   : > { %1164 = vmatmul.mubr.f32.vlgmr.msra.gmra.mrb[8].mxu0 %v3252_v25  ;;  %1235 = vmatmul.mubr.f32.vlgmr.msra.gmra.mrb[8].mxu1 %v3252_v25 }
 0x440   : > { %2462 = vmatpush1.bf16.msra.mxu0 %v2887_v9  ;;  %2494 = vmatpush1.bf16.msra.mxu1 %v2912_v26 }
 0x441   : > { %2464 = vmatprep.subr.bf16.mxu0 %v2889_v10  ;;  %2496 = vmatprep.subr.bf16.mxu1 %v2927_v34 }
 0x442   : > { %1345 = vmatprep.mubr.f32.mxu0 %v2825_v0  ;;  %1416 = vmatprep.mubr.f32.mxu1 %v2825_v0 }
 0x444   : > { %2466 = vmatpush1.bf16.msra.mxu0 %v2897_v15  ;;  %2498 = vmatpush1.bf16.msra.mxu1 %v2932_v38 }
 0x445   : > { %2468 = vmatprep.subr.bf16.mxu0 %v2902_v18  ;;  %2500 = vmatprep.subr.bf16.mxu1 %v2944_v46 }
 0x448   : > { %2470 = vmatpush1.bf16.msra.mxu0 %v2915_v27  ;;  %2502 = vmatpush1.bf16.msra.mxu1 %v2951_v49 }
 0x449   : > { %2472 = vmatprep.subr.bf16.mxu0 %v2922_v31  ;;  %2504 = vmatprep.subr.bf16.mxu1 %v2957_v53 }
 0x44c   : > { %2474 = vmatpush1.bf16.msra.mxu0 %v2940_v43  ;;  %2506 = vmatpush1.bf16.msra.mxu1 %v2974_v63 }
 0x44d   : > { %2476 = vmatprep.subr.bf16.mxu0 %v2947_v47  ;;  %2508 = vmatprep.subr.bf16.mxu1 %v2978_v3 }
 0x450   : > { %2478 = vmatpush1.bf16.msra.mxu0 %v2963_v56  ;;  %2510 = vmatpush1.bf16.msra.mxu1 %v2999_v17 }
 0x451   : > { %2480 = vmatprep.subr.bf16.mxu0 %v2968_v59  ;;  %2512 = vmatprep.subr.bf16.mxu1 %v3005_v21 }
 0x454   : > { %2482 = vmatpush1.bf16.msra.mxu0 %v2990_v11  ;;  %2514 = vmatpush1.bf16.msra.mxu1 %v3023_v36 }
 0x455   : > { %2484 = vmatprep.subr.bf16.mxu0 %v2994_v13  ;;  %2516 = vmatprep.subr.bf16.mxu1 %v3027_v39 }
 0x458   : > { %2486 = vmatpush1.bf16.msra.mxu0 %v3015_v30  ;;  %2518 = vmatpush1.bf16.msra.mxu1 %v3039_v48 }
 0x459   : > { %2488 = vmatprep.subr.bf16.mxu0 %v3018_v32  ;;  %2520 = vmatprep.subr.bf16.mxu1 %v3043_v51 }
 0x45c   : > { %2490 = vmatpush1.bf16.msra.mxu0 %v3035_v45  ;;  %2522 = vmatpush1.bf16.msra.mxu1 %v3050_v55 }
 0x45d   : > { %2524 = vmatprep.subr.bf16.mxu0 %v2882_v5  ;;  %2556 = vmatprep.subr.bf16.mxu1 %v2908_v23 }
 0x512   : > { %v1165_v28 = vpop.f32.mrb[8].mxu0  ;;  %v1236_v29 = vpop.f32.mrb[8].mxu1 }
 0x513   : > { %v1241_v33 = vadd.f32 %v2053_v14, %v1165_v28  ;;  %v1167_v35 = vpop.f32.mrb[9].mxu0  ;;  %v1238_v19 = vpop.f32.mrb[9].mxu1  ;;  %v1243_v42 = vadd.f32 %v2055_v41, %v1236_v29 }
 0x514   : > { %v1242_v37 = vadd.f32 %v2054_v22, %v1167_v35  ;;  %v1244_v50 = vadd.f32 %v2056_v44, %v1238_v19  ;;  %v2062_v44 = vld [vmem:[%s3097_s6 + $0xb0] sm:$0xff] }
 0x515   : > { %v2057_v40 = vmul.f32 -1.442695, %v1241_v33  ;;  %v2059_v52 = vmul.f32 -1.442695, %v1243_v42 }
 0x516   : > { %v2058_v1 = vmul.f32 -1.442695, %v1242_v37 }
 0x517   : > { %2753 = vpow2.f32 %v2057_v40 }
 0x518   : > { %2755 = vpow2.f32 %v2058_v1 }
 0x519   : > { %2757 = vtanh.f32 %v1244_v50 }
 0x51a   : > { %2759 = vpow2.f32 %v2059_v52  ;;  %v2063_v52 = vld [vmem:[%s3097_s6 + $0xb8] sm:$0xff] }
 0x521   : > { %v2754_v54 = vpop.eup %2753 }
 0x522   : > { %v1254_v58 = vadd.f32 1.0, %v2754_v54  ;;  %v2756_v60 = vpop.eup %2755 }
 0x523   : > { %v1255_v61 = vadd.f32 1.0, %v2756_v60  ;;  %v2758_v2 = vpop.eup %2757 }
 0x524   : > { %2761 = vrcp.f32 %v1254_v58  ;;  %v2760_v4 = vpop.eup %2759 }
 0x525   : > { %2763 = vrcp.f32 %v1255_v61  ;;  %v1256_v57 = vadd.f32 1.0, %v2760_v4 }
 0x527   : > { %2765 = vrcp.f32 %v1256_v57 }
 0x52e   : > { %v2762_v6 = vpop.eup %2761 }
 0x52f   : > { %v1265_v8 = vmul.f32 %v2762_v6, %v2758_v2  ;;  %v2764_v12 = vpop.eup %2763 }
 0x530   : > { %v1264_v62 = vmul.f32 %v2764_v12, %v3249_v20 }
 0x531   : > { %v2766_v14 = vpop.eup %2765 }
 0x532   : > { %v1266_v16 = vadd.f32 %v1265_v8, %v1264_v62 }
 0x534   : > { %2767 = vtanh.f32 %v1266_v16  ;;  %v3296_v24 = vsel %vm1273_vm12, %v1266_v16, %v3249_v20  ;;  %v2060_v20 = vld [vmem:[%s3097_s6 + $0xa0] sm:$0xff] }
 0x53e   : > { %v2768_v22 = vpop.eup %2767 }
 0x53f   : > { %v1268_v28 = vmul.f32 %v2768_v22, %v2766_v14 }
 0x541   : > { %v3299_v29 = vsel %vm1273_vm12, %v1268_v28, %v3252_v25  ;;  %v2061_v25 = vld [vmem:[%s3097_s6 + $0xa8] sm:$0xff] }
 0x542   : > { %1346 = vmatmul.mubr.f32.vlgmr.msra.gmra.mrb[10].mxu0 %v3299_v29  ;;  %1417 = vmatmul.mubr.f32.vlgmr.msra.gmra.mrb[10].mxu1 %v3299_v29 }
 0x543   : > { %2526 = vmatpush1.bf16.msra.mxu0 %v2887_v9  ;;  %2558 = vmatpush1.bf16.msra.mxu1 %v2912_v26 }
 0x544   : > { %2528 = vmatprep.subr.bf16.mxu0 %v2889_v10  ;;  %2560 = vmatprep.subr.bf16.mxu1 %v2927_v34 }
 0x545   : > { %1527 = vmatprep.mubr.f32.mxu0 %v2825_v0  ;;  %1598 = vmatprep.mubr.f32.mxu1 %v2825_v0 }
 0x547   : > { %2530 = vmatpush1.bf16.msra.mxu0 %v2897_v15  ;;  %2562 = vmatpush1.bf16.msra.mxu1 %v2932_v38 }
 0x548   : > { %2532 = vmatprep.subr.bf16.mxu0 %v2902_v18  ;;  %2564 = vmatprep.subr.bf16.mxu1 %v2944_v46 }
 0x54b   : > { %2534 = vmatpush1.bf16.msra.mxu0 %v2915_v27  ;;  %2566 = vmatpush1.bf16.msra.mxu1 %v2951_v49 }
 0x54c   : > { %2536 = vmatprep.subr.bf16.mxu0 %v2922_v31  ;;  %2568 = vmatprep.subr.bf16.mxu1 %v2957_v53 }
 0x54f   : > { %2538 = vmatpush1.bf16.msra.mxu0 %v2940_v43  ;;  %2570 = vmatpush1.bf16.msra.mxu1 %v2974_v63 }
 0x550   : > { %2540 = vmatprep.subr.bf16.mxu0 %v2947_v47  ;;  %2572 = vmatprep.subr.bf16.mxu1 %v2978_v3 }
 0x553   : > { %2542 = vmatpush1.bf16.msra.mxu0 %v2963_v56  ;;  %2574 = vmatpush1.bf16.msra.mxu1 %v2999_v17 }
 0x554   : > { %2544 = vmatprep.subr.bf16.mxu0 %v2968_v59  ;;  %2576 = vmatprep.subr.bf16.mxu1 %v3005_v21 }
 0x557   : > { %2546 = vmatpush1.bf16.msra.mxu0 %v2990_v11  ;;  %2578 = vmatpush1.bf16.msra.mxu1 %v3023_v36 }
 0x558   : > { %2548 = vmatprep.subr.bf16.mxu0 %v2994_v13  ;;  %2580 = vmatprep.subr.bf16.mxu1 %v3027_v39 }
 0x55b   : > { %2550 = vmatpush1.bf16.msra.mxu0 %v3015_v30  ;;  %2582 = vmatpush1.bf16.msra.mxu1 %v3039_v48 }
 0x55c   : > { %2552 = vmatprep.subr.bf16.mxu0 %v3018_v32  ;;  %2584 = vmatprep.subr.bf16.mxu1 %v3043_v51 }
 0x55f   : > { %2554 = vmatpush1.bf16.msra.mxu0 %v3035_v45  ;;  %2586 = vmatpush1.bf16.msra.mxu1 %v3050_v55 }
 0x560   : > { %2588 = vmatprep.subr.bf16.mxu0 %v2882_v5  ;;  %2620 = vmatprep.subr.bf16.mxu1 %v2908_v23 }
 0x615   : > { %v1347_v33 = vpop.f32.mrb[10].mxu0  ;;  %v1418_v35 = vpop.f32.mrb[10].mxu1 }
 0x616   : > { %v1423_v19 = vadd.f32 %v2060_v20, %v1347_v33  ;;  %v1349_v37 = vpop.f32.mrb[11].mxu0  ;;  %v1420_v40 = vpop.f32.mrb[11].mxu1  ;;  %v1425_v50 = vadd.f32 %v2062_v44, %v1418_v35  ;;  %v1821_v35 = vld [vmem:[%s3399_s10] sm:$0xff] }
 0x617   : > { %v1424_v1 = vadd.f32 %v2061_v25, %v1349_v37  ;;  %v1426_v54 = vadd.f32 %v2063_v52, %v1420_v40  ;;  %v2827_v40 = vmov 0.0|0.0   ;;  %v1825_v44 = vld [vmem:[%s3399_s10 + $0x20] sm:$0xff] }
 0x618   : > { %v2064_v41 = vmul.f32 -1.442695, %v1423_v19  ;;  %v2066_v5 = vmul.f32 -1.442695, %v1425_v50  ;;  %v1822_v19 = vld [vmem:[%s3399_s10 + $0x8] sm:$0xff] }
 0x619   : > { %v2065_v42 = vmul.f32 -1.442695, %v1424_v1  ;;  %v2652_v37 = vpack.c.bf16 %v1822_v19, %v1821_v35  ;;  %v1823_v1 = vld [vmem:[%s3399_s10 + $0x10] sm:$0xff]  ;;  %v1826_v50 = vld [vmem:[%s3399_s10 + $0x28] sm:$0xff] }
 0x61a   : > { %2769 = vpow2.f32 %v2064_v41  ;;  %v1824_v41 = vld [vmem:[%s3399_s10 + $0x18] sm:$0xff]  ;;  %v2658_v52 = vpack.c.bf16 %v1826_v50, %v1825_v44 }
 0x61b   : > { %2771 = vpow2.f32 %v2065_v42  ;;  %v2655_v42 = vpack.c.bf16 %v1824_v41, %v1823_v1 }
 0x61c   : > { %2773 = vtanh.f32 %v1426_v54  ;;  %v1827_v54 = vld [vmem:[%s3399_s10 + $0x30] sm:$0xff] }
 0x61d   : > { %2775 = vpow2.f32 %v2066_v5  ;;  %v1828_v5 = vld [vmem:[%s3399_s10 + $0x38] sm:$0xff] }
 0x624   : > { %v2770_v58 = vpop.eup %2769 }
 0x625   : > { %v1436_v60 = vadd.f32 1.0, %v2770_v58  ;;  %v2772_v23 = vpop.eup %2771  ;;  %v2661_v58 = vpack.c.bf16 %v1828_v5, %v1827_v54 }
 0x626   : > { %v1437_v61 = vadd.f32 1.0, %v2772_v23  ;;  %v2774_v2 = vpop.eup %2773  ;;  %v1830_v23 = vld [vmem:[%s3399_s10 + $0x48] sm:$0xff] }
 0x627   : > { %2777 = vrcp.f32 %v1436_v60  ;;  %v2776_v4 = vpop.eup %2775  ;;  %v1829_v60 = vld [vmem:[%s3399_s10 + $0x40] sm:$0xff] }
 0x628   : > { %2779 = vrcp.f32 %v1437_v61  ;;  %v1438_v57 = vadd.f32 1.0, %v2776_v4  ;;  %v2664_v61 = vpack.c.bf16 %v1830_v23, %v1829_v60  ;;  %v1832_v4 = vld [vmem:[%s3399_s10 + $0x58] sm:$0xff] }
 0x62a   : > { %2781 = vrcp.f32 %v1438_v57 }
 0x631   : > { %v2778_v6 = vpop.eup %2777 }
 0x632   : > { %v1447_v8 = vmul.f32 %v2778_v6, %v2774_v2  ;;  %v2780_v12 = vpop.eup %2779  ;;  %v1831_v2 = vld [vmem:[%s3399_s10 + $0x50] sm:$0xff]  ;;  %v1833_v6 = vld [vmem:[%s3399_s10 + $0x60] sm:$0xff] }
 0x633   : > { %v1446_v62 = vmul.f32 %v2780_v12, %v3296_v24  ;;  %v1834_v12 = vld [vmem:[%s3399_s10 + $0x68] sm:$0xff] }
 0x634   : > { %v2782_v22 = vpop.eup %2781  ;;  %v2670_v57 = vpack.c.bf16 %v1834_v12, %v1833_v6 }
 0x635   : > { %v1448_v16 = vadd.f32 %v1447_v8, %v1446_v62  ;;  %v2667_v8 = vpack.c.bf16 %v1832_v4, %v1831_v2  ;;  %v1835_v62 = vld [vmem:[%s3399_s10 + $0x70] sm:$0xff] }
 0x637   : > { %2783 = vtanh.f32 %v1448_v16  ;;  %v3343_v14 = vsel %vm1455_vm13, %v1448_v16, %v3296_v24  ;;  %v2673_v16 = vpack.c.bf16 %v1836_v7, %v1835_v62 }
 0x641   : > { %v2784_v28 = vpop.eup %2783 }
 0x642   : > { %v1450_v20 = vmul.f32 %v2784_v28, %v2782_v22  ;;  %v2075_v22 = vld [vmem:[%s3097_s6 + $0xe8] sm:$0xff] }
 0x644   : > { %v3346_v25 = vsel %vm1455_vm13, %v1450_v20, %v3299_v29 }
 0x645   : > { %1528 = vmatmul.mubr.f32.vlgmr.msra.gmra.mrb[12].mxu0 %v3346_v25  ;;  %1599 = vmatmul.mubr.f32.vlgmr.msra.gmra.mrb[12].mxu1 %v3346_v25 }
 0x646   : > { %2590 = vmatpush1.bf16.msra.mxu0 %v2887_v9  ;;  %2622 = vmatpush1.bf16.msra.mxu1 %v2912_v26  ;;  %v2067_v9 = vld [vmem:[%s3097_s6 + $0xc0] sm:$0xff] }
 0x647   : > { %2592 = vmatprep.subr.bf16.mxu0 %v2889_v10  ;;  %2624 = vmatprep.subr.bf16.mxu1 %v2927_v34  ;;  %v2068_v10 = vld [vmem:[%s3097_s6 + $0xc8] sm:$0xff] }
 0x648   : > { %1709 = vmatprep.mubr.f32.mxu0 %v2825_v0  ;;  %1780 = vmatprep.mubr.f32.mxu1 %v2825_v0 }
 0x64a   : > { %2594 = vmatpush1.bf16.msra.mxu0 %v2897_v15  ;;  %2626 = vmatpush1.bf16.msra.mxu1 %v2932_v38 }
 0x64b   : > { %2596 = vmatprep.subr.bf16.mxu0 %v2902_v18  ;;  %2628 = vmatprep.subr.bf16.mxu1 %v2944_v46  ;;  %v2069_v46 = vld [vmem:[%s3097_s6 + $0xd0] sm:$0xff] }
 0x64e   : > { %2598 = vmatpush1.bf16.msra.mxu0 %v2915_v27  ;;  %2630 = vmatpush1.bf16.msra.mxu1 %v2951_v49  ;;  %v2070_v49 = vld [vmem:[%s3097_s6 + $0xd8] sm:$0xff] }
 0x64f   : > { %2600 = vmatprep.subr.bf16.mxu0 %v2922_v31  ;;  %2632 = vmatprep.subr.bf16.mxu1 %v2957_v53 }
 0x652   : > { %2602 = vmatpush1.bf16.msra.mxu0 %v2940_v43  ;;  %2634 = vmatpush1.bf16.msra.mxu1 %v2974_v63 }
 0x653   : > { %2604 = vmatprep.subr.bf16.mxu0 %v2947_v47  ;;  %2636 = vmatprep.subr.bf16.mxu1 %v2978_v3 }
 0x656   : > { %2606 = vmatpush1.bf16.msra.mxu0 %v2963_v56  ;;  %2638 = vmatpush1.bf16.msra.mxu1 %v2999_v17 }
 0x657   : > { %2608 = vmatprep.subr.bf16.mxu0 %v2968_v59  ;;  %2640 = vmatprep.subr.bf16.mxu1 %v3005_v21 }
 0x65a   : > { %2610 = vmatpush1.bf16.msra.mxu0 %v2990_v11  ;;  %2642 = vmatpush1.bf16.msra.mxu1 %v3023_v36 }
 0x65b   : > { %2612 = vmatprep.subr.bf16.mxu0 %v2994_v13  ;;  %2644 = vmatprep.subr.bf16.mxu1 %v3027_v39  ;;  %v1636_v39 = vpop.permute.xlu0 %1635 }
 0x65c   : > { %vm1637_vm14 = vcmp.eq.s32.totalorder %v1636_v39, 1 }
 0x65e   : > { %2614 = vmatpush1.bf16.msra.mxu0 %v3015_v30  ;;  %2646 = vmatpush1.bf16.msra.mxu1 %v3039_v48 }
 0x65f   : > { %2616 = vmatprep.subr.bf16.mxu0 %v3018_v32  ;;  %2648 = vmatprep.subr.bf16.mxu1 %v3043_v51 }
 0x662   : > { %2618 = vmatpush1.bf16.msra.mxu0 %v3035_v45  ;;  %2650 = vmatpush1.bf16.msra.mxu1 %v3050_v55 }
 0x663   : > { %2651 = vmatprep.subr.bf16.mxu0 %v2827_v40 }
 0x718   : > { %v1529_v15 = vpop.f32.mrb[12].mxu0  ;;  %v1600_v18 = vpop.f32.mrb[12].mxu1 }
 0x719   : > { %v1605_v26 = vadd.f32 %v2067_v9, %v1529_v15  ;;  %v1531_v27 = vpop.f32.mrb[13].mxu0  ;;  %v1602_v31 = vpop.f32.mrb[13].mxu1  ;;  %v1607_v47 = vadd.f32 %v2069_v46, %v1600_v18 }
 0x71a   : > { %v1606_v34 = vadd.f32 %v2068_v10, %v1531_v27  ;;  %v1608_v53 = vadd.f32 %v2070_v49, %v1602_v31  ;;  %v2077_v31 = vld [vmem:[%s3097_s6 + $0xf8] sm:$0xff] }
 0x71b   : > { %v2071_v38 = vmul.f32 -1.442695, %v1605_v26  ;;  %v2073_v56 = vmul.f32 -1.442695, %v1607_v47  ;;  %v2076_v26 = vld [vmem:[%s3097_s6 + $0xf0] sm:$0xff] }
 0x71c   : > { %v2072_v43 = vmul.f32 -1.442695, %v1606_v34 }
 0x71d   : > { %2785 = vpow2.f32 %v2071_v38 }
 0x71e   : > { %2787 = vpow2.f32 %v2072_v43 }
 0x71f   : > { %2789 = vtanh.f32 %v1608_v53 }
 0x720   : > { %2791 = vpow2.f32 %v2073_v56 }
 0x727   : > { %v2786_v59 = vpop.eup %2785 }
 0x728   : > { %v1618_v63 = vadd.f32 1.0, %v2786_v59  ;;  %v2788_v3 = vpop.eup %2787 }
 0x729   : > { %v1619_v11 = vadd.f32 1.0, %v2788_v3  ;;  %v2790_v13 = vpop.eup %2789 }
 0x72a   : > { %2793 = vrcp.f32 %v1618_v63  ;;  %v2792_v17 = vpop.eup %2791 }
 0x72b   : > { %2795 = vrcp.f32 %v1619_v11  ;;  %v1620_v36 = vadd.f32 1.0, %v2792_v17 }
 0x72d   : > { %2797 = vrcp.f32 %v1620_v36 }
 0x734   : > { %v2794_v21 = vpop.eup %2793 }
 0x735   : > { %v1629_v30 = vmul.f32 %v2794_v21, %v2790_v13  ;;  %v2796_v32 = vpop.eup %2795 }
 0x736   : > { %v1628_v45 = vmul.f32 %v2796_v32, %v3343_v14 }
 0x737   : > { %v2798_v55 = vpop.eup %2797 }
 0x738   : > { %v1630_v48 = vadd.f32 %v1629_v30, %v1628_v45  ;;  %v1818_v30 = vpop.permute.xlu1 %1817  ;;  %v2081_v45 = vld [vmem:[%s289_s13] ss:$0 sm:$0xff] }
 0x739   : > { %vm1819_vm0 = vcmp.eq.s32.totalorder %v1818_v30, 1 }
 0x73a   : > { %2799 = vtanh.f32 %v1630_v48  ;;  %v3388_v51 = vsel %vm1637_vm14, %v1630_v48, %v3343_v14  ;;  %v2074_v14 = vld [vmem:[%s3097_s6 + $0xe0] sm:$0xff] }
 0x744   : > { %v2800_v24 = vpop.eup %2799 }
 0x745   : > { %v1632_v29 = vmul.f32 %v2800_v24, %v2798_v55 }
 0x747   : > { %v3391_v33 = vsel %vm1637_vm14, %v1632_v29, %v3346_v25 }
 0x748   : > { %1710 = vmatmul.mubr.f32.vlgmr.msra.gmra.mrb[14].mxu0 %v3391_v33  ;;  %1781 = vmatmul.mubr.f32.vlgmr.msra.gmra.mrb[14].mxu1 %v3391_v33 }
 0x749   : > { %2653 = vmatpush3.bf16.msra.mxu0 %v2652_v37  ;;  %2136 = vmatprep.mubr.msk.f32.mxu0 %vm2828_vm15, %v2825_v0 }
 0x74a   : > { %2654 = vmatprep.subr.bf16.mxu0 %v2827_v40 }
 0x74d   : > { %2656 = vmatpush3.bf16.msra.mxu0 %v2655_v42 }
 0x74e   : > { %2657 = vmatprep.subr.bf16.mxu0 %v2827_v40 }
 0x751   : > { %2659 = vmatpush3.bf16.msra.mxu0 %v2658_v52 }
 0x752   : > { %2660 = vmatprep.subr.bf16.mxu0 %v2827_v40 }
 0x755   : > { %2662 = vmatpush3.bf16.msra.mxu0 %v2661_v58 }
 0x756   : > { %2663 = vmatprep.subr.bf16.mxu0 %v2827_v40 }
 0x759   : > { %2665 = vmatpush3.bf16.msra.mxu0 %v2664_v61 }
 0x75a   : > { %2666 = vmatprep.subr.bf16.mxu0 %v2827_v40 }
 0x75d   : > { %2668 = vmatpush3.bf16.msra.mxu0 %v2667_v8 }
 0x75e   : > { %2669 = vmatprep.subr.bf16.mxu0 %v2827_v40 }
 0x761   : > { %2671 = vmatpush3.bf16.msra.mxu0 %v2670_v57 }
 0x762   : > { %2672 = vmatprep.subr.bf16.mxu0 %v2827_v40 }
 0x765   : > { %2674 = vmatpush3.bf16.msra.mxu0 %v2673_v16 }
 0x81b   : > { %v1711_v28 = vpop.f32.mrb[14].mxu0  ;;  %v1782_v20 = vpop.f32.mrb[14].mxu1 }
 0x81c   : > { %v1787_v25 = vadd.f32 %v2074_v14, %v1711_v28  ;;  %v1713_v9 = vpop.f32.mrb[15].mxu0  ;;  %v1784_v10 = vpop.f32.mrb[15].mxu1  ;;  %v1789_v27 = vadd.f32 %v2076_v26, %v1782_v20 }
 0x81d   : > { %v1788_v15 = vadd.f32 %v2075_v22, %v1713_v9  ;;  %v1790_v34 = vadd.f32 %v2077_v31, %v1784_v10 }
 0x81e   : > { %v2078_v0 = vmul.f32 -1.442695, %v1787_v25  ;;  %v2080_v38 = vmul.f32 -1.442695, %v1789_v27 }
 0x81f   : > { %v2079_v18 = vmul.f32 -1.442695, %v1788_v15 }
 0x820   : > { %2801 = vpow2.f32 %v2078_v0 }
 0x821   : > { %2803 = vpow2.f32 %v2079_v18 }
 0x822   : > { %2805 = vtanh.f32 %v1790_v34 }
 0x823   : > { %2807 = vpow2.f32 %v2080_v38 }
 0x82a   : > { %v2802_v43 = vpop.eup %2801 }
 0x82b   : > { %v1800_v46 = vadd.f32 1.0, %v2802_v43  ;;  %v2804_v47 = vpop.eup %2803 }
 0x82c   : > { %v1801_v49 = vadd.f32 1.0, %v2804_v47  ;;  %v2806_v53 = vpop.eup %2805 }
 0x82d   : > { %2809 = vrcp.f32 %v1800_v46  ;;  %v2808_v56 = vpop.eup %2807 }
 0x82e   : > { %2811 = vrcp.f32 %v1801_v49  ;;  %v1802_v11 = vadd.f32 1.0, %v2808_v56 }
 0x830   : > { %2813 = vrcp.f32 %v1802_v11 }
 0x837   : > { %v2810_v59 = vpop.eup %2809 }
 0x838   : > { %v1811_v63 = vmul.f32 %v2810_v59, %v2806_v53  ;;  %v2812_v3 = vpop.eup %2811 }
 0x839   : > { %v1810_v13 = vmul.f32 %v2812_v3, %v3388_v51 }
 0x83a   : > { %v2814_v21 = vpop.eup %2813 }
 0x83b   : > { %v1812_v17 = vadd.f32 %v1811_v63, %v1810_v13 }
 0x83d   : > { %2815 = vtanh.f32 %v1812_v17 }
 0x847   : > { %v2816_v32 = vpop.eup %2815 }
 0x848   : > { %v1814_v36 = vmul.f32 %v2816_v32, %v2814_v21 }
 0x84a   : > { %v1820_v39 = vsel %vm1819_vm0, %v1814_v36, %v3391_v33 }
 0x84b   : > { %2137 = vmatmul.mubr.f32.vlgmr.msra.gmra.mrb[16].mxu0 %v1820_v39 }
 0x91e   : > { %v1910_v48 = vpop.f32.mrb[16].mxu0 }
 0x91f   : > { %v1911_v51 = vadd.f32 %v2081_v45, %v1910_v48  ;;  %v2138_v55 = vpop.f32.mrb[17].mxu0 }
 0x921   : > { %1915 = vst.msk [vmem:[%s293_s16] sm:$0xff] %vm1914_vm1, %v1911_v51 }
 0x922 PF: > { %s15_s18 = sadd.s32 1, %s2823_s18  }
 0x923   : > { %p12_p4 = scmp.ge.s32.totalorder %s15_s18, 4  }
 0x925   :  { %14 = sbr.rel (!%p12_p4) target bundleno = 1 (0x1), region = 89 }

// kernel: two_tower_forward.1
= control target key start
LH: loop header
LB: loop body
LE: loop exit
PB: predicated region body
PF: predicated region fallthrough
CT: control target
= control target key end

     0   :  { %s2859_s18 = smov 0   ;;  %s3436_s0 = inlined_call_operand.vmem [shape: s32[2,8,1], index: 0, kind: input, shape index: {}]   ;;  %s3437_s1 = inlined_call_operand.vmem [shape: f32[2,8,8,512], index: 1, kind: input, shape index: {}]   ;;  %s3438_s2 = inlined_call_operand.vmem [shape: f32[2,128,512], index: 2, kind: input, shape index: {}]   ;;  %s3439_s3 = inlined_call_operand.vmem [shape: f32[2,128,16], index: 3, kind: input, shape index: {}]   ;;  %s3440_s4 = inlined_call_operand.vmem [shape: f32[2,1,16], index: 4, kind: input, shape index: {}]   ;;  %s3441_s5 = inlined_call_operand.vmem [shape: f32[2,8,16], index: 5, kind: output, shape index: {}]  }
   0x1 LB: > { %s2014_s19 = sadd.s32 4294967295, %s2823_s18   ;;  %p2018_p0 = scmp.ge.s32.totalorder %s2823_s18, 1  ;;  %s2823_s18 = sphi %s2859_s18, %s15_s18  }
   0x2   : > { %p224_p1 = scmp.lt.s32.totalorder %s2823_s18, 3 }
   0x4   : > { %p225_p2 = pnand %p2018_p0, %p224_p1 }
   0x5   : > { %p268_p3 = scmp.lt.s32.totalorder (!%p225_p2), %s2014_s19, 1  ;;  %v2825_v0 = vmov (!%p225_p2), 0.0   ;;  %v2826_v1 = vmov (!%p225_p2), 0   ;;  %vm2828_vm15 = vmmov (!%p225_p2), 0  }
   0x6   : > { %228 = sbr.rel (%p225_p2) target bundleno = 2338 (0x922), region = 40  ;;  %435 = vmatprep.mubr.f32.mxu0 (!%p225_p2), %v2825_v0  ;;  %506 = vmatprep.mubr.f32.mxu1 (!%p225_p2), %v2825_v0 }
   0x7   : > { %2687 = vset.pattern.permute.xlu0 (!%p225_p2), %v2826_v1  ;;  %2688 = vset.pattern.permute.xlu1 (!%p225_p2), %v2826_v1 }
   0xd   : > { %s3443_s19 = smov (!%p268_p3, %s2014_s19), 1 }
   0xe   : > { %s2085_s20 = sshll.u32 %s3443_s19, 9  ;;  %s2019_s24 = sshll.u32 %s3443_s19, 3 }
   0xf   : > { %s2877_s23 = scalar_lea.vmem %s3438_s2, %s2085_s20  ;;  %s271_s27 = scalar_lea.vmem %s3436_s0, %s2019_s24 }
  0x10   : > { %v295_v2 = vld [vmem:[%s2877_s23 + $0x8] sm:$0xff]  ;;  %v294_v4 = vld [vmem:[%s2877_s23] sm:$0xff]  ;;  %v297_v20 = vld [vmem:[%s2877_s23 + $0x18] sm:$0xff]  ;;  %s2084_s28 = sshll.u32 %s3443_s19, 8  ;;  %s2086_s7 = sshll.u32 %s3443_s19, 7 }
  0x11   : > { %v299_v3 = vld [vmem:[%s2877_s23 + $0x28] sm:$0xff]  ;;  %v298_v6 = vld [vmem:[%s2877_s23 + $0x20] sm:$0xff]  ;;  %v301_v21 = vld [vmem:[%s2877_s23 + $0x38] sm:$0xff]  ;;  %s3097_s6 = scalar_lea.vmem %s3437_s1, %s2084_s28  ;;  %s3399_s10 = scalar_lea.vmem %s3439_s3, %s2086_s7 }
  0x12   : > { %v2882_v5 = vpack.c.bf16 %v299_v3, %v295_v2  ;;  %v303_v7 = vld [vmem:[%s2877_s23 + $0x48] sm:$0xff]  ;;  %v2887_v9 = vpack.c.bf16 %v298_v6, %v294_v4  ;;  %v302_v11 = vld [vmem:[%s2877_s23 + $0x40] sm:$0xff]  ;;  %v2908_v23 = vpack.c.bf16 %v301_v21, %v297_v20  ;;  %v296_v24 = vld [vmem:[%s2877_s23 + $0x10] sm:$0xff]  ;;  %s289_s13 = scalar_lea.vmem %s3440_s4, %s3443_s19  ;;  %s293_s16 = scalar_lea.vmem %s3441_s5, %s2019_s24 }
  0x13   : > { %v307_v8 = vld [vmem:[%s2877_s23 + $0x68] sm:$0xff]  ;;  %v306_v12 = vld [vmem:[%s2877_s23 + $0x60] sm:$0xff]  ;;  %v300_v25 = vld [vmem:[%s2877_s23 + $0x30] sm:$0xff] }
  0x14   : > { %v2889_v10 = vpack.c.bf16 %v307_v8, %v303_v7  ;;  %v311_v13 = vld [vmem:[%s2877_s23 + $0x88] sm:$0xff]  ;;  %2140 = vmatprep.subr.bf16.mxu0 %v2882_v5  ;;  %v2897_v15 = vpack.c.bf16 %v306_v12, %v302_v11  ;;  %v310_v16 = vld [vmem:[%s2877_s23 + $0x80] sm:$0xff]  ;;  %v2912_v26 = vpack.c.bf16 %v300_v25, %v296_v24  ;;  %2172 = vmatprep.subr.bf16.mxu1 %v2908_v23  ;;  %v305_v28 = vld [vmem:[%s2877_s23 + $0x58] sm:$0xff] }
  0x15   : > { %v315_v14 = vld [vmem:[%s2877_s23 + $0xa8] sm:$0xff]  ;;  %2142 = vmatpush1.bf16.msra.mxu0 %v2887_v9  ;;  %v314_v17 = vld [vmem:[%s2877_s23 + $0xa0] sm:$0xff]  ;;  %v309_v29 = vld [vmem:[%s2877_s23 + $0x78] sm:$0xff] }
  0x16   : > { %2144 = vmatprep.subr.bf16.mxu0 %v2889_v10  ;;  %v2902_v18 = vpack.c.bf16 %v315_v14, %v311_v13  ;;  %v319_v19 = vld [vmem:[%s2877_s23 + $0xc8] sm:$0xff]  ;;  %v2915_v27 = vpack.c.bf16 %v314_v17, %v310_v16  ;;  %v304_v30 = vld [vmem:[%s2877_s23 + $0x50] sm:$0xff]  ;;  %v318_v32 = vld [vmem:[%s2877_s23 + $0xc0] sm:$0xff]  ;;  %2174 = vmatpush1.bf16.msra.mxu1 %v2912_v26  ;;  %v2927_v34 = vpack.c.bf16 %v309_v29, %v305_v28 }
  0x17   : > { %v323_v22 = vld [vmem:[%s2877_s23 + $0xe8] sm:$0xff]  ;;  %v322_v33 = vld [vmem:[%s2877_s23 + $0xe0] sm:$0xff]  ;;  %v308_v35 = vld [vmem:[%s2877_s23 + $0x70] sm:$0xff] }
  0x18   : > { %v2922_v31 = vpack.c.bf16 %v323_v22, %v319_v19  ;;  %v327_v36 = vld [vmem:[%s2877_s23 + $0x108] sm:$0xff]  ;;  %v2932_v38 = vpack.c.bf16 %v308_v35, %v304_v30  ;;  %v313_v39 = vld [vmem:[%s2877_s23 + $0x98] sm:$0xff]  ;;  %2176 = vmatprep.subr.bf16.mxu1 %v2927_v34  ;;  %v312_v41 = vld [vmem:[%s2877_s23 + $0x90] sm:$0xff]  ;;  %v2940_v43 = vpack.c.bf16 %v322_v33, %v318_v32 }
  0x19   : > { %2146 = vmatpush1.bf16.msra.mxu0 %v2897_v15  ;;  %v331_v37 = vld [vmem:[%s2877_s23 + $0x128] sm:$0xff]  ;;  %v317_v40 = vld [vmem:[%s2877_s23 + $0xb8] sm:$0xff]  ;;  %v316_v42 = vld [vmem:[%s2877_s23 + $0xb0] sm:$0xff] }
  0x1a   : > { %2148 = vmatprep.subr.bf16.mxu0 %v2902_v18  ;;  %v326_v44 = vld [vmem:[%s2877_s23 + $0x100] sm:$0xff]  ;;  %v2944_v46 = vpack.c.bf16 %v317_v40, %v313_v39  ;;  %v2947_v47 = vpack.c.bf16 %v331_v37, %v327_v36  ;;  %2178 = vmatpush1.bf16.msra.mxu1 %v2932_v38  ;;  %v335_v48 = vld [vmem:[%s2877_s23 + $0x148] sm:$0xff]  ;;  %v2951_v49 = vpack.c.bf16 %v316_v42, %v312_v41  ;;  %v321_v50 = vld [vmem:[%s2877_s23 + $0xd8] sm:$0xff] }
  0x1b   : > { %v330_v45 = vld [vmem:[%s2877_s23 + $0x120] sm:$0xff]  ;;  %v325_v51 = vld [vmem:[%s2877_s23 + $0xf8] sm:$0xff]  ;;  %v339_v52 = vld [vmem:[%s2877_s23 + $0x168] sm:$0xff] }
  0x1c   : > { %2180 = vmatprep.subr.bf16.mxu1 %v2944_v46  ;;  %v2957_v53 = vpack.c.bf16 %v325_v51, %v321_v50  ;;  %v320_v54 = vld [vmem:[%s2877_s23 + $0xd0] sm:$0xff]  ;;  %v2963_v56 = vpack.c.bf16 %v330_v45, %v326_v44  ;;  %v329_v57 = vld [vmem:[%s2877_s23 + $0x118] sm:$0xff]  ;;  %v2968_v59 = vpack.c.bf16 %v339_v52, %v335_v48  ;;  %v334_v60 = vld [vmem:[%s2877_s23 + $0x140] sm:$0xff] }
  0x1d   : > { %2150 = vmatpush1.bf16.msra.mxu0 %v2915_v27  ;;  %v324_v55 = vld [vmem:[%s2877_s23 + $0xf0] sm:$0xff]  ;;  %v333_v58 = vld [vmem:[%s2877_s23 + $0x138] sm:$0xff]  ;;  %v338_v61 = vld [vmem:[%s2877_s23 + $0x160] sm:$0xff] }
  0x1e   : > { %2152 = vmatprep.subr.bf16.mxu0 %v2922_v31  ;;  %2182 = vmatpush1.bf16.msra.mxu1 %v2951_v49  ;;  %v343_v62 = vld [vmem:[%s2877_s23 + $0x188] sm:$0xff]  ;;  %v2974_v63 = vpack.c.bf16 %v324_v55, %v320_v54  ;;  %v2978_v3 = vpack.c.bf16 %v333_v58, %v329_v57  ;;  %v328_v4 = vld [vmem:[%s2877_s23 + $0x110] sm:$0xff]  ;;  %v337_v7 = vld [vmem:[%s2877_s23 + $0x158] sm:$0xff]  ;;  %v2990_v11 = vpack.c.bf16 %v338_v61, %v334_v60 }
  0x1f   : > { %v347_v2 = vld [vmem:[%s2877_s23 + $0x1a8] sm:$0xff]  ;;  %2184 = vmatprep.subr.bf16.mxu1 %v2957_v53  ;;  %v332_v6 = vld [vmem:[%s2877_s23 + $0x130] sm:$0xff]  ;;  %v341_v8 = vld [vmem:[%s2877_s23 + $0x178] sm:$0xff] }
  0x20   : > { %v342_v12 = vld [vmem:[%s2877_s23 + $0x180] sm:$0xff]  ;;  %v2994_v13 = vpack.c.bf16 %v347_v2, %v343_v62  ;;  %v351_v16 = vld [vmem:[%s2877_s23 + $0x1c8] sm:$0xff]  ;;  %v2999_v17 = vpack.c.bf16 %v332_v6, %v328_v4  ;;  %v3005_v21 = vpack.c.bf16 %v341_v8, %v337_v7  ;;  %v336_v22 = vld [vmem:[%s2877_s23 + $0x150] sm:$0xff] }
  0x21   : > { %2154 = vmatpush1.bf16.msra.mxu0 %v2940_v43  ;;  %v346_v14 = vld [vmem:[%s2877_s23 + $0x1a0] sm:$0xff]  ;;  %v355_v20 = vld [vmem:[%s2877_s23 + $0x1e8] sm:$0xff]  ;;  %v340_v24 = vld [vmem:[%s2877_s23 + $0x170] sm:$0xff] }
  0x22   : > { %2156 = vmatprep.subr.bf16.mxu0 %v2947_v47  ;;  %2186 = vmatpush1.bf16.msra.mxu1 %v2974_v63  ;;  %v3001_v19 = vld [vmem:[%s271_s27] sm:$0xff]  ;;  %v345_v25 = vld [vmem:[%s2877_s23 + $0x198] sm:$0xff]  ;;  %v3015_v30 = vpack.c.bf16 %v346_v14, %v342_v12  ;;  %v3018_v32 = vpack.c.bf16 %v355_v20, %v351_v16  ;;  %v3023_v36 = vpack.c.bf16 %v340_v24, %v336_v22  ;;  %v344_v40 = vld [vmem:[%s2877_s23 + $0x190] sm:$0xff] }
  0x23   : > { %2188 = vmatprep.subr.bf16.mxu1 %v2978_v3  ;;  %vm359_vm0 = vcmp.gt.s32.totalorder %v3001_v19, 0  ;;  %vm360_vm1 = vcmp.gt.s32.totalorder %v3001_v19, 1  ;;  %v349_v28 = vld [vmem:[%s2877_s23 + $0x1b8] sm:$0xff]  ;;  %v350_v33 = vld [vmem:[%s2877_s23 + $0x1c0] sm:$0xff]  ;;  %v348_v41 = vld [vmem:[%s2877_s23 + $0x1b0] sm:$0xff]  ;;  %vm363_vm2 = vcmp.gt.s32.totalorder %v3001_v19, 4 }
  0x24   : > { %v541_v29 = vsel %vm359_vm0, 1, %v2826_v1  ;;  %v354_v35 = vld [vmem:[%s2877_s23 + $0x1e0] sm:$0xff]  ;;  %v723_v37 = vsel %vm360_vm1, 1, %v2826_v1  ;;  %v3027_v39 = vpack.c.bf16 %v349_v28, %v345_v25  ;;  %v353_v42 = vld [vmem:[%s2877_s23 + $0x1d8] sm:$0xff]  ;;  %v3039_v48 = vpack.c.bf16 %v348_v41, %v344_v40  ;;  %v352_v52 = vld [vmem:[%s2877_s23 + $0x1d0] sm:$0xff] }
  0x25   : > { %2158 = vmatpush1.bf16.msra.mxu0 %v2963_v56  ;;  %543 = vperm.xlu0 %2687, %v541_v29   ;;  %v357_v44 = vld [vmem:[%s2877_s23 + $0x1f8] sm:$0xff]  ;;  %v3035_v45 = vpack.c.bf16 %v354_v35, %v350_v33  ;;  %v1269_v50 = vsel %vm363_vm2, 1, %v2826_v1  ;;  %v356_v54 = vld [vmem:[%s2877_s23 + $0x1f0] sm:$0xff]  ;;  %vm365_vm3 = vcmp.gt.s32.totalorder %v3001_v19, 6  ;;  %v367_v58 = vld [vmem:[%s3097_s6] sm:$0xff]  ;;  %vm361_vm5 = vcmp.gt.s32.totalorder %v3001_v19, 2 }
  0x26   : > { %2160 = vmatprep.subr.bf16.mxu0 %v2968_v59  ;;  %2190 = vmatpush1.bf16.msra.mxu1 %v2999_v17  ;;  %v3043_v51 = vpack.c.bf16 %v357_v44, %v353_v42  ;;  %v3050_v55 = vpack.c.bf16 %v356_v54, %v352_v52  ;;  %v1633_v57 = vsel %vm365_vm3, 1, %v2826_v1  ;;  %v368_v60 = vld [vmem:[%s3097_s6 + $0x8] sm:$0xff]  ;;  %v369_v8 = vld [vmem:[%s3097_s6 + $0x10] sm:$0xff]  ;;  %v370_v20 = vld [vmem:[%s3097_s6 + $0x18] sm:$0xff]  ;;  %vm362_vm6 = vcmp.gt.s32.totalorder %v3001_v19, 3 }
  0x27   : > { %2192 = vmatprep.subr.bf16.mxu1 %v3005_v21  ;;  %vm364_vm7 = vcmp.gt.s32.totalorder %v3001_v19, 5  ;;  %vm366_vm8 = vcmp.gt.s32.totalorder %v3001_v19, 7  ;;  %v2033_v19 = vld [vmem:[%s3097_s6 + $0x38] sm:$0xff]  ;;  %vm1914_vm1 = vcmask 130048  }
  0x29   : > { %2162 = vmatpush1.bf16.msra.mxu0 %v2990_v11  ;;  %725 = vperm.xlu0 %2687, %v723_v37  }
  0x2a   : > { %2164 = vmatprep.subr.bf16.mxu0 %v2994_v13  ;;  %2194 = vmatpush1.bf16.msra.mxu1 %v3023_v36 }
  0x2b   : > { %2196 = vmatprep.subr.bf16.mxu1 %v3027_v39 }
  0x2d   : > { %2166 = vmatpush1.bf16.msra.mxu0 %v3015_v30  ;;  %1271 = vperm.xlu0 %2687, %v1269_v50  }
  0x2e   : > { %2168 = vmatprep.subr.bf16.mxu0 %v3018_v32  ;;  %2198 = vmatpush1.bf16.msra.mxu1 %v3039_v48 }
  0x2f   : > { %2200 = vmatprep.subr.bf16.mxu1 %v3043_v51 }
  0x31   : > { %2170 = vmatpush1.bf16.msra.mxu0 %v3035_v45  ;;  %1635 = vperm.xlu0 %2687, %v1633_v57  }
  0x32   : > { %2204 = vmatprep.subr.bf16.mxu0 %v2882_v5  ;;  %2202 = vmatpush1.bf16.msra.mxu1 %v3050_v55 }
  0x33   : > { %2236 = vmatprep.subr.bf16.mxu1 %v2908_v23 }
  0x34   : > { %436 = vmatmul.mubr.f32.vlgmr.msra.gmra.mrb[0].mxu0 %v2825_v0 }
  0x35   : > { %2206 = vmatpush1.bf16.msra.mxu0 %v2887_v9  ;;  %617 = vmatprep.mubr.f32.mxu0 %v2825_v0 }
  0x36   : > { %2208 = vmatprep.subr.bf16.mxu0 %v2889_v10  ;;  %507 = vmatmul.mubr.f32.vlgmr.msra.gmra.mrb[0].mxu1 %v2825_v0 }
  0x37   : > { %2238 = vmatpush1.bf16.msra.mxu1 %v2912_v26  ;;  %688 = vmatprep.mubr.f32.mxu1 %v2825_v0 }
  0x38   : > { %2240 = vmatprep.subr.bf16.mxu1 %v2927_v34 }
  0x39   : > { %2210 = vmatpush1.bf16.msra.mxu0 %v2897_v15 }
  0x3a   : > { %2212 = vmatprep.subr.bf16.mxu0 %v2902_v18 }
  0x3b   : > { %2242 = vmatpush1.bf16.msra.mxu1 %v2932_v38 }
  0x3c   : > { %2244 = vmatprep.subr.bf16.mxu1 %v2944_v46 }
  0x3d   : > { %2214 = vmatpush1.bf16.msra.mxu0 %v2915_v27 }
  0x3e   : > { %2216 = vmatprep.subr.bf16.mxu0 %v2922_v31 }
  0x3f   : > { %2246 = vmatpush1.bf16.msra.mxu1 %v2951_v49 }
  0x40   : > { %2248 = vmatprep.subr.bf16.mxu1 %v2957_v53 }
  0x41   : > { %2218 = vmatpush1.bf16.msra.mxu0 %v2940_v43 }
  0x42   : > { %2220 = vmatprep.subr.bf16.mxu0 %v2947_v47 }
  0x43   : > { %2250 = vmatpush1.bf16.msra.mxu1 %v2974_v63 }
  0x44   : > { %2252 = vmatprep.subr.bf16.mxu1 %v2978_v3 }
  0x45   : > { %2222 = vmatpush1.bf16.msra.mxu0 %v2963_v56 }
  0x46   : > { %2224 = vmatprep.subr.bf16.mxu0 %v2968_v59 }
  0x47   : > { %2254 = vmatpush1.bf16.msra.mxu1 %v2999_v17 }
  0x48   : > { %2256 = vmatprep.subr.bf16.mxu1 %v3005_v21 }
  0x49   : > { %2226 = vmatpush1.bf16.msra.mxu0 %v2990_v11 }
  0x4a   : > { %2228 = vmatprep.subr.bf16.mxu0 %v2994_v13 }
  0x4b   : > { %2258 = vmatpush1.bf16.msra.mxu1 %v3023_v36 }
  0x4c   : > { %2260 = vmatprep.subr.bf16.mxu1 %v3027_v39 }
  0x4d   : > { %2230 = vmatpush1.bf16.msra.mxu0 %v3015_v30 }
  0x4e   : > { %2232 = vmatprep.subr.bf16.mxu0 %v3018_v32 }
  0x4f   : > { %2262 = vmatpush1.bf16.msra.mxu1 %v3039_v48 }
  0x50   : > { %2264 = vmatprep.subr.bf16.mxu1 %v3043_v51 }
  0x51   : > { %2234 = vmatpush1.bf16.msra.mxu0 %v3035_v45 }
  0x52   : > { %2268 = vmatprep.subr.bf16.mxu0 %v2882_v5 }
  0x53   : > { %2266 = vmatpush1.bf16.msra.mxu1 %v3050_v55 }
  0x54   : > { %2300 = vmatprep.subr.bf16.mxu1 %v2908_v23 }
  0xa4   : > { %v544_v42 = vpop.permute.xlu0 %543 }
  0xa5   : > { %vm545_vm4 = vcmp.eq.s32.totalorder %v544_v42, 1 }
 0x107   : > { %v437_v61 = vpop.f32.mrb[0].mxu0 }
 0x108   : > { %v513_v62 = vadd.f32 %v437_v61, %v367_v58  ;;  %v439_v2 = vpop.f32.mrb[1].mxu0 }
 0x109   : > { %v514_v4 = vadd.f32 %v439_v2, %v368_v60  ;;  %v508_v12 = vpop.f32.mrb[0].mxu1  ;;  %v905_v2 = vsel %vm361_vm5, 1, %v2826_v1 }
 0x10a   : > { %v2027_v6 = vmul.f32 -1.442695, %v513_v62  ;;  %v510_v14 = vpop.f32.mrb[1].mxu1  ;;  %v515_v16 = vadd.f32 %v508_v12, %v369_v8  ;;  %907 = vperm.xlu1 %2688, %v905_v2   ;;  %v2030_v8 = vld [vmem:[%s3097_s6 + $0x20] sm:$0xff]  ;;  %v2031_v12 = vld [vmem:[%s3097_s6 + $0x28] sm:$0xff] }
 0x10b   : > { %v2028_v7 = vmul.f32 -1.442695, %v514_v4  ;;  %v516_v24 = vadd.f32 %v510_v14, %v370_v20  ;;  %v1087_v4 = vsel %vm362_vm6, 1, %v2826_v1 }
 0x10c   : > { %2689 = vpow2.f32 %v2027_v6  ;;  %v2029_v22 = vmul.f32 -1.442695, %v515_v16  ;;  %v1451_v6 = vsel %vm364_vm7, 1, %v2826_v1 }
 0x10d   : > { %2691 = vpow2.f32 %v2028_v7  ;;  %v1815_v7 = vsel %vm366_vm8, 1, %v2826_v1 }
 0x10e   : > { %2693 = vpow2.f32 %v2029_v22  ;;  %1089 = vperm.xlu1 %2688, %v1087_v4   ;;  %v726_v4 = vpop.permute.xlu0 %725 }
 0x10f   : > { %2695 = vtanh.f32 %v516_v24  ;;  %vm727_vm9 = vcmp.eq.s32.totalorder %v726_v4, 1 }
 0x112   : > { %1453 = vperm.xlu1 %2688, %v1451_v6  }
 0x116   : > { %v2690_v25 = vpop.eup %2689  ;;  %1817 = vperm.xlu1 %2688, %v1815_v7  }
 0x117   : > { %v2692_v28 = vpop.eup %2691  ;;  %v526_v29 = vadd.f32 1.0, %v2690_v25 }
 0x118   : > { %v527_v33 = vadd.f32 1.0, %v2692_v28  ;;  %v2694_v35 = vpop.eup %2693 }
 0x119   : > { %2697 = vrcp.f32 %v526_v29  ;;  %v2696_v37 = vpop.eup %2695  ;;  %v528_v41 = vadd.f32 1.0, %v2694_v35 }
 0x11a   : > { %2699 = vrcp.f32 %v527_v33  ;;  %v2032_v33 = vld [vmem:[%s3097_s6 + $0x30] sm:$0xff] }
 0x11b   : > { %2701 = vrcp.f32 %v528_v41 }
 0x123   : > { %v2698_v40 = vpop.eup %2697 }
 0x124   : > { %v2700_v44 = vpop.eup %2699  ;;  %v537_v50 = vmul.f32 %v2698_v40, %v2696_v37 }
 0x125   : > { %v536_v52 = vmul.f32 0.0, %v2700_v44  ;;  %v2702_v58 = vpop.eup %2701 }
 0x127   : > { %v538_v54 = vadd.f32 %v537_v50, %v536_v52 }
 0x129   : > { %2703 = vtanh.f32 %v538_v54  ;;  %v3103_v57 = vsel %vm545_vm4, %v538_v54, 0.0 }
 0x133   : > { %v2704_v60 = vpop.eup %2703 }
 0x134   : > { %v540_v61 = vmul.f32 %v2704_v60, %v2702_v58 }
 0x136   : > { %v3105_v62 = vsel %vm545_vm4, %v540_v61, 0.0  ;;  %2034 = vmatmul.mubr.msk.f32.vlgmr.msra.gmra.mrb[2].mxu0 %vm545_vm4, %v540_v61  ;;  %2035 = vmatmul.mubr.msk.f32.vlgmr.msra.gmra.mrb[2].mxu1 %vm545_vm4, %v540_v61 }
 0x137   : > { %2270 = vmatpush1.bf16.msra.mxu0 %v2887_v9  ;;  %2302 = vmatpush1.bf16.msra.mxu1 %v2912_v26 }
 0x138   : > { %2272 = vmatprep.subr.bf16.mxu0 %v2889_v10  ;;  %2304 = vmatprep.subr.bf16.mxu1 %v2927_v34 }
 0x139   : > { %799 = vmatprep.mubr.f32.mxu0 %v2825_v0  ;;  %870 = vmatprep.mubr.f32.mxu1 %v2825_v0 }
 0x13b   : > { %2274 = vmatpush1.bf16.msra.mxu0 %v2897_v15  ;;  %2306 = vmatpush1.bf16.msra.mxu1 %v2932_v38 }
 0x13c   : > { %2276 = vmatprep.subr.bf16.mxu0 %v2902_v18  ;;  %2308 = vmatprep.subr.bf16.mxu1 %v2944_v46 }
 0x13f   : > { %2278 = vmatpush1.bf16.msra.mxu0 %v2915_v27  ;;  %2310 = vmatpush1.bf16.msra.mxu1 %v2951_v49 }
 0x140   : > { %2280 = vmatprep.subr.bf16.mxu0 %v2922_v31  ;;  %2312 = vmatprep.subr.bf16.mxu1 %v2957_v53 }
 0x143   : > { %2282 = vmatpush1.bf16.msra.mxu0 %v2940_v43  ;;  %2314 = vmatpush1.bf16.msra.mxu1 %v2974_v63 }
 0x144   : > { %2284 = vmatprep.subr.bf16.mxu0 %v2947_v47  ;;  %2316 = vmatprep.subr.bf16.mxu1 %v2978_v3 }
 0x147   : > { %2286 = vmatpush1.bf16.msra.mxu0 %v2963_v56  ;;  %2318 = vmatpush1.bf16.msra.mxu1 %v2999_v17 }
 0x148   : > { %2288 = vmatprep.subr.bf16.mxu0 %v2968_v59  ;;  %2320 = vmatprep.subr.bf16.mxu1 %v3005_v21 }
 0x14b   : > { %2290 = vmatpush1.bf16.msra.mxu0 %v2990_v11  ;;  %2322 = vmatpush1.bf16.msra.mxu1 %v3023_v36 }
 0x14c   : > { %2292 = vmatprep.subr.bf16.mxu0 %v2994_v13  ;;  %2324 = vmatprep.subr.bf16.mxu1 %v3027_v39 }
 0x14f   : > { %2294 = vmatpush1.bf16.msra.mxu0 %v3015_v30  ;;  %2326 = vmatpush1.bf16.msra.mxu1 %v3039_v48 }
 0x150   : > { %2296 = vmatprep.subr.bf16.mxu0 %v3018_v32  ;;  %2328 = vmatprep.subr.bf16.mxu1 %v3043_v51 }
 0x153   : > { %2298 = vmatpush1.bf16.msra.mxu0 %v3035_v45  ;;  %2330 = vmatpush1.bf16.msra.mxu1 %v3050_v55 }
 0x154   : > { %2332 = vmatprep.subr.bf16.mxu0 %v2882_v5  ;;  %2364 = vmatprep.subr.bf16.mxu1 %v2908_v23 }
 0x209   : > { %v619_v14 = vpop.f32.mrb[2].mxu0  ;;  %v690_v16 = vpop.f32.mrb[2].mxu1 }
 0x20a   : > { %v695_v20 = vadd.f32 %v2030_v8, %v619_v14  ;;  %v621_v22 = vpop.f32.mrb[3].mxu0  ;;  %v692_v24 = vpop.f32.mrb[3].mxu1  ;;  %v697_v35 = vadd.f32 %v2032_v33, %v690_v16 }
 0x20b   : > { %v696_v25 = vadd.f32 %v2031_v12, %v621_v22  ;;  %v698_v37 = vadd.f32 %v2033_v19, %v692_v24  ;;  %v2041_v19 = vld [vmem:[%s3097_s6 + $0x50] sm:$0xff] }
 0x20c   : > { %v2036_v28 = vmul.f32 -1.442695, %v695_v20  ;;  %v2038_v40 = vmul.f32 -1.442695, %v697_v35 }
 0x20d   : > { %v2037_v29 = vmul.f32 -1.442695, %v696_v25 }
 0x20e   : > { %2705 = vpow2.f32 %v2036_v28 }
 0x20f   : > { %2707 = vpow2.f32 %v2037_v29 }
 0x210   : > { %2709 = vtanh.f32 %v698_v37 }
 0x211   : > { %2711 = vpow2.f32 %v2038_v40  ;;  %v2042_v40 = vld [vmem:[%s3097_s6 + $0x58] sm:$0xff] }
 0x218   : > { %v2706_v1 = vpop.eup %2705 }
 0x219   : > { %v708_v41 = vadd.f32 1.0, %v2706_v1  ;;  %v2708_v42 = vpop.eup %2707 }
 0x21a   : > { %v709_v44 = vadd.f32 1.0, %v2708_v42  ;;  %v2710_v50 = vpop.eup %2709 }
 0x21b   : > { %2713 = vrcp.f32 %v708_v41  ;;  %v2712_v52 = vpop.eup %2711 }
 0x21c   : > { %2715 = vrcp.f32 %v709_v44  ;;  %v710_v61 = vadd.f32 1.0, %v2712_v52 }
 0x21e   : > { %2717 = vrcp.f32 %v710_v61  ;;  %v908_v61 = vpop.permute.xlu1 %907 }
 0x21f   : > { %vm909_vm10 = vcmp.eq.s32.totalorder %v908_v61, 1 }
 0x225   : > { %v2714_v54 = vpop.eup %2713 }
 0x226   : > { %v719_v58 = vmul.f32 %v2714_v54, %v2710_v50  ;;  %v2716_v60 = vpop.eup %2715 }
 0x227   : > { %v718_v2 = vmul.f32 %v2716_v60, %v3103_v57 }
 0x228   : > { %v2718_v8 = vpop.eup %2717 }
 0x229   : > { %v720_v6 = vadd.f32 %v719_v58, %v718_v2 }
 0x22b   : > { %2719 = vtanh.f32 %v720_v6  ;;  %v3155_v7 = vsel %vm727_vm9, %v720_v6, %v3103_v57  ;;  %v2039_v57 = vld [vmem:[%s3097_s6 + $0x40] sm:$0xff] }
 0x235   : > { %v2720_v12 = vpop.eup %2719 }
 0x236   : > { %v722_v14 = vmul.f32 %v2720_v12, %v2718_v8 }
 0x238   : > { %v3158_v16 = vsel %vm727_vm9, %v722_v14, %v3105_v62  ;;  %v2040_v62 = vld [vmem:[%s3097_s6 + $0x48] sm:$0xff] }
 0x239   : > { %800 = vmatmul.mubr.f32.vlgmr.msra.gmra.mrb[4].mxu0 %v3158_v16  ;;  %871 = vmatmul.mubr.f32.vlgmr.msra.gmra.mrb[4].mxu1 %v3158_v16 }
 0x23a   : > { %2334 = vmatpush1.bf16.msra.mxu0 %v2887_v9  ;;  %2366 = vmatpush1.bf16.msra.mxu1 %v2912_v26 }
 0x23b   : > { %2336 = vmatprep.subr.bf16.mxu0 %v2889_v10  ;;  %2368 = vmatprep.subr.bf16.mxu1 %v2927_v34 }
 0x23c   : > { %981 = vmatprep.mubr.f32.mxu0 %v2825_v0  ;;  %1052 = vmatprep.mubr.f32.mxu1 %v2825_v0 }
 0x23e   : > { %2338 = vmatpush1.bf16.msra.mxu0 %v2897_v15  ;;  %2370 = vmatpush1.bf16.msra.mxu1 %v2932_v38 }
 0x23f   : > { %2340 = vmatprep.subr.bf16.mxu0 %v2902_v18  ;;  %2372 = vmatprep.subr.bf16.mxu1 %v2944_v46 }
 0x242   : > { %2342 = vmatpush1.bf16.msra.mxu0 %v2915_v27  ;;  %2374 = vmatpush1.bf16.msra.mxu1 %v2951_v49 }
 0x243   : > { %2344 = vmatprep.subr.bf16.mxu0 %v2922_v31  ;;  %2376 = vmatprep.subr.bf16.mxu1 %v2957_v53 }
 0x246   : > { %2346 = vmatpush1.bf16.msra.mxu0 %v2940_v43  ;;  %2378 = vmatpush1.bf16.msra.mxu1 %v2974_v63 }
 0x247   : > { %2348 = vmatprep.subr.bf16.mxu0 %v2947_v47  ;;  %2380 = vmatprep.subr.bf16.mxu1 %v2978_v3 }
 0x24a   : > { %2350 = vmatpush1.bf16.msra.mxu0 %v2963_v56  ;;  %2382 = vmatpush1.bf16.msra.mxu1 %v2999_v17 }
 0x24b   : > { %2352 = vmatprep.subr.bf16.mxu0 %v2968_v59  ;;  %2384 = vmatprep.subr.bf16.mxu1 %v3005_v21 }
 0x24e   : > { %2354 = vmatpush1.bf16.msra.mxu0 %v2990_v11  ;;  %2386 = vmatpush1.bf16.msra.mxu1 %v3023_v36 }
 0x24f   : > { %2356 = vmatprep.subr.bf16.mxu0 %v2994_v13  ;;  %2388 = vmatprep.subr.bf16.mxu1 %v3027_v39 }
 0x252   : > { %2358 = vmatpush1.bf16.msra.mxu0 %v3015_v30  ;;  %2390 = vmatpush1.bf16.msra.mxu1 %v3039_v48 }
 0x253   : > { %2360 = vmatprep.subr.bf16.mxu0 %v3018_v32  ;;  %2392 = vmatprep.subr.bf16.mxu1 %v3043_v51 }
 0x256   : > { %2362 = vmatpush1.bf16.msra.mxu0 %v3035_v45  ;;  %2394 = vmatpush1.bf16.msra.mxu1 %v3050_v55 }
 0x257   : > { %2396 = vmatprep.subr.bf16.mxu0 %v2882_v5  ;;  %2428 = vmatprep.subr.bf16.mxu1 %v2908_v23 }
 0x30c   : > { %v801_v20 = vpop.f32.mrb[4].mxu0  ;;  %v872_v22 = vpop.f32.mrb[4].mxu1 }
 0x30d   : > { %v877_v24 = vadd.f32 %v2039_v57, %v801_v20  ;;  %v803_v25 = vpop.f32.mrb[5].mxu0  ;;  %v874_v28 = vpop.f32.mrb[5].mxu1  ;;  %v879_v37 = vadd.f32 %v2041_v19, %v872_v22 }
 0x30e   : > { %v878_v29 = vadd.f32 %v2040_v62, %v803_v25  ;;  %v880_v1 = vadd.f32 %v2042_v40, %v874_v28  ;;  %v2048_v40 = vld [vmem:[%s3097_s6 + $0x70] sm:$0xff] }
 0x30f   : > { %v2043_v33 = vmul.f32 -1.442695, %v877_v24  ;;  %v2045_v41 = vmul.f32 -1.442695, %v879_v37 }
 0x310   : > { %v2044_v35 = vmul.f32 -1.442695, %v878_v29 }
 0x311   : > { %2721 = vpow2.f32 %v2043_v33 }
 0x312   : > { %2723 = vpow2.f32 %v2044_v35 }
 0x313   : > { %2725 = vtanh.f32 %v880_v1 }
 0x314   : > { %2727 = vpow2.f32 %v2045_v41  ;;  %v2049_v41 = vld [vmem:[%s3097_s6 + $0x78] sm:$0xff] }
 0x31b   : > { %v2722_v42 = vpop.eup %2721 }
 0x31c   : > { %v890_v44 = vadd.f32 1.0, %v2722_v42  ;;  %v2724_v50 = vpop.eup %2723 }
 0x31d   : > { %v891_v52 = vadd.f32 1.0, %v2724_v50  ;;  %v2726_v54 = vpop.eup %2725 }
 0x31e   : > { %2729 = vrcp.f32 %v890_v44  ;;  %v2728_v58 = vpop.eup %2727 }
 0x31f   : > { %2731 = vrcp.f32 %v891_v52  ;;  %v892_v6 = vadd.f32 1.0, %v2728_v58 }
 0x321   : > { %2733 = vrcp.f32 %v892_v6 }
 0x328   : > { %v2730_v60 = vpop.eup %2729 }
 0x329   : > { %v901_v2 = vmul.f32 %v2730_v60, %v2726_v54  ;;  %v2732_v4 = vpop.eup %2731 }
 0x32a   : > { %v900_v8 = vmul.f32 %v2732_v4, %v3155_v7 }
 0x32b   : > { %v2734_v57 = vpop.eup %2733 }
 0x32c   : > { %v902_v12 = vadd.f32 %v901_v2, %v900_v8 }
 0x32e   : > { %2735 = vtanh.f32 %v902_v12  ;;  %v3202_v14 = vsel %vm909_vm10, %v902_v12, %v3155_v7  ;;  %v2046_v7 = vld [vmem:[%s3097_s6 + $0x60] sm:$0xff] }
 0x338   : > { %v2736_v62 = vpop.eup %2735 }
 0x339   : > { %v904_v20 = vmul.f32 %v2736_v62, %v2734_v57  ;;  %v1090_v57 = vpop.permute.xlu1 %1089 }
 0x33a   : > { %vm1091_vm11 = vcmp.eq.s32.totalorder %v1090_v57, 1 }
 0x33b   : > { %v3205_v22 = vsel %vm909_vm10, %v904_v20, %v3158_v16  ;;  %v2047_v16 = vld [vmem:[%s3097_s6 + $0x68] sm:$0xff] }
 0x33c   : > { %982 = vmatmul.mubr.f32.vlgmr.msra.gmra.mrb[6].mxu0 %v3205_v22  ;;  %1053 = vmatmul.mubr.f32.vlgmr.msra.gmra.mrb[6].mxu1 %v3205_v22 }
 0x33d   : > { %2398 = vmatpush1.bf16.msra.mxu0 %v2887_v9  ;;  %2430 = vmatpush1.bf16.msra.mxu1 %v2912_v26 }
 0x33e   : > { %2400 = vmatprep.subr.bf16.mxu0 %v2889_v10  ;;  %2432 = vmatprep.subr.bf16.mxu1 %v2927_v34 }
 0x33f   : > { %1163 = vmatprep.mubr.f32.mxu0 %v2825_v0  ;;  %1234 = vmatprep.mubr.f32.mxu1 %v2825_v0 }
 0x341   : > { %2402 = vmatpush1.bf16.msra.mxu0 %v2897_v15  ;;  %2434 = vmatpush1.bf16.msra.mxu1 %v2932_v38 }
 0x342   : > { %2404 = vmatprep.subr.bf16.mxu0 %v2902_v18  ;;  %2436 = vmatprep.subr.bf16.mxu1 %v2944_v46 }
 0x345   : > { %2406 = vmatpush1.bf16.msra.mxu0 %v2915_v27  ;;  %2438 = vmatpush1.bf16.msra.mxu1 %v2951_v49 }
 0x346   : > { %2408 = vmatprep.subr.bf16.mxu0 %v2922_v31  ;;  %2440 = vmatprep.subr.bf16.mxu1 %v2957_v53 }
 0x349   : > { %2410 = vmatpush1.bf16.msra.mxu0 %v2940_v43  ;;  %2442 = vmatpush1.bf16.msra.mxu1 %v2974_v63 }
 0x34a   : > { %2412 = vmatprep.subr.bf16.mxu0 %v2947_v47  ;;  %2444 = vmatprep.subr.bf16.mxu1 %v2978_v3 }
 0x34d   : > { %2414 = vmatpush1.bf16.msra.mxu0 %v2963_v56  ;;  %2446 = vmatpush1.bf16.msra.mxu1 %v2999_v17 }
 0x34e   : > { %2416 = vmatprep.subr.bf16.mxu0 %v2968_v59  ;;  %2448 = vmatprep.subr.bf16.mxu1 %v3005_v21 }
 0x351   : > { %2418 = vmatpush1.bf16.msra.mxu0 %v2990_v11  ;;  %2450 = vmatpush1.bf16.msra.mxu1 %v3023_v36 }
 0x352   : > { %2420 = vmatprep.subr.bf16.mxu0 %v2994_v13  ;;  %2452 = vmatprep.subr.bf16.mxu1 %v3027_v39 }
 0x355   : > { %2422 = vmatpush1.bf16.msra.mxu0 %v3015_v30  ;;  %2454 = vmatpush1.bf16.msra.mxu1 %v3039_v48 }
 0x356   : > { %2424 = vmatprep.subr.bf16.mxu0 %v3018_v32  ;;  %2456 = vmatprep.subr.bf16.mxu1 %v3043_v51 }
 0x359   : > { %2426 = vmatpush1.bf16.msra.mxu0 %v3035_v45  ;;  %2458 = vmatpush1.bf16.msra.mxu1 %v3050_v55 }
 0x35a   : > { %2460 = vmatprep.subr.bf16.mxu0 %v2882_v5  ;;  %2492 = vmatprep.subr.bf16.mxu1 %v2908_v23 }
 0x40f   : > { %v983_v24 = vpop.f32.mrb[6].mxu0  ;;  %v1054_v25 = vpop.f32.mrb[6].mxu1 }
 0x410   : > { %v1059_v28 = vadd.f32 %v2046_v7, %v983_v24  ;;  %v985_v29 = vpop.f32.mrb[7].mxu0  ;;  %v1056_v33 = vpop.f32.mrb[7].mxu1  ;;  %v1061_v1 = vadd.f32 %v2048_v40, %v1054_v25 }
 0x411   : > { %v1060_v35 = vadd.f32 %v2047_v16, %v985_v29  ;;  %v1062_v42 = vadd.f32 %v2049_v41, %v1056_v33  ;;  %v2055_v41 = vld [vmem:[%s3097_s6 + $0x90] sm:$0xff] }
 0x412   : > { %v2050_v19 = vmul.f32 -1.442695, %v1059_v28  ;;  %v2052_v44 = vmul.f32 -1.442695, %v1061_v1 }
 0x413   : > { %v2051_v37 = vmul.f32 -1.442695, %v1060_v35 }
 0x414   : > { %2737 = vpow2.f32 %v2050_v19 }
 0x415   : > { %2739 = vpow2.f32 %v2051_v37 }
 0x416   : > { %2741 = vtanh.f32 %v1062_v42 }
 0x417   : > { %2743 = vpow2.f32 %v2052_v44  ;;  %v2056_v44 = vld [vmem:[%s3097_s6 + $0x98] sm:$0xff] }
 0x41e   : > { %v2738_v50 = vpop.eup %2737 }
 0x41f   : > { %v1072_v52 = vadd.f32 1.0, %v2738_v50  ;;  %v2740_v54 = vpop.eup %2739 }
 0x420   : > { %v1073_v58 = vadd.f32 1.0, %v2740_v54  ;;  %v2742_v60 = vpop.eup %2741 }
 0x421   : > { %2745 = vrcp.f32 %v1072_v52  ;;  %v2744_v61 = vpop.eup %2743 }
 0x422   : > { %2747 = vrcp.f32 %v1073_v58  ;;  %v1074_v8 = vadd.f32 1.0, %v2744_v61 }
 0x424   : > { %2749 = vrcp.f32 %v1074_v8 }
 0x42b   : > { %v2746_v2 = vpop.eup %2745 }
 0x42c   : > { %v1083_v4 = vmul.f32 %v2746_v2, %v2742_v60  ;;  %v2748_v6 = vpop.eup %2747 }
 0x42d   : > { %v1082_v12 = vmul.f32 %v2748_v6, %v3202_v14 }
 0x42e   : > { %v2750_v7 = vpop.eup %2749 }
 0x42f   : > { %v1084_v62 = vadd.f32 %v1083_v4, %v1082_v12 }
 0x431   : > { %2751 = vtanh.f32 %v1084_v62  ;;  %v3249_v20 = vsel %vm1091_vm11, %v1084_v62, %v3202_v14  ;;  %v2053_v14 = vld [vmem:[%s3097_s6 + $0x80] sm:$0xff] }
 0x43b   : > { %v2752_v16 = vpop.eup %2751 }
 0x43c   : > { %v1086_v24 = vmul.f32 %v2752_v16, %v2750_v7  ;;  %v1272_v7 = vpop.permute.xlu0 %1271 }
 0x43d   : > { %vm1273_vm12 = vcmp.eq.s32.totalorder %v1272_v7, 1  ;;  %v1454_v7 = vpop.permute.xlu1 %1453 }
 0x43e   : > { %v3252_v25 = vsel %vm1091_vm11, %v1086_v24, %v3205_v22  ;;  %v2054_v22 = vld [vmem:[%s3097_s6 + $0x88] sm:$0xff]  ;;  %vm1455_vm13 = vcmp.eq.s32.totalorder %v1454_v7, 1  ;;  %v1836_v7 = vld [vmem:[%s3399_s10 + $0x78] sm:$0xff] }
 0x43f   : > { %1164 = vmatmul.mubr.f32.vlgmr.msra.gmra.mrb[8].mxu0 %v3252_v25  ;;  %1235 = vmatmul.mubr.f32.vlgmr.msra.gmra.mrb[8].mxu1 %v3252_v25 }
 0x440   : > { %2462 = vmatpush1.bf16.msra.mxu0 %v2887_v9  ;;  %2494 = vmatpush1.bf16.msra.mxu1 %v2912_v26 }
 0x441   : > { %2464 = vmatprep.subr.bf16.mxu0 %v2889_v10  ;;  %2496 = vmatprep.subr.bf16.mxu1 %v2927_v34 }
 0x442   : > { %1345 = vmatprep.mubr.f32.mxu0 %v2825_v0  ;;  %1416 = vmatprep.mubr.f32.mxu1 %v2825_v0 }
 0x444   : > { %2466 = vmatpush1.bf16.msra.mxu0 %v2897_v15  ;;  %2498 = vmatpush1.bf16.msra.mxu1 %v2932_v38 }
 0x445   : > { %2468 = vmatprep.subr.bf16.mxu0 %v2902_v18  ;;  %2500 = vmatprep.subr.bf16.mxu1 %v2944_v46 }
 0x448   : > { %2470 = vmatpush1.bf16.msra.mxu0 %v2915_v27  ;;  %2502 = vmatpush1.bf16.msra.mxu1 %v2951_v49 }
 0x449   : > { %2472 = vmatprep.subr.bf16.mxu0 %v2922_v31  ;;  %2504 = vmatprep.subr.bf16.mxu1 %v2957_v53 }
 0x44c   : > { %2474 = vmatpush1.bf16.msra.mxu0 %v2940_v43  ;;  %2506 = vmatpush1.bf16.msra.mxu1 %v2974_v63 }
 0x44d   : > { %2476 = vmatprep.subr.bf16.mxu0 %v2947_v47  ;;  %2508 = vmatprep.subr.bf16.mxu1 %v2978_v3 }
 0x450   : > { %2478 = vmatpush1.bf16.msra.mxu0 %v2963_v56  ;;  %2510 = vmatpush1.bf16.msra.mxu1 %v2999_v17 }
 0x451   : > { %2480 = vmatprep.subr.bf16.mxu0 %v2968_v59  ;;  %2512 = vmatprep.subr.bf16.mxu1 %v3005_v21 }
 0x454   : > { %2482 = vmatpush1.bf16.msra.mxu0 %v2990_v11  ;;  %2514 = vmatpush1.bf16.msra.mxu1 %v3023_v36 }
 0x455   : > { %2484 = vmatprep.subr.bf16.mxu0 %v2994_v13  ;;  %2516 = vmatprep.subr.bf16.mxu1 %v3027_v39 }
 0x458   : > { %2486 = vmatpush1.bf16.msra.mxu0 %v3015_v30  ;;  %2518 = vmatpush1.bf16.msra.mxu1 %v3039_v48 }
 0x459   : > { %2488 = vmatprep.subr.bf16.mxu0 %v3018_v32  ;;  %2520 = vmatprep.subr.bf16.mxu1 %v3043_v51 }
 0x45c   : > { %2490 = vmatpush1.bf16.msra.mxu0 %v3035_v45  ;;  %2522 = vmatpush1.bf16.msra.mxu1 %v3050_v55 }
 0x45d   : > { %2524 = vmatprep.subr.bf16.mxu0 %v2882_v5  ;;  %2556 = vmatprep.subr.bf16.mxu1 %v2908_v23 }
 0x512   : > { %v1165_v28 = vpop.f32.mrb[8].mxu0  ;;  %v1236_v29 = vpop.f32.mrb[8].mxu1 }
 0x513   : > { %v1241_v33 = vadd.f32 %v2053_v14, %v1165_v28  ;;  %v1167_v35 = vpop.f32.mrb[9].mxu0  ;;  %v1238_v19 = vpop.f32.mrb[9].mxu1  ;;  %v1243_v42 = vadd.f32 %v2055_v41, %v1236_v29 }
 0x514   : > { %v1242_v37 = vadd.f32 %v2054_v22, %v1167_v35  ;;  %v1244_v50 = vadd.f32 %v2056_v44, %v1238_v19  ;;  %v2062_v44 = vld [vmem:[%s3097_s6 + $0xb0] sm:$0xff] }
 0x515   : > { %v2057_v40 = vmul.f32 -1.442695, %v1241_v33  ;;  %v2059_v52 = vmul.f32 -1.442695, %v1243_v42 }
 0x516   : > { %v2058_v1 = vmul.f32 -1.442695, %v1242_v37 }
 0x517   : > { %2753 = vpow2.f32 %v2057_v40 }
 0x518   : > { %2755 = vpow2.f32 %v2058_v1 }
 0x519   : > { %2757 = vtanh.f32 %v1244_v50 }
 0x51a   : > { %2759 = vpow2.f32 %v2059_v52  ;;  %v2063_v52 = vld [vmem:[%s3097_s6 + $0xb8] sm:$0xff] }
 0x521   : > { %v2754_v54 = vpop.eup %2753 }
 0x522   : > { %v1254_v58 = vadd.f32 1.0, %v2754_v54  ;;  %v2756_v60 = vpop.eup %2755 }
 0x523   : > { %v1255_v61 = vadd.f32 1.0, %v2756_v60  ;;  %v2758_v2 = vpop.eup %2757 }
 0x524   : > { %2761 = vrcp.f32 %v1254_v58  ;;  %v2760_v4 = vpop.eup %2759 }
 0x525   : > { %2763 = vrcp.f32 %v1255_v61  ;;  %v1256_v57 = vadd.f32 1.0, %v2760_v4 }
 0x527   : > { %2765 = vrcp.f32 %v1256_v57 }
 0x52e   : > { %v2762_v6 = vpop.eup %2761 }
 0x52f   : > { %v1265_v8 = vmul.f32 %v2762_v6, %v2758_v2  ;;  %v2764_v12 = vpop.eup %2763 }
 0x530   : > { %v1264_v62 = vmul.f32 %v2764_v12, %v3249_v20 }
 0x531   : > { %v2766_v14 = vpop.eup %2765 }
 0x532   : > { %v1266_v16 = vadd.f32 %v1265_v8, %v1264_v62 }
 0x534   : > { %2767 = vtanh.f32 %v1266_v16  ;;  %v3296_v24 = vsel %vm1273_vm12, %v1266_v16, %v3249_v20  ;;  %v2060_v20 = vld [vmem:[%s3097_s6 + $0xa0] sm:$0xff] }
 0x53e   : > { %v2768_v22 = vpop.eup %2767 }
 0x53f   : > { %v1268_v28 = vmul.f32 %v2768_v22, %v2766_v14 }
 0x541   : > { %v3299_v29 = vsel %vm1273_vm12, %v1268_v28, %v3252_v25  ;;  %v2061_v25 = vld [vmem:[%s3097_s6 + $0xa8] sm:$0xff] }
 0x542   : > { %1346 = vmatmul.mubr.f32.vlgmr.msra.gmra.mrb[10].mxu0 %v3299_v29  ;;  %1417 = vmatmul.mubr.f32.vlgmr.msra.gmra.mrb[10].mxu1 %v3299_v29 }
 0x543   : > { %2526 = vmatpush1.bf16.msra.mxu0 %v2887_v9  ;;  %2558 = vmatpush1.bf16.msra.mxu1 %v2912_v26 }
 0x544   : > { %2528 = vmatprep.subr.bf16.mxu0 %v2889_v10  ;;  %2560 = vmatprep.subr.bf16.mxu1 %v2927_v34 }
 0x545   : > { %1527 = vmatprep.mubr.f32.mxu0 %v2825_v0  ;;  %1598 = vmatprep.mubr.f32.mxu1 %v2825_v0 }
 0x547   : > { %2530 = vmatpush1.bf16.msra.mxu0 %v2897_v15  ;;  %2562 = vmatpush1.bf16.msra.mxu1 %v2932_v38 }
 0x548   : > { %2532 = vmatprep.subr.bf16.mxu0 %v2902_v18  ;;  %2564 = vmatprep.subr.bf16.mxu1 %v2944_v46 }
 0x54b   : > { %2534 = vmatpush1.bf16.msra.mxu0 %v2915_v27  ;;  %2566 = vmatpush1.bf16.msra.mxu1 %v2951_v49 }
 0x54c   : > { %2536 = vmatprep.subr.bf16.mxu0 %v2922_v31  ;;  %2568 = vmatprep.subr.bf16.mxu1 %v2957_v53 }
 0x54f   : > { %2538 = vmatpush1.bf16.msra.mxu0 %v2940_v43  ;;  %2570 = vmatpush1.bf16.msra.mxu1 %v2974_v63 }
 0x550   : > { %2540 = vmatprep.subr.bf16.mxu0 %v2947_v47  ;;  %2572 = vmatprep.subr.bf16.mxu1 %v2978_v3 }
 0x553   : > { %2542 = vmatpush1.bf16.msra.mxu0 %v2963_v56  ;;  %2574 = vmatpush1.bf16.msra.mxu1 %v2999_v17 }
 0x554   : > { %2544 = vmatprep.subr.bf16.mxu0 %v2968_v59  ;;  %2576 = vmatprep.subr.bf16.mxu1 %v3005_v21 }
 0x557   : > { %2546 = vmatpush1.bf16.msra.mxu0 %v2990_v11  ;;  %2578 = vmatpush1.bf16.msra.mxu1 %v3023_v36 }
 0x558   : > { %2548 = vmatprep.subr.bf16.mxu0 %v2994_v13  ;;  %2580 = vmatprep.subr.bf16.mxu1 %v3027_v39 }
 0x55b   : > { %2550 = vmatpush1.bf16.msra.mxu0 %v3015_v30  ;;  %2582 = vmatpush1.bf16.msra.mxu1 %v3039_v48 }
 0x55c   : > { %2552 = vmatprep.subr.bf16.mxu0 %v3018_v32  ;;  %2584 = vmatprep.subr.bf16.mxu1 %v3043_v51 }
 0x55f   : > { %2554 = vmatpush1.bf16.msra.mxu0 %v3035_v45  ;;  %2586 = vmatpush1.bf16.msra.mxu1 %v3050_v55 }
 0x560   : > { %2588 = vmatprep.subr.bf16.mxu0 %v2882_v5  ;;  %2620 = vmatprep.subr.bf16.mxu1 %v2908_v23 }
 0x615   : > { %v1347_v33 = vpop.f32.mrb[10].mxu0  ;;  %v1418_v35 = vpop.f32.mrb[10].mxu1 }
 0x616   : > { %v1423_v19 = vadd.f32 %v2060_v20, %v1347_v33  ;;  %v1349_v37 = vpop.f32.mrb[11].mxu0  ;;  %v1420_v40 = vpop.f32.mrb[11].mxu1  ;;  %v1425_v50 = vadd.f32 %v2062_v44, %v1418_v35  ;;  %v1821_v35 = vld [vmem:[%s3399_s10] sm:$0xff] }
 0x617   : > { %v1424_v1 = vadd.f32 %v2061_v25, %v1349_v37  ;;  %v1426_v54 = vadd.f32 %v2063_v52, %v1420_v40  ;;  %v2827_v40 = vmov 0.0|0.0   ;;  %v1825_v44 = vld [vmem:[%s3399_s10 + $0x20] sm:$0xff] }
 0x618   : > { %v2064_v41 = vmul.f32 -1.442695, %v1423_v19  ;;  %v2066_v5 = vmul.f32 -1.442695, %v1425_v50  ;;  %v1822_v19 = vld [vmem:[%s3399_s10 + $0x8] sm:$0xff] }
 0x619   : > { %v2065_v42 = vmul.f32 -1.442695, %v1424_v1  ;;  %v2652_v37 = vpack.c.bf16 %v1822_v19, %v1821_v35  ;;  %v1823_v1 = vld [vmem:[%s3399_s10 + $0x10] sm:$0xff]  ;;  %v1826_v50 = vld [vmem:[%s3399_s10 + $0x28] sm:$0xff] }
 0x61a   : > { %2769 = vpow2.f32 %v2064_v41  ;;  %v1824_v41 = vld [vmem:[%s3399_s10 + $0x18] sm:$0xff]  ;;  %v2658_v52 = vpack.c.bf16 %v1826_v50, %v1825_v44 }
 0x61b   : > { %2771 = vpow2.f32 %v2065_v42  ;;  %v2655_v42 = vpack.c.bf16 %v1824_v41, %v1823_v1 }
 0x61c   : > { %2773 = vtanh.f32 %v1426_v54  ;;  %v1827_v54 = vld [vmem:[%s3399_s10 + $0x30] sm:$0xff] }
 0x61d   : > { %2775 = vpow2.f32 %v2066_v5  ;;  %v1828_v5 = vld [vmem:[%s3399_s10 + $0x38] sm:$0xff] }
 0x624   : > { %v2770_v58 = vpop.eup %2769 }
 0x625   : > { %v1436_v60 = vadd.f32 1.0, %v2770_v58  ;;  %v2772_v23 = vpop.eup %2771  ;;  %v2661_v58 = vpack.c.bf16 %v1828_v5, %v1827_v54 }
 0x626   : > { %v1437_v61 = vadd.f32 1.0, %v2772_v23  ;;  %v2774_v2 = vpop.eup %2773  ;;  %v1830_v23 = vld [vmem:[%s3399_s10 + $0x48] sm:$0xff] }
 0x627   : > { %2777 = vrcp.f32 %v1436_v60  ;;  %v2776_v4 = vpop.eup %2775  ;;  %v1829_v60 = vld [vmem:[%s3399_s10 + $0x40] sm:$0xff] }
 0x628   : > { %2779 = vrcp.f32 %v1437_v61  ;;  %v1438_v57 = vadd.f32 1.0, %v2776_v4  ;;  %v2664_v61 = vpack.c.bf16 %v1830_v23, %v1829_v60  ;;  %v1832_v4 = vld [vmem:[%s3399_s10 + $0x58] sm:$0xff] }
 0x62a   : > { %2781 = vrcp.f32 %v1438_v57 }
 0x631   : > { %v2778_v6 = vpop.eup %2777 }
 0x632   : > { %v1447_v8 = vmul.f32 %v2778_v6, %v2774_v2  ;;  %v2780_v12 = vpop.eup %2779  ;;  %v1831_v2 = vld [vmem:[%s3399_s10 + $0x50] sm:$0xff]  ;;  %v1833_v6 = vld [vmem:[%s3399_s10 + $0x60] sm:$0xff] }
 0x633   : > { %v1446_v62 = vmul.f32 %v2780_v12, %v3296_v24  ;;  %v1834_v12 = vld [vmem:[%s3399_s10 + $0x68] sm:$0xff] }
 0x634   : > { %v2782_v22 = vpop.eup %2781  ;;  %v2670_v57 = vpack.c.bf16 %v1834_v12, %v1833_v6 }
 0x635   : > { %v1448_v16 = vadd.f32 %v1447_v8, %v1446_v62  ;;  %v2667_v8 = vpack.c.bf16 %v1832_v4, %v1831_v2  ;;  %v1835_v62 = vld [vmem:[%s3399_s10 + $0x70] sm:$0xff] }
 0x637   : > { %2783 = vtanh.f32 %v1448_v16  ;;  %v3343_v14 = vsel %vm1455_vm13, %v1448_v16, %v3296_v24  ;;  %v2673_v16 = vpack.c.bf16 %v1836_v7, %v1835_v62 }
 0x641   : > { %v2784_v28 = vpop.eup %2783 }
 0x642   : > { %v1450_v20 = vmul.f32 %v2784_v28, %v2782_v22  ;;  %v2075_v22 = vld [vmem:[%s3097_s6 + $0xe8] sm:$0xff] }
 0x644   : > { %v3346_v25 = vsel %vm1455_vm13, %v1450_v20, %v3299_v29 }
 0x645   : > { %1528 = vmatmul.mubr.f32.vlgmr.msra.gmra.mrb[12].mxu0 %v3346_v25  ;;  %1599 = vmatmul.mubr.f32.vlgmr.msra.gmra.mrb[12].mxu1 %v3346_v25 }
 0x646   : > { %2590 = vmatpush1.bf16.msra.mxu0 %v2887_v9  ;;  %2622 = vmatpush1.bf16.msra.mxu1 %v2912_v26  ;;  %v2067_v9 = vld [vmem:[%s3097_s6 + $0xc0] sm:$0xff] }
 0x647   : > { %2592 = vmatprep.subr.bf16.mxu0 %v2889_v10  ;;  %2624 = vmatprep.subr.bf16.mxu1 %v2927_v34  ;;  %v2068_v10 = vld [vmem:[%s3097_s6 + $0xc8] sm:$0xff] }
 0x648   : > { %1709 = vmatprep.mubr.f32.mxu0 %v2825_v0  ;;  %1780 = vmatprep.mubr.f32.mxu1 %v2825_v0 }
 0x64a   : > { %2594 = vmatpush1.bf16.msra.mxu0 %v2897_v15  ;;  %2626 = vmatpush1.bf16.msra.mxu1 %v2932_v38 }
 0x64b   : > { %2596 = vmatprep.subr.bf16.mxu0 %v2902_v18  ;;  %2628 = vmatprep.subr.bf16.mxu1 %v2944_v46  ;;  %v2069_v46 = vld [vmem:[%s3097_s6 + $0xd0] sm:$0xff] }
 0x64e   : > { %2598 = vmatpush1.bf16.msra.mxu0 %v2915_v27  ;;  %2630 = vmatpush1.bf16.msra.mxu1 %v2951_v49  ;;  %v2070_v49 = vld [vmem:[%s3097_s6 + $0xd8] sm:$0xff] }
 0x64f   : > { %2600 = vmatprep.subr.bf16.mxu0 %v2922_v31  ;;  %2632 = vmatprep.subr.bf16.mxu1 %v2957_v53 }
 0x652   : > { %2602 = vmatpush1.bf16.msra.mxu0 %v2940_v43  ;;  %2634 = vmatpush1.bf16.msra.mxu1 %v2974_v63 }
 0x653   : > { %2604 = vmatprep.subr.bf16.mxu0 %v2947_v47  ;;  %2636 = vmatprep.subr.bf16.mxu1 %v2978_v3 }
 0x656   : > { %2606 = vmatpush1.bf16.msra.mxu0 %v2963_v56  ;;  %2638 = vmatpush1.bf16.msra.mxu1 %v2999_v17 }
 0x657   : > { %2608 = vmatprep.subr.bf16.mxu0 %v2968_v59  ;;  %2640 = vmatprep.subr.bf16.mxu1 %v3005_v21 }
 0x65a   : > { %2610 = vmatpush1.bf16.msra.mxu0 %v2990_v11  ;;  %2642 = vmatpush1.bf16.msra.mxu1 %v3023_v36 }
 0x65b   : > { %2612 = vmatprep.subr.bf16.mxu0 %v2994_v13  ;;  %2644 = vmatprep.subr.bf16.mxu1 %v3027_v39  ;;  %v1636_v39 = vpop.permute.xlu0 %1635 }
 0x65c   : > { %vm1637_vm14 = vcmp.eq.s32.totalorder %v1636_v39, 1 }
 0x65e   : > { %2614 = vmatpush1.bf16.msra.mxu0 %v3015_v30  ;;  %2646 = vmatpush1.bf16.msra.mxu1 %v3039_v48 }
 0x65f   : > { %2616 = vmatprep.subr.bf16.mxu0 %v3018_v32  ;;  %2648 = vmatprep.subr.bf16.mxu1 %v3043_v51 }
 0x662   : > { %2618 = vmatpush1.bf16.msra.mxu0 %v3035_v45  ;;  %2650 = vmatpush1.bf16.msra.mxu1 %v3050_v55 }
 0x663   : > { %2651 = vmatprep.subr.bf16.mxu0 %v2827_v40 }
 0x718   : > { %v1529_v15 = vpop.f32.mrb[12].mxu0  ;;  %v1600_v18 = vpop.f32.mrb[12].mxu1 }
 0x719   : > { %v1605_v26 = vadd.f32 %v2067_v9, %v1529_v15  ;;  %v1531_v27 = vpop.f32.mrb[13].mxu0  ;;  %v1602_v31 = vpop.f32.mrb[13].mxu1  ;;  %v1607_v47 = vadd.f32 %v2069_v46, %v1600_v18 }
 0x71a   : > { %v1606_v34 = vadd.f32 %v2068_v10, %v1531_v27  ;;  %v1608_v53 = vadd.f32 %v2070_v49, %v1602_v31  ;;  %v2077_v31 = vld [vmem:[%s3097_s6 + $0xf8] sm:$0xff] }
 0x71b   : > { %v2071_v38 = vmul.f32 -1.442695, %v1605_v26  ;;  %v2073_v56 = vmul.f32 -1.442695, %v1607_v47  ;;  %v2076_v26 = vld [vmem:[%s3097_s6 + $0xf0] sm:$0xff] }
 0x71c   : > { %v2072_v43 = vmul.f32 -1.442695, %v1606_v34 }
 0x71d   : > { %2785 = vpow2.f32 %v2071_v38 }
 0x71e   : > { %2787 = vpow2.f32 %v2072_v43 }
 0x71f   : > { %2789 = vtanh.f32 %v1608_v53 }
 0x720   : > { %2791 = vpow2.f32 %v2073_v56 }
 0x727   : > { %v2786_v59 = vpop.eup %2785 }
 0x728   : > { %v1618_v63 = vadd.f32 1.0, %v2786_v59  ;;  %v2788_v3 = vpop.eup %2787 }
 0x729   : > { %v1619_v11 = vadd.f32 1.0, %v2788_v3  ;;  %v2790_v13 = vpop.eup %2789 }
 0x72a   : > { %2793 = vrcp.f32 %v1618_v63  ;;  %v2792_v17 = vpop.eup %2791 }
 0x72b   : > { %2795 = vrcp.f32 %v1619_v11  ;;  %v1620_v36 = vadd.f32 1.0, %v2792_v17 }
 0x72d   : > { %2797 = vrcp.f32 %v1620_v36 }
 0x734   : > { %v2794_v21 = vpop.eup %2793 }
 0x735   : > { %v1629_v30 = vmul.f32 %v2794_v21, %v2790_v13  ;;  %v2796_v32 = vpop.eup %2795 }
 0x736   : > { %v1628_v45 = vmul.f32 %v2796_v32, %v3343_v14 }
 0x737   : > { %v2798_v55 = vpop.eup %2797 }
 0x738   : > { %v1630_v48 = vadd.f32 %v1629_v30, %v1628_v45  ;;  %v1818_v30 = vpop.permute.xlu1 %1817  ;;  %v2081_v45 = vld [vmem:[%s289_s13] ss:$0 sm:$0xff] }
 0x739   : > { %vm1819_vm0 = vcmp.eq.s32.totalorder %v1818_v30, 1 }
 0x73a   : > { %2799 = vtanh.f32 %v1630_v48  ;;  %v3388_v51 = vsel %vm1637_vm14, %v1630_v48, %v3343_v14  ;;  %v2074_v14 = vld [vmem:[%s3097_s6 + $0xe0] sm:$0xff] }
 0x744   : > { %v2800_v24 = vpop.eup %2799 }
 0x745   : > { %v1632_v29 = vmul.f32 %v2800_v24, %v2798_v55 }
 0x747   : > { %v3391_v33 = vsel %vm1637_vm14, %v1632_v29, %v3346_v25 }
 0x748   : > { %1710 = vmatmul.mubr.f32.vlgmr.msra.gmra.mrb[14].mxu0 %v3391_v33  ;;  %1781 = vmatmul.mubr.f32.vlgmr.msra.gmra.mrb[14].mxu1 %v3391_v33 }
 0x749   : > { %2653 = vmatpush3.bf16.msra.mxu0 %v2652_v37  ;;  %2136 = vmatprep.mubr.msk.f32.mxu0 %vm2828_vm15, %v2825_v0 }
 0x74a   : > { %2654 = vmatprep.subr.bf16.mxu0 %v2827_v40 }
 0x74d   : > { %2656 = vmatpush3.bf16.msra.mxu0 %v2655_v42 }
 0x74e   : > { %2657 = vmatprep.subr.bf16.mxu0 %v2827_v40 }
 0x751   : > { %2659 = vmatpush3.bf16.msra.mxu0 %v2658_v52 }
 0x752   : > { %2660 = vmatprep.subr.bf16.mxu0 %v2827_v40 }
 0x755   : > { %2662 = vmatpush3.bf16.msra.mxu0 %v2661_v58 }
 0x756   : > { %2663 = vmatprep.subr.bf16.mxu0 %v2827_v40 }
 0x759   : > { %2665 = vmatpush3.bf16.msra.mxu0 %v2664_v61 }
 0x75a   : > { %2666 = vmatprep.subr.bf16.mxu0 %v2827_v40 }
 0x75d   : > { %2668 = vmatpush3.bf16.msra.mxu0 %v2667_v8 }
 0x75e   : > { %2669 = vmatprep.subr.bf16.mxu0 %v2827_v40 }
 0x761   : > { %2671 = vmatpush3.bf16.msra.mxu0 %v2670_v57 }
 0x762   : > { %2672 = vmatprep.subr.bf16.mxu0 %v2827_v40 }
 0x765   : > { %2674 = vmatpush3.bf16.msra.mxu0 %v2673_v16 }
 0x81b   : > { %v1711_v28 = vpop.f32.mrb[14].mxu0  ;;  %v1782_v20 = vpop.f32.mrb[14].mxu1 }
 0x81c   : > { %v1787_v25 = vadd.f32 %v2074_v14, %v1711_v28  ;;  %v1713_v9 = vpop.f32.mrb[15].mxu0  ;;  %v1784_v10 = vpop.f32.mrb[15].mxu1  ;;  %v1789_v27 = vadd.f32 %v2076_v26, %v1782_v20 }
 0x81d   : > { %v1788_v15 = vadd.f32 %v2075_v22, %v1713_v9  ;;  %v1790_v34 = vadd.f32 %v2077_v31, %v1784_v10 }
 0x81e   : > { %v2078_v0 = vmul.f32 -1.442695, %v1787_v25  ;;  %v2080_v38 = vmul.f32 -1.442695, %v1789_v27 }
 0x81f   : > { %v2079_v18 = vmul.f32 -1.442695, %v1788_v15 }
 0x820   : > { %2801 = vpow2.f32 %v2078_v0 }
 0x821   : > { %2803 = vpow2.f32 %v2079_v18 }
 0x822   : > { %2805 = vtanh.f32 %v1790_v34 }
 0x823   : > { %2807 = vpow2.f32 %v2080_v38 }
 0x82a   : > { %v2802_v43 = vpop.eup %2801 }
 0x82b   : > { %v1800_v46 = vadd.f32 1.0, %v2802_v43  ;;  %v2804_v47 = vpop.eup %2803 }
 0x82c   : > { %v1801_v49 = vadd.f32 1.0, %v2804_v47  ;;  %v2806_v53 = vpop.eup %2805 }
 0x82d   : > { %2809 = vrcp.f32 %v1800_v46  ;;  %v2808_v56 = vpop.eup %2807 }
 0x82e   : > { %2811 = vrcp.f32 %v1801_v49  ;;  %v1802_v11 = vadd.f32 1.0, %v2808_v56 }
 0x830   : > { %2813 = vrcp.f32 %v1802_v11 }
 0x837   : > { %v2810_v59 = vpop.eup %2809 }
 0x838   : > { %v1811_v63 = vmul.f32 %v2810_v59, %v2806_v53  ;;  %v2812_v3 = vpop.eup %2811 }
 0x839   : > { %v1810_v13 = vmul.f32 %v2812_v3, %v3388_v51 }
 0x83a   : > { %v2814_v21 = vpop.eup %2813 }
 0x83b   : > { %v1812_v17 = vadd.f32 %v1811_v63, %v1810_v13 }
 0x83d   : > { %2815 = vtanh.f32 %v1812_v17 }
 0x847   : > { %v2816_v32 = vpop.eup %2815 }
 0x848   : > { %v1814_v36 = vmul.f32 %v2816_v32, %v2814_v21 }
 0x84a   : > { %v1820_v39 = vsel %vm1819_vm0, %v1814_v36, %v3391_v33 }
 0x84b   : > { %2137 = vmatmul.mubr.f32.vlgmr.msra.gmra.mrb[16].mxu0 %v1820_v39 }
 0x91e   : > { %v1910_v48 = vpop.f32.mrb[16].mxu0 }
 0x91f   : > { %v1911_v51 = vadd.f32 %v2081_v45, %v1910_v48  ;;  %v2138_v55 = vpop.f32.mrb[17].mxu0 }
 0x921   : > { %1915 = vst.msk [vmem:[%s293_s16] sm:$0xff] %vm1914_vm1, %v1911_v51 }
 0x922 PF: > { %s15_s18 = sadd.s32 1, %s2823_s18  }
 0x923   : > { %p12_p4 = scmp.ge.s32.totalorder %s15_s18, 4  }
 0x925   :  { %14 = sbr.rel (!%p12_p4) target bundleno = 1 (0x1), region = 89 }

</bundles_post_ra>
